<compile_context>
chip_gen: v5e
topology: v5e:2x2
jax: 0.10.0
libtpu: 0.0.40
codegen_flags: <defaults>
</compile_context>

<pallas_src>
import functools

import jax
import jax.numpy as jnp
from jax import lax
from jax.experimental import pallas as pl
from jax.experimental.pallas import tpu as pltpu

IMAGENET_MEAN = jnp.array([0.485, 0.456, 0.406], dtype=jnp.float32)
IMAGENET_STD = jnp.array([0.229, 0.224, 0.225], dtype=jnp.float32)


def _conv3x3_strip_kernel(w_ref, b_ref, mean_ref, x_ref, o_ref, *, sh):
    """One (image, row-tile) pair per grid step; strip-wise accumulation.

    w_ref:    SMEM (Cout*Cin*9,) f32  normalization-folded weights (co,ci,dy,dx)
    b_ref:    SMEM (Cout,)       f32  folded bias
    mean_ref: SMEM (Cin,)        f32  per-channel mean (border fill value)
    x_ref:    VMEM (1, Cin, H, W)     raw image, whole image resident per b
    o_ref:    VMEM (1, Cout, TH, W)   ReLU(conv(normalize(x)) + b), one row tile
    """
    _, cout, th, w_out = o_ref.shape
    _, cin, h_img, _ = x_ref.shape
    cdt = o_ref.dtype
    n_strips = th // sh

    tile_r0 = pl.program_id(1) * th

    # ---- hoisted scalars: SMEM weights / bias / means read once per step ----
    wts = [[[[w_ref[((co * cin + ci) * 3 + dy) * 3 + dx].astype(cdt)
              for dx in range(3)]
             for dy in range(3)]
            for ci in range(cin)]
           for co in range(cout)]
    bias = [b_ref[co].astype(cdt) for co in range(cout)]
    means_f32 = [mean_ref[ci] for ci in range(cin)]
    means = [m.astype(cdt) for m in means_f32]

    # ---- hoisted border masks, kept narrow: (1, W) and (sh+2, 1) ------------
    lane = lax.broadcasted_iota(jnp.int32, (1, w_out), 1)
    left_edge = lane == 0
    right_edge = lane == (w_out - 1)
    srow = lax.broadcasted_iota(jnp.int32, (sh + 2, 1), 0)
    top_row = srow == 0
    bot_row = srow == (sh + 1)

    for s in range(n_strips):
        r0 = tile_r0 + s * sh                 # first output row of this strip
        could_top = (s == 0)                  # strip may touch the image top
        could_bot = (s == n_strips - 1)       # strip may touch the image bottom
        is_top = (r0 == 0) if could_top else None
        is_bot = (r0 + sh == h_img) if could_bot else None

        # Slab covers input rows [r0-1, r0+sh]; clamp into [0, H-1] at the
        # image edges (the shifted/fixed slab is selected below).
        lo = r0 - 1
        if could_top:
            lo = lo + jnp.where(is_top, 1, 0)
        if could_bot:
            lo = lo - jnp.where(is_bot, 1, 0)

        accs = [None] * cout
        for ci in range(cin):
            # One load per (channel, strip); dy/dx taps are register slices.
            slab = x_ref[0, ci, pl.ds(lo, sh + 2), :]          # (sh+2, W) f32

            # Image-top / image-bottom halo row: a mean-valued halo is exactly
            # zero after weight folding (== zero-padding the normalized image).
            if could_top:
                t = pltpu.roll(slab, 1, 0)                     # rows down by 1
                t = jnp.where(top_row, means_f32[ci], t)
                slab = jnp.where(is_top, t, slab)
            if could_bot:
                t = pltpu.roll(slab, sh + 1, 0)                # rows up by 1
                t = jnp.where(bot_row, means_f32[ci], t)
                slab = jnp.where(is_bot, t, slab)

            slab = slab.astype(cdt)
            mean_c = means[ci]

            # dx taps: lane-shifted copies of the slab, border column filled
            # with the channel mean.  Built once per (ci, strip), reused for
            # all dy / co FMAs; dx order 1,0,2 keeps at most two slabs live.
            for dx in (1, 0, 2):
                if dx == 1:
                    tap_slab = slab
                elif dx == 0:
                    tap_slab = jnp.where(left_edge, mean_c,
                                         pltpu.roll(slab, 1, 1))
                else:
                    tap_slab = jnp.where(right_edge, mean_c,
                                         pltpu.roll(slab, w_out - 1, 1))
                for dy in range(3):
                    tap = tap_slab[dy:dy + sh, :]              # (sh, W)
                    for co in range(cout):
                        contrib = wts[co][ci][dy][dx] * tap
                        accs[co] = contrib if accs[co] is None \
                            else accs[co] + contrib

        # Bias + ReLU + immediate lane-dense store of this strip.
        for co in range(cout):
            out = jnp.maximum(accs[co] + bias[co], 0.0).astype(cdt)
            o_ref[0, co, pl.ds(s * sh, sh), :] = out


def _pick_block_h(h, max_th, row_align):
    """Largest row tile <= max_th dividing H, preferring row_align multiples."""
    fallback = None
    for t in range(min(max_th, h), 0, -1):
        if h % t == 0:
            if t % row_align == 0:
                return t
            if fallback is None:
                fallback = t
    return fallback if fallback is not None else h


def fused_norm_conv3x3_relu(x_nchw, w_oihw, bias, *, block_h=128,
                            compute_dtype=jnp.float32):
    """ReLU(conv2d_SAME(normalize(x), w) + b) in planar NCHW, fully fused.

    x_nchw: (B, Cin, H, W) raw pixels in [0, 1]; w_oihw: (Cout, Cin, 3, 3).
    """
    # TODO(synk): uint8 images could be passed through unconverted and scaled
    #             in-kernel to cut input HBM bytes (ToTensor implies float).
    x_nchw = x_nchw.astype(jnp.float32)
    B, C, H, W = x_nchw.shape
    Cout = w_oihw.shape[0]
    cdt = jnp.dtype(compute_dtype)

    # Fold ImageNet normalization into the conv parameters:
    #   w' = w / std,   b' = b - sum_{ci,dy,dx} w * mean / std
    inv_std = (1.0 / IMAGENET_STD).astype(jnp.float32)
    w_eff = w_oihw.astype(jnp.float32) * inv_std[None, :, None, None]
    b_eff = bias.astype(jnp.float32) - jnp.sum(
        w_oihw.astype(jnp.float32)
        * (IMAGENET_MEAN * inv_std)[None, :, None, None],
        axis=(1, 2, 3))
    w_flat = w_eff.reshape(-1)                 # (Cout*Cin*9,), layout (co,ci,dy,dx)

    row_align = 16 if cdt == jnp.dtype(jnp.bfloat16) else 8
    th = _pick_block_h(H, block_h, row_align)
    n_h = H // th
    if cdt == jnp.dtype(jnp.bfloat16) and th % 16 == 0:
        sh = 16
    elif th % 8 == 0:
        sh = 8
    else:
        sh = th
    if H < sh + 2:
        raise ValueError(
            f"H={H} too small for in-kernel SAME border handling (needs >= {sh + 2})")

    grid_spec = pltpu.PrefetchScalarGridSpec(
        num_scalar_prefetch=3,                 # w_flat, b_eff, mean
        grid=(B, n_h),
        in_specs=[
            # Whole raw image per batch index: the block index only changes
            # with b, so the image is DMA'd once and stays VMEM-resident across
            # all row tiles of that image (no host-side padding pass).
            pl.BlockSpec((1, C, H, W), lambda b, h, *_: (b, 0, 0, 0)),
        ],
        out_specs=pl.BlockSpec((1, Cout, th, W), lambda b, h, *_: (b, 0, h, 0)),
    )

    cost = pl.CostEstimate(
        flops=2 * B * Cout * C * 9 * H * W,
        transcendentals=0,
        bytes_accessed=(x_nchw.size * 4
                        + B * Cout * H * W * cdt.itemsize
                        + (w_flat.size + b_eff.size + 3) * 4),
    )

    kernel = functools.partial(_conv3x3_strip_kernel, sh=sh)

    return pl.pallas_call(
        kernel,
        out_shape=jax.ShapeDtypeStruct((B, Cout, H, W), cdt),
        grid_spec=grid_spec,
        compiler_params=pltpu.CompilerParams(
            # B leads so a megacore split prefers the batch axis (avoids
            # duplicating the per-image input DMA / VMEM residency on v7x).
            dimension_semantics=("parallel", "parallel")),
        cost_estimate=cost,
    )(w_flat, b_eff, IMAGENET_MEAN, x_nchw)


class ModelPallas:
    """Concrete stand-in for the abstract detection `Model`."""
    # TODO(synk): Model.forward / Model.trainable are @abstractmethod with no
    #             body; this is a representative concrete forward
    #             (ImageNet normalize -> 3x3 SAME conv -> bias -> ReLU).

    def __init__(self, in_channels=3, output_channels=3,
                 key=jax.random.PRNGKey(0), block_h=128,
                 compute_dtype=jnp.float32):
        kw, kb = jax.random.split(key)
        # Deterministic synthetic parameters (PyTorch layout: Cout, Cin, 3, 3).
        self.w_oihw = 0.1 * jax.random.normal(
            kw, (output_channels, in_channels, 3, 3), dtype=jnp.float32)
        self.b = 0.01 * jax.random.normal(kb, (output_channels,),
                                          dtype=jnp.float32)
        self.block_h = block_h
        self.compute_dtype = compute_dtype

    def forward(self, images, annotations=None):
        # images: List of (C, H, W) arrays in [0, 1] (ToTensor output).
        x = jnp.stack(images, axis=0)          # (B, C, H, W), planar
        feats = fused_norm_conv3x3_relu(x, self.w_oihw, self.b,
                                        block_h=self.block_h,
                                        compute_dtype=self.compute_dtype)
        # Return type per the abstract signature: List[Dict].
        return [{"features": feats[i]} for i in range(feats.shape[0])]

    def trainable(self):
        return [self.w_oihw, self.b]


if __name__ == "__main__":
    key = jax.random.PRNGKey(0)
    k_img, k_model = jax.random.split(key)

    # Small stand-in for input_dims=(3, 480, 640).  H=32 with block_h=16 gives
    # 2 row tiles x 2 strips/tile, exercising the image-top halo, interior
    # strips and the image-bottom halo paths (plus both W borders).
    B, C, H, W = 2, 3, 32, 128
    imgs_batched = jax.random.uniform(k_img, (B, C, H, W), dtype=jnp.float32)
    images = [imgs_batched[i] for i in range(B)]      # List[Tensor]-style

    model = ModelPallas(in_channels=C, output_channels=3, key=k_model,
                        block_h=16)
    out = model.forward(images)
    for d in out:
        jax.block_until_ready(d["features"])

    # Plain-JAX reference: normalize -> SAME conv -> bias -> ReLU (f32).
    x_norm = (imgs_batched - IMAGENET_MEAN[None, :, None, None]) \
        / IMAGENET_STD[None, :, None, None]
    ref = lax.conv_general_dilated(
        x_norm, model.w_oihw, window_strides=(1, 1), padding="SAME",
        dimension_numbers=("NCHW", "OIHW", "NCHW"),
        precision=lax.Precision.HIGHEST)
    ref = jnp.maximum(ref + model.b[None, :, None, None], 0.0)

    got = jnp.stack([d["features"] for d in out], axis=0)
    assert jnp.allclose(got, ref, atol=1e-4, rtol=1e-4), "f32 mismatch vs reference"

    # bf16 compute/output path (packed-bf16 VPU lever for v6e/v7x); loose
    # tolerance because of the 27-term bf16 accumulation.
    got_bf16 = fused_norm_conv3x3_relu(imgs_batched, model.w_oihw, model.b,
                                       block_h=16,
                                       compute_dtype=jnp.bfloat16)
    jax.block_until_ready(got_bf16)
    diff = jnp.abs(got_bf16.astype(jnp.float32) - ref)
    assert float(jnp.max(diff)) < 0.5 and float(jnp.mean(diff)) < 0.05, \
        "bf16 path too far from the f32 reference"

    print("KERNEL_OK")
</pallas_src>

<mosaic_0001>
module attributes {stable_mosaic.version = 11 : i64} {
  func.func @_conv3x3_strip_kernel(%arg0: i32, %arg1: i32, %arg2: memref<81xf32, #tpu.memory_space<smem>>, %arg3: memref<3xf32, #tpu.memory_space<smem>>, %arg4: memref<3xf32, #tpu.memory_space<smem>>, %arg5: memref<1x3x32x128xf32, #tpu.memory_space<vmem>>, %arg6: memref<1x3x16x128xf32, #tpu.memory_space<vmem>>) attributes {dimension_semantics = [#tpu.dimension_semantics<parallel>, #tpu.dimension_semantics<parallel>], iteration_bounds = array<i64: 2, 2>, scalar_prefetch = 3 : i64, scratch_operands = 0 : i64, tpu.core_type = #tpu.core_type<tc>, window_params = [{transform_indices = @transform_0, window_bounds = array<i64: 1, 3, 32, 128>}, {transform_indices = @transform_1, window_bounds = array<i64: 1, 3, 16, 128>}]} {
    %c16_i32 = arith.constant 16 : i32
    %0 = arith.muli %arg1, %c16_i32 : i32
    %c0 = arith.constant 0 : index
    %1 = memref.load %arg2[%c0] : memref<81xf32, #tpu.memory_space<smem>>
    %c1 = arith.constant 1 : index
    %2 = memref.load %arg2[%c1] : memref<81xf32, #tpu.memory_space<smem>>
    %c2 = arith.constant 2 : index
    %3 = memref.load %arg2[%c2] : memref<81xf32, #tpu.memory_space<smem>>
    %c3 = arith.constant 3 : index
    %4 = memref.load %arg2[%c3] : memref<81xf32, #tpu.memory_space<smem>>
    %c4 = arith.constant 4 : index
    %5 = memref.load %arg2[%c4] : memref<81xf32, #tpu.memory_space<smem>>
    %c5 = arith.constant 5 : index
    %6 = memref.load %arg2[%c5] : memref<81xf32, #tpu.memory_space<smem>>
    %c6 = arith.constant 6 : index
    %7 = memref.load %arg2[%c6] : memref<81xf32, #tpu.memory_space<smem>>
    %c7 = arith.constant 7 : index
    %8 = memref.load %arg2[%c7] : memref<81xf32, #tpu.memory_space<smem>>
    %c8 = arith.constant 8 : index
    %9 = memref.load %arg2[%c8] : memref<81xf32, #tpu.memory_space<smem>>
    %c9 = arith.constant 9 : index
    %10 = memref.load %arg2[%c9] : memref<81xf32, #tpu.memory_space<smem>>
    %c10 = arith.constant 10 : index
    %11 = memref.load %arg2[%c10] : memref<81xf32, #tpu.memory_space<smem>>
    %c11 = arith.constant 11 : index
    %12 = memref.load %arg2[%c11] : memref<81xf32, #tpu.memory_space<smem>>
    %c12 = arith.constant 12 : index
    %13 = memref.load %arg2[%c12] : memref<81xf32, #tpu.memory_space<smem>>
    %c13 = arith.constant 13 : index
    %14 = memref.load %arg2[%c13] : memref<81xf32, #tpu.memory_space<smem>>
    %c14 = arith.constant 14 : index
    %15 = memref.load %arg2[%c14] : memref<81xf32, #tpu.memory_space<smem>>
    %c15 = arith.constant 15 : index
    %16 = memref.load %arg2[%c15] : memref<81xf32, #tpu.memory_space<smem>>
    %c16 = arith.constant 16 : index
    %17 = memref.load %arg2[%c16] : memref<81xf32, #tpu.memory_space<smem>>
    %c17 = arith.constant 17 : index
    %18 = memref.load %arg2[%c17] : memref<81xf32, #tpu.memory_space<smem>>
    %c18 = arith.constant 18 : index
    %19 = memref.load %arg2[%c18] : memref<81xf32, #tpu.memory_space<smem>>
    %c19 = arith.constant 19 : index
    %20 = memref.load %arg2[%c19] : memref<81xf32, #tpu.memory_space<smem>>
    %c20 = arith.constant 20 : index
    %21 = memref.load %arg2[%c20] : memref<81xf32, #tpu.memory_space<smem>>
    %c21 = arith.constant 21 : index
    %22 = memref.load %arg2[%c21] : memref<81xf32, #tpu.memory_space<smem>>
    %c22 = arith.constant 22 : index
    %23 = memref.load %arg2[%c22] : memref<81xf32, #tpu.memory_space<smem>>
    %c23 = arith.constant 23 : index
    %24 = memref.load %arg2[%c23] : memref<81xf32, #tpu.memory_space<smem>>
    %c24 = arith.constant 24 : index
    %25 = memref.load %arg2[%c24] : memref<81xf32, #tpu.memory_space<smem>>
    %c25 = arith.constant 25 : index
    %26 = memref.load %arg2[%c25] : memref<81xf32, #tpu.memory_space<smem>>
    %c26 = arith.constant 26 : index
    %27 = memref.load %arg2[%c26] : memref<81xf32, #tpu.memory_space<smem>>
    %c27 = arith.constant 27 : index
    %28 = memref.load %arg2[%c27] : memref<81xf32, #tpu.memory_space<smem>>
    %c28 = arith.constant 28 : index
    %29 = memref.load %arg2[%c28] : memref<81xf32, #tpu.memory_space<smem>>
    %c29 = arith.constant 29 : index
    %30 = memref.load %arg2[%c29] : memref<81xf32, #tpu.memory_space<smem>>
    %c30 = arith.constant 30 : index
    %31 = memref.load %arg2[%c30] : memref<81xf32, #tpu.memory_space<smem>>
    %c31 = arith.constant 31 : index
    %32 = memref.load %arg2[%c31] : memref<81xf32, #tpu.memory_space<smem>>
    %c32 = arith.constant 32 : index
    %33 = memref.load %arg2[%c32] : memref<81xf32, #tpu.memory_space<smem>>
    %c33 = arith.constant 33 : index
    %34 = memref.load %arg2[%c33] : memref<81xf32, #tpu.memory_space<smem>>
    %c34 = arith.constant 34 : index
    %35 = memref.load %arg2[%c34] : memref<81xf32, #tpu.memory_space<smem>>
    %c35 = arith.constant 35 : index
    %36 = memref.load %arg2[%c35] : memref<81xf32, #tpu.memory_space<smem>>
    %c36 = arith.constant 36 : index
    %37 = memref.load %arg2[%c36] : memref<81xf32, #tpu.memory_space<smem>>
    %c37 = arith.constant 37 : index
    %38 = memref.load %arg2[%c37] : memref<81xf32, #tpu.memory_space<smem>>
    %c38 = arith.constant 38 : index
    %39 = memref.load %arg2[%c38] : memref<81xf32, #tpu.memory_space<smem>>
    %c39 = arith.constant 39 : index
    %40 = memref.load %arg2[%c39] : memref<81xf32, #tpu.memory_space<smem>>
    %c40 = arith.constant 40 : index
    %41 = memref.load %arg2[%c40] : memref<81xf32, #tpu.memory_space<smem>>
    %c41 = arith.constant 41 : index
    %42 = memref.load %arg2[%c41] : memref<81xf32, #tpu.memory_space<smem>>
    %c42 = arith.constant 42 : index
    %43 = memref.load %arg2[%c42] : memref<81xf32, #tpu.memory_space<smem>>
    %c43 = arith.constant 43 : index
    %44 = memref.load %arg2[%c43] : memref<81xf32, #tpu.memory_space<smem>>
    %c44 = arith.constant 44 : index
    %45 = memref.load %arg2[%c44] : memref<81xf32, #tpu.memory_space<smem>>
    %c45 = arith.constant 45 : index
    %46 = memref.load %arg2[%c45] : memref<81xf32, #tpu.memory_space<smem>>
    %c46 = arith.constant 46 : index
    %47 = memref.load %arg2[%c46] : memref<81xf32, #tpu.memory_space<smem>>
    %c47 = arith.constant 47 : index
    %48 = memref.load %arg2[%c47] : memref<81xf32, #tpu.memory_space<smem>>
    %c48 = arith.constant 48 : index
    %49 = memref.load %arg2[%c48] : memref<81xf32, #tpu.memory_space<smem>>
    %c49 = arith.constant 49 : index
    %50 = memref.load %arg2[%c49] : memref<81xf32, #tpu.memory_space<smem>>
    %c50 = arith.constant 50 : index
    %51 = memref.load %arg2[%c50] : memref<81xf32, #tpu.memory_space<smem>>
    %c51 = arith.constant 51 : index
    %52 = memref.load %arg2[%c51] : memref<81xf32, #tpu.memory_space<smem>>
    %c52 = arith.constant 52 : index
    %53 = memref.load %arg2[%c52] : memref<81xf32, #tpu.memory_space<smem>>
    %c53 = arith.constant 53 : index
    %54 = memref.load %arg2[%c53] : memref<81xf32, #tpu.memory_space<smem>>
    %c54 = arith.constant 54 : index
    %55 = memref.load %arg2[%c54] : memref<81xf32, #tpu.memory_space<smem>>
    %c55 = arith.constant 55 : index
    %56 = memref.load %arg2[%c55] : memref<81xf32, #tpu.memory_space<smem>>
    %c56 = arith.constant 56 : index
    %57 = memref.load %arg2[%c56] : memref<81xf32, #tpu.memory_space<smem>>
    %c57 = arith.constant 57 : index
    %58 = memref.load %arg2[%c57] : memref<81xf32, #tpu.memory_space<smem>>
    %c58 = arith.constant 58 : index
    %59 = memref.load %arg2[%c58] : memref<81xf32, #tpu.memory_space<smem>>
    %c59 = arith.constant 59 : index
    %60 = memref.load %arg2[%c59] : memref<81xf32, #tpu.memory_space<smem>>
    %c60 = arith.constant 60 : index
    %61 = memref.load %arg2[%c60] : memref<81xf32, #tpu.memory_space<smem>>
    %c61 = arith.constant 61 : index
    %62 = memref.load %arg2[%c61] : memref<81xf32, #tpu.memory_space<smem>>
    %c62 = arith.constant 62 : index
    %63 = memref.load %arg2[%c62] : memref<81xf32, #tpu.memory_space<smem>>
    %c63 = arith.constant 63 : index
    %64 = memref.load %arg2[%c63] : memref<81xf32, #tpu.memory_space<smem>>
    %c64 = arith.constant 64 : index
    %65 = memref.load %arg2[%c64] : memref<81xf32, #tpu.memory_space<smem>>
    %c65 = arith.constant 65 : index
    %66 = memref.load %arg2[%c65] : memref<81xf32, #tpu.memory_space<smem>>
    %c66 = arith.constant 66 : index
    %67 = memref.load %arg2[%c66] : memref<81xf32, #tpu.memory_space<smem>>
    %c67 = arith.constant 67 : index
    %68 = memref.load %arg2[%c67] : memref<81xf32, #tpu.memory_space<smem>>
    %c68 = arith.constant 68 : index
    %69 = memref.load %arg2[%c68] : memref<81xf32, #tpu.memory_space<smem>>
    %c69 = arith.constant 69 : index
    %70 = memref.load %arg2[%c69] : memref<81xf32, #tpu.memory_space<smem>>
    %c70 = arith.constant 70 : index
    %71 = memref.load %arg2[%c70] : memref<81xf32, #tpu.memory_space<smem>>
    %c71 = arith.constant 71 : index
    %72 = memref.load %arg2[%c71] : memref<81xf32, #tpu.memory_space<smem>>
    %c72 = arith.constant 72 : index
    %73 = memref.load %arg2[%c72] : memref<81xf32, #tpu.memory_space<smem>>
    %c73 = arith.constant 73 : index
    %74 = memref.load %arg2[%c73] : memref<81xf32, #tpu.memory_space<smem>>
    %c74 = arith.constant 74 : index
    %75 = memref.load %arg2[%c74] : memref<81xf32, #tpu.memory_space<smem>>
    %c75 = arith.constant 75 : index
    %76 = memref.load %arg2[%c75] : memref<81xf32, #tpu.memory_space<smem>>
    %c76 = arith.constant 76 : index
    %77 = memref.load %arg2[%c76] : memref<81xf32, #tpu.memory_space<smem>>
    %c77 = arith.constant 77 : index
    %78 = memref.load %arg2[%c77] : memref<81xf32, #tpu.memory_space<smem>>
    %c78 = arith.constant 78 : index
    %79 = memref.load %arg2[%c78] : memref<81xf32, #tpu.memory_space<smem>>
    %c79 = arith.constant 79 : index
    %80 = memref.load %arg2[%c79] : memref<81xf32, #tpu.memory_space<smem>>
    %c80 = arith.constant 80 : index
    %81 = memref.load %arg2[%c80] : memref<81xf32, #tpu.memory_space<smem>>
    %c0_0 = arith.constant 0 : index
    %82 = memref.load %arg3[%c0_0] : memref<3xf32, #tpu.memory_space<smem>>
    %c1_1 = arith.constant 1 : index
    %83 = memref.load %arg3[%c1_1] : memref<3xf32, #tpu.memory_space<smem>>
    %c2_2 = arith.constant 2 : index
    %84 = memref.load %arg3[%c2_2] : memref<3xf32, #tpu.memory_space<smem>>
    %c0_3 = arith.constant 0 : index
    %85 = memref.load %arg4[%c0_3] : memref<3xf32, #tpu.memory_space<smem>>
    %c1_4 = arith.constant 1 : index
    %86 = memref.load %arg4[%c1_4] : memref<3xf32, #tpu.memory_space<smem>>
    %c2_5 = arith.constant 2 : index
    %87 = memref.load %arg4[%c2_5] : memref<3xf32, #tpu.memory_space<smem>>
    %88 = tpu.iota {dimensions = array<i32: 1>} : vector<1x128xi32>
    %c0_i32 = arith.constant 0 : i32
    %89 = vector.broadcast %c0_i32 : i32 to vector<1x128xi32>
    %90 = arith.cmpi eq, %88, %89 : vector<1x128xi32>
    %c127_i32 = arith.constant 127 : i32
    %91 = vector.broadcast %c127_i32 : i32 to vector<1x128xi32>
    %92 = arith.cmpi eq, %88, %91 : vector<1x128xi32>
    %93 = tpu.iota {dimensions = array<i32: 0>} : vector<10x1xi32>
    %c0_i32_6 = arith.constant 0 : i32
    %94 = vector.broadcast %c0_i32_6 : i32 to vector<10x1xi32>
    %95 = arith.cmpi eq, %93, %94 : vector<10x1xi32>
    %c9_i32 = arith.constant 9 : i32
    %96 = vector.broadcast %c9_i32 : i32 to vector<10x1xi32>
    %97 = arith.cmpi eq, %93, %96 : vector<10x1xi32>
    %c0_i32_7 = arith.constant 0 : i32
    %98 = arith.addi %0, %c0_i32_7 : i32
    %c0_i32_8 = arith.constant 0 : i32
    %99 = arith.cmpi eq, %98, %c0_i32_8 : i32
    %c1_i32 = arith.constant 1 : i32
    %100 = arith.subi %98, %c1_i32 : i32
    %c1_i32_9 = arith.constant 1 : i32
    %c0_i32_10 = arith.constant 0 : i32
    %101 = arith.select %99, %c1_i32_9, %c0_i32_10 : i32
    %102 = arith.addi %100, %101 : i32
    %c0_11 = arith.constant 0 : index
    %c0_12 = arith.constant 0 : index
    %103 = arith.index_cast %102 : i32 to index
    %c0_13 = arith.constant 0 : index
    %104 = vector.load %arg5[%c0_11, %c0_12, %103, %c0_13] : memref<1x3x32x128xf32, #tpu.memory_space<vmem>>, vector<1x1x10x128xf32>
    %105 = vector.shape_cast %104 : vector<1x1x10x128xf32> to vector<10x128xf32>
    %c1_i32_14 = arith.constant 1 : i32
    %106 = tpu.dynamic_rotate %105 by %c1_i32_14 dim 0 : vector<10x128xf32>, i32 -> vector<10x128xf32>
    %107 = vector.shape_cast %95 : vector<10x1xi1> to vector<10x1xi1>
    %108 = vector.broadcast %107 : vector<10x1xi1> to vector<10x128xi1>
    %109 = vector.broadcast %85 : f32 to vector<10x128xf32>
    %110 = arith.select %108, %109, %106 : vector<10x128xi1>, vector<10x128xf32>
    %111 = arith.select %99, %110, %105 : vector<10x128xf32>
    %112 = vector.extract_strided_slice %111 {offsets = [0, 0], sizes = [8, 128], strides = [1, 1]} : vector<10x128xf32> to vector<8x128xf32>
    %113 = vector.broadcast %2 : f32 to vector<8x128xf32>
    %114 = arith.mulf %113, %112 : vector<8x128xf32>
    %115 = vector.broadcast %29 : f32 to vector<8x128xf32>
    %116 = arith.mulf %115, %112 : vector<8x128xf32>
    %117 = vector.broadcast %56 : f32 to vector<8x128xf32>
    %118 = arith.mulf %117, %112 : vector<8x128xf32>
    %119 = vector.extract_strided_slice %111 {offsets = [1, 0], sizes = [8, 128], strides = [1, 1]} : vector<10x128xf32> to vector<8x128xf32>
    %120 = vector.broadcast %5 : f32 to vector<8x128xf32>
    %121 = arith.mulf %120, %119 : vector<8x128xf32>
    %122 = arith.addf %114, %121 : vector<8x128xf32>
    %123 = vector.broadcast %32 : f32 to vector<8x128xf32>
    %124 = arith.mulf %123, %119 : vector<8x128xf32>
    %125 = arith.addf %116, %124 : vector<8x128xf32>
    %126 = vector.broadcast %59 : f32 to vector<8x128xf32>
    %127 = arith.mulf %126, %119 : vector<8x128xf32>
    %128 = arith.addf %118, %127 : vector<8x128xf32>
    %129 = vector.extract_strided_slice %111 {offsets = [2, 0], sizes = [8, 128], strides = [1, 1]} : vector<10x128xf32> to vector<8x128xf32>
    %130 = vector.broadcast %8 : f32 to vector<8x128xf32>
    %131 = arith.mulf %130, %129 : vector<8x128xf32>
    %132 = arith.addf %122, %131 : vector<8x128xf32>
    %133 = vector.broadcast %35 : f32 to vector<8x128xf32>
    %134 = arith.mulf %133, %129 : vector<8x128xf32>
    %135 = arith.addf %125, %134 : vector<8x128xf32>
    %136 = vector.broadcast %62 : f32 to vector<8x128xf32>
    %137 = arith.mulf %136, %129 : vector<8x128xf32>
    %138 = arith.addf %128, %137 : vector<8x128xf32>
    %c1_i32_15 = arith.constant 1 : i32
    %139 = tpu.dynamic_rotate %111 by %c1_i32_15 dim 1 : vector<10x128xf32>, i32 -> vector<10x128xf32>
    %140 = vector.shape_cast %90 : vector<1x128xi1> to vector<1x128xi1>
    %141 = vector.broadcast %140 : vector<1x128xi1> to vector<10x128xi1>
    %142 = vector.broadcast %85 : f32 to vector<10x128xf32>
    %143 = arith.select %141, %142, %139 : vector<10x128xi1>, vector<10x128xf32>
    %144 = vector.extract_strided_slice %143 {offsets = [0, 0], sizes = [8, 128], strides = [1, 1]} : vector<10x128xf32> to vector<8x128xf32>
    %145 = vector.broadcast %1 : f32 to vector<8x128xf32>
    %146 = arith.mulf %145, %144 : vector<8x128xf32>
    %147 = arith.addf %132, %146 : vector<8x128xf32>
    %148 = vector.broadcast %28 : f32 to vector<8x128xf32>
    %149 = arith.mulf %148, %144 : vector<8x128xf32>
    %150 = arith.addf %135, %149 : vector<8x128xf32>
    %151 = vector.broadcast %55 : f32 to vector<8x128xf32>
    %152 = arith.mulf %151, %144 : vector<8x128xf32>
    %153 = arith.addf %138, %152 : vector<8x128xf32>
    %154 = vector.extract_strided_slice %143 {offsets = [1, 0], sizes = [8, 128], strides = [1, 1]} : vector<10x128xf32> to vector<8x128xf32>
    %155 = vector.broadcast %4 : f32 to vector<8x128xf32>
    %156 = arith.mulf %155, %154 : vector<8x128xf32>
    %157 = arith.addf %147, %156 : vector<8x128xf32>
    %158 = vector.broadcast %31 : f32 to vector<8x128xf32>
    %159 = arith.mulf %158, %154 : vector<8x128xf32>
    %160 = arith.addf %150, %159 : vector<8x128xf32>
    %161 = vector.broadcast %58 : f32 to vector<8x128xf32>
    %162 = arith.mulf %161, %154 : vector<8x128xf32>
    %163 = arith.addf %153, %162 : vector<8x128xf32>
    %164 = vector.extract_strided_slice %143 {offsets = [2, 0], sizes = [8, 128], strides = [1, 1]} : vector<10x128xf32> to vector<8x128xf32>
    %165 = vector.broadcast %7 : f32 to vector<8x128xf32>
    %166 = arith.mulf %165, %164 : vector<8x128xf32>
    %167 = arith.addf %157, %166 : vector<8x128xf32>
    %168 = vector.broadcast %34 : f32 to vector<8x128xf32>
    %169 = arith.mulf %168, %164 : vector<8x128xf32>
    %170 = arith.addf %160, %169 : vector<8x128xf32>
    %171 = vector.broadcast %61 : f32 to vector<8x128xf32>
    %172 = arith.mulf %171, %164 : vector<8x128xf32>
    %173 = arith.addf %163, %172 : vector<8x128xf32>
    %c127_i32_16 = arith.constant 127 : i32
    %174 = tpu.dynamic_rotate %111 by %c127_i32_16 dim 1 : vector<10x128xf32>, i32 -> vector<10x128xf32>
    %175 = vector.shape_cast %92 : vector<1x128xi1> to vector<1x128xi1>
    %176 = vector.broadcast %175 : vector<1x128xi1> to vector<10x128xi1>
    %177 = vector.broadcast %85 : f32 to vector<10x128xf32>
    %178 = arith.select %176, %177, %174 : vector<10x128xi1>, vector<10x128xf32>
    %179 = vector.extract_strided_slice %178 {offsets = [0, 0], sizes = [8, 128], strides = [1, 1]} : vector<10x128xf32> to vector<8x128xf32>
    %180 = vector.broadcast %3 : f32 to vector<8x128xf32>
    %181 = arith.mulf %180, %179 : vector<8x128xf32>
    %182 = arith.addf %167, %181 : vector<8x128xf32>
    %183 = vector.broadcast %30 : f32 to vector<8x128xf32>
    %184 = arith.mulf %183, %179 : vector<8x128xf32>
    %185 = arith.addf %170, %184 : vector<8x128xf32>
    %186 = vector.broadcast %57 : f32 to vector<8x128xf32>
    %187 = arith.mulf %186, %179 : vector<8x128xf32>
    %188 = arith.addf %173, %187 : vector<8x128xf32>
    %189 = vector.extract_strided_slice %178 {offsets = [1, 0], sizes = [8, 128], strides = [1, 1]} : vector<10x128xf32> to vector<8x128xf32>
    %190 = vector.broadcast %6 : f32 to vector<8x128xf32>
    %191 = arith.mulf %190, %189 : vector<8x128xf32>
    %192 = arith.addf %182, %191 : vector<8x128xf32>
    %193 = vector.broadcast %33 : f32 to vector<8x128xf32>
    %194 = arith.mulf %193, %189 : vector<8x128xf32>
    %195 = arith.addf %185, %194 : vector<8x128xf32>
    %196 = vector.broadcast %60 : f32 to vector<8x128xf32>
    %197 = arith.mulf %196, %189 : vector<8x128xf32>
    %198 = arith.addf %188, %197 : vector<8x128xf32>
    %199 = vector.extract_strided_slice %178 {offsets = [2, 0], sizes = [8, 128], strides = [1, 1]} : vector<10x128xf32> to vector<8x128xf32>
    %200 = vector.broadcast %9 : f32 to vector<8x128xf32>
    %201 = arith.mulf %200, %199 : vector<8x128xf32>
    %202 = arith.addf %192, %201 : vector<8x128xf32>
    %203 = vector.broadcast %36 : f32 to vector<8x128xf32>
    %204 = arith.mulf %203, %199 : vector<8x128xf32>
    %205 = arith.addf %195, %204 : vector<8x128xf32>
    %206 = vector.broadcast %63 : f32 to vector<8x128xf32>
    %207 = arith.mulf %206, %199 : vector<8x128xf32>
    %208 = arith.addf %198, %207 : vector<8x128xf32>
    %c0_17 = arith.constant 0 : index
    %c1_18 = arith.constant 1 : index
    %209 = arith.index_cast %102 : i32 to index
    %c0_19 = arith.constant 0 : index
    %210 = vector.load %arg5[%c0_17, %c1_18, %209, %c0_19] : memref<1x3x32x128xf32, #tpu.memory_space<vmem>>, vector<1x1x10x128xf32>
    %211 = vector.shape_cast %210 : vector<1x1x10x128xf32> to vector<10x128xf32>
    %c1_i32_20 = arith.constant 1 : i32
    %212 = tpu.dynamic_rotate %211 by %c1_i32_20 dim 0 : vector<10x128xf32>, i32 -> vector<10x128xf32>
    %213 = vector.shape_cast %95 : vector<10x1xi1> to vector<10x1xi1>
    %214 = vector.broadcast %213 : vector<10x1xi1> to vector<10x128xi1>
    %215 = vector.broadcast %86 : f32 to vector<10x128xf32>
    %216 = arith.select %214, %215, %212 : vector<10x128xi1>, vector<10x128xf32>
    %217 = arith.select %99, %216, %211 : vector<10x128xf32>
    %218 = vector.extract_strided_slice %217 {offsets = [0, 0], sizes = [8, 128], strides = [1, 1]} : vector<10x128xf32> to vector<8x128xf32>
    %219 = vector.broadcast %11 : f32 to vector<8x128xf32>
    %220 = arith.mulf %219, %218 : vector<8x128xf32>
    %221 = arith.addf %202, %220 : vector<8x128xf32>
    %222 = vector.broadcast %38 : f32 to vector<8x128xf32>
    %223 = arith.mulf %222, %218 : vector<8x128xf32>
    %224 = arith.addf %205, %223 : vector<8x128xf32>
    %225 = vector.broadcast %65 : f32 to vector<8x128xf32>
    %226 = arith.mulf %225, %218 : vector<8x128xf32>
    %227 = arith.addf %208, %226 : vector<8x128xf32>
    %228 = vector.extract_strided_slice %217 {offsets = [1, 0], sizes = [8, 128], strides = [1, 1]} : vector<10x128xf32> to vector<8x128xf32>
    %229 = vector.broadcast %14 : f32 to vector<8x128xf32>
    %230 = arith.mulf %229, %228 : vector<8x128xf32>
    %231 = arith.addf %221, %230 : vector<8x128xf32>
    %232 = vector.broadcast %41 : f32 to vector<8x128xf32>
    %233 = arith.mulf %232, %228 : vector<8x128xf32>
    %234 = arith.addf %224, %233 : vector<8x128xf32>
    %235 = vector.broadcast %68 : f32 to vector<8x128xf32>
    %236 = arith.mulf %235, %228 : vector<8x128xf32>
    %237 = arith.addf %227, %236 : vector<8x128xf32>
    %238 = vector.extract_strided_slice %217 {offsets = [2, 0], sizes = [8, 128], strides = [1, 1]} : vector<10x128xf32> to vector<8x128xf32>
    %239 = vector.broadcast %17 : f32 to vector<8x128xf32>
    %240 = arith.mulf %239, %238 : vector<8x128xf32>
    %241 = arith.addf %231, %240 : vector<8x128xf32>
    %242 = vector.broadcast %44 : f32 to vector<8x128xf32>
    %243 = arith.mulf %242, %238 : vector<8x128xf32>
    %244 = arith.addf %234, %243 : vector<8x128xf32>
    %245 = vector.broadcast %71 : f32 to vector<8x128xf32>
    %246 = arith.mulf %245, %238 : vector<8x128xf32>
    %247 = arith.addf %237, %246 : vector<8x128xf32>
    %c1_i32_21 = arith.constant 1 : i32
    %248 = tpu.dynamic_rotate %217 by %c1_i32_21 dim 1 : vector<10x128xf32>, i32 -> vector<10x128xf32>
    %249 = vector.shape_cast %90 : vector<1x128xi1> to vector<1x128xi1>
    %250 = vector.broadcast %249 : vector<1x128xi1> to vector<10x128xi1>
    %251 = vector.broadcast %86 : f32 to vector<10x128xf32>
    %252 = arith.select %250, %251, %248 : vector<10x128xi1>, vector<10x128xf32>
    %253 = vector.extract_strided_slice %252 {offsets = [0, 0], sizes = [8, 128], strides = [1, 1]} : vector<10x128xf32> to vector<8x128xf32>
    %254 = vector.broadcast %10 : f32 to vector<8x128xf32>
    %255 = arith.mulf %254, %253 : vector<8x128xf32>
    %256 = arith.addf %241, %255 : vector<8x128xf32>
    %257 = vector.broadcast %37 : f32 to vector<8x128xf32>
    %258 = arith.mulf %257, %253 : vector<8x128xf32>
    %259 = arith.addf %244, %258 : vector<8x128xf32>
    %260 = vector.broadcast %64 : f32 to vector<8x128xf32>
    %261 = arith.mulf %260, %253 : vector<8x128xf32>
    %262 = arith.addf %247, %261 : vector<8x128xf32>
    %263 = vector.extract_strided_slice %252 {offsets = [1, 0], sizes = [8, 128], strides = [1, 1]} : vector<10x128xf32> to vector<8x128xf32>
    %264 = vector.broadcast %13 : f32 to vector<8x128xf32>
    %265 = arith.mulf %264, %263 : vector<8x128xf32>
    %266 = arith.addf %256, %265 : vector<8x128xf32>
    %267 = vector.broadcast %40 : f32 to vector<8x128xf32>
    %268 = arith.mulf %267, %263 : vector<8x128xf32>
    %269 = arith.addf %259, %268 : vector<8x128xf32>
    %270 = vector.broadcast %67 : f32 to vector<8x128xf32>
    %271 = arith.mulf %270, %263 : vector<8x128xf32>
    %272 = arith.addf %262, %271 : vector<8x128xf32>
    %273 = vector.extract_strided_slice %252 {offsets = [2, 0], sizes = [8, 128], strides = [1, 1]} : vector<10x128xf32> to vector<8x128xf32>
    %274 = vector.broadcast %16 : f32 to vector<8x128xf32>
    %275 = arith.mulf %274, %273 : vector<8x128xf32>
    %276 = arith.addf %266, %275 : vector<8x128xf32>
    %277 = vector.broadcast %43 : f32 to vector<8x128xf32>
    %278 = arith.mulf %277, %273 : vector<8x128xf32>
    %279 = arith.addf %269, %278 : vector<8x128xf32>
    %280 = vector.broadcast %70 : f32 to vector<8x128xf32>
    %281 = arith.mulf %280, %273 : vector<8x128xf32>
    %282 = arith.addf %272, %281 : vector<8x128xf32>
    %c127_i32_22 = arith.constant 127 : i32
    %283 = tpu.dynamic_rotate %217 by %c127_i32_22 dim 1 : vector<10x128xf32>, i32 -> vector<10x128xf32>
    %284 = vector.shape_cast %92 : vector<1x128xi1> to vector<1x128xi1>
    %285 = vector.broadcast %284 : vector<1x128xi1> to vector<10x128xi1>
    %286 = vector.broadcast %86 : f32 to vector<10x128xf32>
    %287 = arith.select %285, %286, %283 : vector<10x128xi1>, vector<10x128xf32>
    %288 = vector.extract_strided_slice %287 {offsets = [0, 0], sizes = [8, 128], strides = [1, 1]} : vector<10x128xf32> to vector<8x128xf32>
    %289 = vector.broadcast %12 : f32 to vector<8x128xf32>
    %290 = arith.mulf %289, %288 : vector<8x128xf32>
    %291 = arith.addf %276, %290 : vector<8x128xf32>
    %292 = vector.broadcast %39 : f32 to vector<8x128xf32>
    %293 = arith.mulf %292, %288 : vector<8x128xf32>
    %294 = arith.addf %279, %293 : vector<8x128xf32>
    %295 = vector.broadcast %66 : f32 to vector<8x128xf32>
    %296 = arith.mulf %295, %288 : vector<8x128xf32>
    %297 = arith.addf %282, %296 : vector<8x128xf32>
    %298 = vector.extract_strided_slice %287 {offsets = [1, 0], sizes = [8, 128], strides = [1, 1]} : vector<10x128xf32> to vector<8x128xf32>
    %299 = vector.broadcast %15 : f32 to vector<8x128xf32>
    %300 = arith.mulf %299, %298 : vector<8x128xf32>
    %301 = arith.addf %291, %300 : vector<8x128xf32>
    %302 = vector.broadcast %42 : f32 to vector<8x128xf32>
    %303 = arith.mulf %302, %298 : vector<8x128xf32>
    %304 = arith.addf %294, %303 : vector<8x128xf32>
    %305 = vector.broadcast %69 : f32 to vector<8x128xf32>
    %306 = arith.mulf %305, %298 : vector<8x128xf32>
    %307 = arith.addf %297, %306 : vector<8x128xf32>
    %308 = vector.extract_strided_slice %287 {offsets = [2, 0], sizes = [8, 128], strides = [1, 1]} : vector<10x128xf32> to vector<8x128xf32>
    %309 = vector.broadcast %18 : f32 to vector<8x128xf32>
    %310 = arith.mulf %309, %308 : vector<8x128xf32>
    %311 = arith.addf %301, %310 : vector<8x128xf32>
    %312 = vector.broadcast %45 : f32 to vector<8x128xf32>
    %313 = arith.mulf %312, %308 : vector<8x128xf32>
    %314 = arith.addf %304, %313 : vector<8x128xf32>
    %315 = vector.broadcast %72 : f32 to vector<8x128xf32>
    %316 = arith.mulf %315, %308 : vector<8x128xf32>
    %317 = arith.addf %307, %316 : vector<8x128xf32>
    %c0_23 = arith.constant 0 : index
    %c2_24 = arith.constant 2 : index
    %318 = arith.index_cast %102 : i32 to index
    %c0_25 = arith.constant 0 : index
    %319 = vector.load %arg5[%c0_23, %c2_24, %318, %c0_25] : memref<1x3x32x128xf32, #tpu.memory_space<vmem>>, vector<1x1x10x128xf32>
    %320 = vector.shape_cast %319 : vector<1x1x10x128xf32> to vector<10x128xf32>
    %c1_i32_26 = arith.constant 1 : i32
    %321 = tpu.dynamic_rotate %320 by %c1_i32_26 dim 0 : vector<10x128xf32>, i32 -> vector<10x128xf32>
    %322 = vector.shape_cast %95 : vector<10x1xi1> to vector<10x1xi1>
    %323 = vector.broadcast %322 : vector<10x1xi1> to vector<10x128xi1>
    %324 = vector.broadcast %87 : f32 to vector<10x128xf32>
    %325 = arith.select %323, %324, %321 : vector<10x128xi1>, vector<10x128xf32>
    %326 = arith.select %99, %325, %320 : vector<10x128xf32>
    %327 = vector.extract_strided_slice %326 {offsets = [0, 0], sizes = [8, 128], strides = [1, 1]} : vector<10x128xf32> to vector<8x128xf32>
    %328 = vector.broadcast %20 : f32 to vector<8x128xf32>
    %329 = arith.mulf %328, %327 : vector<8x128xf32>
    %330 = arith.addf %311, %329 : vector<8x128xf32>
    %331 = vector.broadcast %47 : f32 to vector<8x128xf32>
    %332 = arith.mulf %331, %327 : vector<8x128xf32>
    %333 = arith.addf %314, %332 : vector<8x128xf32>
    %334 = vector.broadcast %74 : f32 to vector<8x128xf32>
    %335 = arith.mulf %334, %327 : vector<8x128xf32>
    %336 = arith.addf %317, %335 : vector<8x128xf32>
    %337 = vector.extract_strided_slice %326 {offsets = [1, 0], sizes = [8, 128], strides = [1, 1]} : vector<10x128xf32> to vector<8x128xf32>
    %338 = vector.broadcast %23 : f32 to vector<8x128xf32>
    %339 = arith.mulf %338, %337 : vector<8x128xf32>
    %340 = arith.addf %330, %339 : vector<8x128xf32>
    %341 = vector.broadcast %50 : f32 to vector<8x128xf32>
    %342 = arith.mulf %341, %337 : vector<8x128xf32>
    %343 = arith.addf %333, %342 : vector<8x128xf32>
    %344 = vector.broadcast %77 : f32 to vector<8x128xf32>
    %345 = arith.mulf %344, %337 : vector<8x128xf32>
    %346 = arith.addf %336, %345 : vector<8x128xf32>
    %347 = vector.extract_strided_slice %326 {offsets = [2, 0], sizes = [8, 128], strides = [1, 1]} : vector<10x128xf32> to vector<8x128xf32>
    %348 = vector.broadcast %26 : f32 to vector<8x128xf32>
    %349 = arith.mulf %348, %347 : vector<8x128xf32>
    %350 = arith.addf %340, %349 : vector<8x128xf32>
    %351 = vector.broadcast %53 : f32 to vector<8x128xf32>
    %352 = arith.mulf %351, %347 : vector<8x128xf32>
    %353 = arith.addf %343, %352 : vector<8x128xf32>
    %354 = vector.broadcast %80 : f32 to vector<8x128xf32>
    %355 = arith.mulf %354, %347 : vector<8x128xf32>
    %356 = arith.addf %346, %355 : vector<8x128xf32>
    %c1_i32_27 = arith.constant 1 : i32
    %357 = tpu.dynamic_rotate %326 by %c1_i32_27 dim 1 : vector<10x128xf32>, i32 -> vector<10x128xf32>
    %358 = vector.shape_cast %90 : vector<1x128xi1> to vector<1x128xi1>
    %359 = vector.broadcast %358 : vector<1x128xi1> to vector<10x128xi1>
    %360 = vector.broadcast %87 : f32 to vector<10x128xf32>
    %361 = arith.select %359, %360, %357 : vector<10x128xi1>, vector<10x128xf32>
    %362 = vector.extract_strided_slice %361 {offsets = [0, 0], sizes = [8, 128], strides = [1, 1]} : vector<10x128xf32> to vector<8x128xf32>
    %363 = vector.broadcast %19 : f32 to vector<8x128xf32>
    %364 = arith.mulf %363, %362 : vector<8x128xf32>
    %365 = arith.addf %350, %364 : vector<8x128xf32>
    %366 = vector.broadcast %46 : f32 to vector<8x128xf32>
    %367 = arith.mulf %366, %362 : vector<8x128xf32>
    %368 = arith.addf %353, %367 : vector<8x128xf32>
    %369 = vector.broadcast %73 : f32 to vector<8x128xf32>
    %370 = arith.mulf %369, %362 : vector<8x128xf32>
    %371 = arith.addf %356, %370 : vector<8x128xf32>
    %372 = vector.extract_strided_slice %361 {offsets = [1, 0], sizes = [8, 128], strides = [1, 1]} : vector<10x128xf32> to vector<8x128xf32>
    %373 = vector.broadcast %22 : f32 to vector<8x128xf32>
    %374 = arith.mulf %373, %372 : vector<8x128xf32>
    %375 = arith.addf %365, %374 : vector<8x128xf32>
    %376 = vector.broadcast %49 : f32 to vector<8x128xf32>
    %377 = arith.mulf %376, %372 : vector<8x128xf32>
    %378 = arith.addf %368, %377 : vector<8x128xf32>
    %379 = vector.broadcast %76 : f32 to vector<8x128xf32>
    %380 = arith.mulf %379, %372 : vector<8x128xf32>
    %381 = arith.addf %371, %380 : vector<8x128xf32>
    %382 = vector.extract_strided_slice %361 {offsets = [2, 0], sizes = [8, 128], strides = [1, 1]} : vector<10x128xf32> to vector<8x128xf32>
    %383 = vector.broadcast %25 : f32 to vector<8x128xf32>
    %384 = arith.mulf %383, %382 : vector<8x128xf32>
    %385 = arith.addf %375, %384 : vector<8x128xf32>
    %386 = vector.broadcast %52 : f32 to vector<8x128xf32>
    %387 = arith.mulf %386, %382 : vector<8x128xf32>
    %388 = arith.addf %378, %387 : vector<8x128xf32>
    %389 = vector.broadcast %79 : f32 to vector<8x128xf32>
    %390 = arith.mulf %389, %382 : vector<8x128xf32>
    %391 = arith.addf %381, %390 : vector<8x128xf32>
    %c127_i32_28 = arith.constant 127 : i32
    %392 = tpu.dynamic_rotate %326 by %c127_i32_28 dim 1 : vector<10x128xf32>, i32 -> vector<10x128xf32>
    %393 = vector.shape_cast %92 : vector<1x128xi1> to vector<1x128xi1>
    %394 = vector.broadcast %393 : vector<1x128xi1> to vector<10x128xi1>
    %395 = vector.broadcast %87 : f32 to vector<10x128xf32>
    %396 = arith.select %394, %395, %392 : vector<10x128xi1>, vector<10x128xf32>
    %397 = vector.extract_strided_slice %396 {offsets = [0, 0], sizes = [8, 128], strides = [1, 1]} : vector<10x128xf32> to vector<8x128xf32>
    %398 = vector.broadcast %21 : f32 to vector<8x128xf32>
    %399 = arith.mulf %398, %397 : vector<8x128xf32>
    %400 = arith.addf %385, %399 : vector<8x128xf32>
    %401 = vector.broadcast %48 : f32 to vector<8x128xf32>
    %402 = arith.mulf %401, %397 : vector<8x128xf32>
    %403 = arith.addf %388, %402 : vector<8x128xf32>
    %404 = vector.broadcast %75 : f32 to vector<8x128xf32>
    %405 = arith.mulf %404, %397 : vector<8x128xf32>
    %406 = arith.addf %391, %405 : vector<8x128xf32>
    %407 = vector.extract_strided_slice %396 {offsets = [1, 0], sizes = [8, 128], strides = [1, 1]} : vector<10x128xf32> to vector<8x128xf32>
    %408 = vector.broadcast %24 : f32 to vector<8x128xf32>
    %409 = arith.mulf %408, %407 : vector<8x128xf32>
    %410 = arith.addf %400, %409 : vector<8x128xf32>
    %411 = vector.broadcast %51 : f32 to vector<8x128xf32>
    %412 = arith.mulf %411, %407 : vector<8x128xf32>
    %413 = arith.addf %403, %412 : vector<8x128xf32>
    %414 = vector.broadcast %78 : f32 to vector<8x128xf32>
    %415 = arith.mulf %414, %407 : vector<8x128xf32>
    %416 = arith.addf %406, %415 : vector<8x128xf32>
    %417 = vector.extract_strided_slice %396 {offsets = [2, 0], sizes = [8, 128], strides = [1, 1]} : vector<10x128xf32> to vector<8x128xf32>
    %418 = vector.broadcast %27 : f32 to vector<8x128xf32>
    %419 = arith.mulf %418, %417 : vector<8x128xf32>
    %420 = arith.addf %410, %419 : vector<8x128xf32>
    %421 = vector.broadcast %54 : f32 to vector<8x128xf32>
    %422 = arith.mulf %421, %417 : vector<8x128xf32>
    %423 = arith.addf %413, %422 : vector<8x128xf32>
    %424 = vector.broadcast %81 : f32 to vector<8x128xf32>
    %425 = arith.mulf %424, %417 : vector<8x128xf32>
    %426 = arith.addf %416, %425 : vector<8x128xf32>
    %427 = vector.broadcast %82 : f32 to vector<8x128xf32>
    %428 = arith.addf %420, %427 : vector<8x128xf32>
    %cst = arith.constant 0.000000e+00 : f32
    %429 = vector.broadcast %cst : f32 to vector<8x128xf32>
    %430 = arith.maximumf %428, %429 : vector<8x128xf32>
    %c0_29 = arith.constant 0 : index
    %c0_30 = arith.constant 0 : index
    %c0_31 = arith.constant 0 : index
    %c0_32 = arith.constant 0 : index
    %431 = vector.load %arg6[%c0_29, %c0_30, %c0_31, %c0_32] : memref<1x3x16x128xf32, #tpu.memory_space<vmem>>, vector<1x1x8x128xf32>
    %432 = vector.shape_cast %431 : vector<1x1x8x128xf32> to vector<8x128xf32>
    %433 = vector.shape_cast %430 : vector<8x128xf32> to vector<1x1x8x128xf32>
    tpu.vector_store %arg6[%c0_29, %c0_30, %c0_31, %c0_32], %433 {strides = array<i32>} : memref<1x3x16x128xf32, #tpu.memory_space<vmem>>, vector<1x1x8x128xf32>,
    %434 = vector.broadcast %83 : f32 to vector<8x128xf32>
    %435 = arith.addf %423, %434 : vector<8x128xf32>
    %cst_33 = arith.constant 0.000000e+00 : f32
    %436 = vector.broadcast %cst_33 : f32 to vector<8x128xf32>
    %437 = arith.maximumf %435, %436 : vector<8x128xf32>
    %c0_34 = arith.constant 0 : index
    %c1_35 = arith.constant 1 : index
    %c0_36 = arith.constant 0 : index
    %c0_37 = arith.constant 0 : index
    %438 = vector.load %arg6[%c0_34, %c1_35, %c0_36, %c0_37] : memref<1x3x16x128xf32, #tpu.memory_space<vmem>>, vector<1x1x8x128xf32>
    %439 = vector.shape_cast %438 : vector<1x1x8x128xf32> to vector<8x128xf32>
    %440 = vector.shape_cast %437 : vector<8x128xf32> to vector<1x1x8x128xf32>
    tpu.vector_store %arg6[%c0_34, %c1_35, %c0_36, %c0_37], %440 {strides = array<i32>} : memref<1x3x16x128xf32, #tpu.memory_space<vmem>>, vector<1x1x8x128xf32>,
    %441 = vector.broadcast %84 : f32 to vector<8x128xf32>
    %442 = arith.addf %426, %441 : vector<8x128xf32>
    %cst_38 = arith.constant 0.000000e+00 : f32
    %443 = vector.broadcast %cst_38 : f32 to vector<8x128xf32>
    %444 = arith.maximumf %442, %443 : vector<8x128xf32>
    %c0_39 = arith.constant 0 : index
    %c2_40 = arith.constant 2 : index
    %c0_41 = arith.constant 0 : index
    %c0_42 = arith.constant 0 : index
    %445 = vector.load %arg6[%c0_39, %c2_40, %c0_41, %c0_42] : memref<1x3x16x128xf32, #tpu.memory_space<vmem>>, vector<1x1x8x128xf32>
    %446 = vector.shape_cast %445 : vector<1x1x8x128xf32> to vector<8x128xf32>
    %447 = vector.shape_cast %444 : vector<8x128xf32> to vector<1x1x8x128xf32>
    tpu.vector_store %arg6[%c0_39, %c2_40, %c0_41, %c0_42], %447 {strides = array<i32>} : memref<1x3x16x128xf32, #tpu.memory_space<vmem>>, vector<1x1x8x128xf32>,
    %c8_i32 = arith.constant 8 : i32
    %448 = arith.addi %0, %c8_i32 : i32
    %c8_i32_43 = arith.constant 8 : i32
    %449 = arith.addi %448, %c8_i32_43 : i32
    %c32_i32 = arith.constant 32 : i32
    %450 = arith.cmpi eq, %449, %c32_i32 : i32
    %c1_i32_44 = arith.constant 1 : i32
    %451 = arith.subi %448, %c1_i32_44 : i32
    %c1_i32_45 = arith.constant 1 : i32
    %c0_i32_46 = arith.constant 0 : i32
    %452 = arith.select %450, %c1_i32_45, %c0_i32_46 : i32
    %453 = arith.subi %451, %452 : i32
    %c0_47 = arith.constant 0 : index
    %c0_48 = arith.constant 0 : index
    %454 = arith.index_cast %453 : i32 to index
    %c0_49 = arith.constant 0 : index
    %455 = vector.load %arg5[%c0_47, %c0_48, %454, %c0_49] : memref<1x3x32x128xf32, #tpu.memory_space<vmem>>, vector<1x1x10x128xf32>
    %456 = vector.shape_cast %455 : vector<1x1x10x128xf32> to vector<10x128xf32>
    %c9_i32_50 = arith.constant 9 : i32
    %457 = tpu.dynamic_rotate %456 by %c9_i32_50 dim 0 : vector<10x128xf32>, i32 -> vector<10x128xf32>
    %458 = vector.shape_cast %97 : vector<10x1xi1> to vector<10x1xi1>
    %459 = vector.broadcast %458 : vector<10x1xi1> to vector<10x128xi1>
    %460 = vector.broadcast %85 : f32 to vector<10x128xf32>
    %461 = arith.select %459, %460, %457 : vector<10x128xi1>, vector<10x128xf32>
    %462 = arith.select %450, %461, %456 : vector<10x128xf32>
    %463 = vector.extract_strided_slice %462 {offsets = [0, 0], sizes = [8, 128], strides = [1, 1]} : vector<10x128xf32> to vector<8x128xf32>
    %464 = vector.broadcast %2 : f32 to vector<8x128xf32>
    %465 = arith.mulf %464, %463 : vector<8x128xf32>
    %466 = vector.broadcast %29 : f32 to vector<8x128xf32>
    %467 = arith.mulf %466, %463 : vector<8x128xf32>
    %468 = vector.broadcast %56 : f32 to vector<8x128xf32>
    %469 = arith.mulf %468, %463 : vector<8x128xf32>
    %470 = vector.extract_strided_slice %462 {offsets = [1, 0], sizes = [8, 128], strides = [1, 1]} : vector<10x128xf32> to vector<8x128xf32>
    %471 = vector.broadcast %5 : f32 to vector<8x128xf32>
    %472 = arith.mulf %471, %470 : vector<8x128xf32>
    %473 = arith.addf %465, %472 : vector<8x128xf32>
    %474 = vector.broadcast %32 : f32 to vector<8x128xf32>
    %475 = arith.mulf %474, %470 : vector<8x128xf32>
    %476 = arith.addf %467, %475 : vector<8x128xf32>
    %477 = vector.broadcast %59 : f32 to vector<8x128xf32>
    %478 = arith.mulf %477, %470 : vector<8x128xf32>
    %479 = arith.addf %469, %478 : vector<8x128xf32>
    %480 = vector.extract_strided_slice %462 {offsets = [2, 0], sizes = [8, 128], strides = [1, 1]} : vector<10x128xf32> to vector<8x128xf32>
    %481 = vector.broadcast %8 : f32 to vector<8x128xf32>
    %482 = arith.mulf %481, %480 : vector<8x128xf32>
    %483 = arith.addf %473, %482 : vector<8x128xf32>
    %484 = vector.broadcast %35 : f32 to vector<8x128xf32>
    %485 = arith.mulf %484, %480 : vector<8x128xf32>
    %486 = arith.addf %476, %485 : vector<8x128xf32>
    %487 = vector.broadcast %62 : f32 to vector<8x128xf32>
    %488 = arith.mulf %487, %480 : vector<8x128xf32>
    %489 = arith.addf %479, %488 : vector<8x128xf32>
    %c1_i32_51 = arith.constant 1 : i32
    %490 = tpu.dynamic_rotate %462 by %c1_i32_51 dim 1 : vector<10x128xf32>, i32 -> vector<10x128xf32>
    %491 = vector.shape_cast %90 : vector<1x128xi1> to vector<1x128xi1>
    %492 = vector.broadcast %491 : vector<1x128xi1> to vector<10x128xi1>
    %493 = vector.broadcast %85 : f32 to vector<10x128xf32>
    %494 = arith.select %492, %493, %490 : vector<10x128xi1>, vector<10x128xf32>
    %495 = vector.extract_strided_slice %494 {offsets = [0, 0], sizes = [8, 128], strides = [1, 1]} : vector<10x128xf32> to vector<8x128xf32>
    %496 = vector.broadcast %1 : f32 to vector<8x128xf32>
    %497 = arith.mulf %496, %495 : vector<8x128xf32>
    %498 = arith.addf %483, %497 : vector<8x128xf32>
    %499 = vector.broadcast %28 : f32 to vector<8x128xf32>
    %500 = arith.mulf %499, %495 : vector<8x128xf32>
    %501 = arith.addf %486, %500 : vector<8x128xf32>
    %502 = vector.broadcast %55 : f32 to vector<8x128xf32>
    %503 = arith.mulf %502, %495 : vector<8x128xf32>
    %504 = arith.addf %489, %503 : vector<8x128xf32>
    %505 = vector.extract_strided_slice %494 {offsets = [1, 0], sizes = [8, 128], strides = [1, 1]} : vector<10x128xf32> to vector<8x128xf32>
    %506 = vector.broadcast %4 : f32 to vector<8x128xf32>
    %507 = arith.mulf %506, %505 : vector<8x128xf32>
    %508 = arith.addf %498, %507 : vector<8x128xf32>
    %509 = vector.broadcast %31 : f32 to vector<8x128xf32>
    %510 = arith.mulf %509, %505 : vector<8x128xf32>
    %511 = arith.addf %501, %510 : vector<8x128xf32>
    %512 = vector.broadcast %58 : f32 to vector<8x128xf32>
    %513 = arith.mulf %512, %505 : vector<8x128xf32>
    %514 = arith.addf %504, %513 : vector<8x128xf32>
    %515 = vector.extract_strided_slice %494 {offsets = [2, 0], sizes = [8, 128], strides = [1, 1]} : vector<10x128xf32> to vector<8x128xf32>
    %516 = vector.broadcast %7 : f32 to vector<8x128xf32>
    %517 = arith.mulf %516, %515 : vector<8x128xf32>
    %518 = arith.addf %508, %517 : vector<8x128xf32>
    %519 = vector.broadcast %34 : f32 to vector<8x128xf32>
    %520 = arith.mulf %519, %515 : vector<8x128xf32>
    %521 = arith.addf %511, %520 : vector<8x128xf32>
    %522 = vector.broadcast %61 : f32 to vector<8x128xf32>
    %523 = arith.mulf %522, %515 : vector<8x128xf32>
    %524 = arith.addf %514, %523 : vector<8x128xf32>
    %c127_i32_52 = arith.constant 127 : i32
    %525 = tpu.dynamic_rotate %462 by %c127_i32_52 dim 1 : vector<10x128xf32>, i32 -> vector<10x128xf32>
    %526 = vector.shape_cast %92 : vector<1x128xi1> to vector<1x128xi1>
    %527 = vector.broadcast %526 : vector<1x128xi1> to vector<10x128xi1>
    %528 = vector.broadcast %85 : f32 to vector<10x128xf32>
    %529 = arith.select %527, %528, %525 : vector<10x128xi1>, vector<10x128xf32>
    %530 = vector.extract_strided_slice %529 {offsets = [0, 0], sizes = [8, 128], strides = [1, 1]} : vector<10x128xf32> to vector<8x128xf32>
    %531 = vector.broadcast %3 : f32 to vector<8x128xf32>
    %532 = arith.mulf %531, %530 : vector<8x128xf32>
    %533 = arith.addf %518, %532 : vector<8x128xf32>
    %534 = vector.broadcast %30 : f32 to vector<8x128xf32>
    %535 = arith.mulf %534, %530 : vector<8x128xf32>
    %536 = arith.addf %521, %535 : vector<8x128xf32>
    %537 = vector.broadcast %57 : f32 to vector<8x128xf32>
    %538 = arith.mulf %537, %530 : vector<8x128xf32>
    %539 = arith.addf %524, %538 : vector<8x128xf32>
    %540 = vector.extract_strided_slice %529 {offsets = [1, 0], sizes = [8, 128], strides = [1, 1]} : vector<10x128xf32> to vector<8x128xf32>
    %541 = vector.broadcast %6 : f32 to vector<8x128xf32>
    %542 = arith.mulf %541, %540 : vector<8x128xf32>
    %543 = arith.addf %533, %542 : vector<8x128xf32>
    %544 = vector.broadcast %33 : f32 to vector<8x128xf32>
    %545 = arith.mulf %544, %540 : vector<8x128xf32>
    %546 = arith.addf %536, %545 : vector<8x128xf32>
    %547 = vector.broadcast %60 : f32 to vector<8x128xf32>
    %548 = arith.mulf %547, %540 : vector<8x128xf32>
    %549 = arith.addf %539, %548 : vector<8x128xf32>
    %550 = vector.extract_strided_slice %529 {offsets = [2, 0], sizes = [8, 128], strides = [1, 1]} : vector<10x128xf32> to vector<8x128xf32>
    %551 = vector.broadcast %9 : f32 to vector<8x128xf32>
    %552 = arith.mulf %551, %550 : vector<8x128xf32>
    %553 = arith.addf %543, %552 : vector<8x128xf32>
    %554 = vector.broadcast %36 : f32 to vector<8x128xf32>
    %555 = arith.mulf %554, %550 : vector<8x128xf32>
    %556 = arith.addf %546, %555 : vector<8x128xf32>
    %557 = vector.broadcast %63 : f32 to vector<8x128xf32>
    %558 = arith.mulf %557, %550 : vector<8x128xf32>
    %559 = arith.addf %549, %558 : vector<8x128xf32>
    %c0_53 = arith.constant 0 : index
    %c1_54 = arith.constant 1 : index
    %560 = arith.index_cast %453 : i32 to index
    %c0_55 = arith.constant 0 : index
    %561 = vector.load %arg5[%c0_53, %c1_54, %560, %c0_55] : memref<1x3x32x128xf32, #tpu.memory_space<vmem>>, vector<1x1x10x128xf32>
    %562 = vector.shape_cast %561 : vector<1x1x10x128xf32> to vector<10x128xf32>
    %c9_i32_56 = arith.constant 9 : i32
    %563 = tpu.dynamic_rotate %562 by %c9_i32_56 dim 0 : vector<10x128xf32>, i32 -> vector<10x128xf32>
    %564 = vector.shape_cast %97 : vector<10x1xi1> to vector<10x1xi1>
    %565 = vector.broadcast %564 : vector<10x1xi1> to vector<10x128xi1>
    %566 = vector.broadcast %86 : f32 to vector<10x128xf32>
    %567 = arith.select %565, %566, %563 : vector<10x128xi1>, vector<10x128xf32>
    %568 = arith.select %450, %567, %562 : vector<10x128xf32>
    %569 = vector.extract_strided_slice %568 {offsets = [0, 0], sizes = [8, 128], strides = [1, 1]} : vector<10x128xf32> to vector<8x128xf32>
    %570 = vector.broadcast %11 : f32 to vector<8x128xf32>
    %571 = arith.mulf %570, %569 : vector<8x128xf32>
    %572 = arith.addf %553, %571 : vector<8x128xf32>
    %573 = vector.broadcast %38 : f32 to vector<8x128xf32>
    %574 = arith.mulf %573, %569 : vector<8x128xf32>
    %575 = arith.addf %556, %574 : vector<8x128xf32>
    %576 = vector.broadcast %65 : f32 to vector<8x128xf32>
    %577 = arith.mulf %576, %569 : vector<8x128xf32>
    %578 = arith.addf %559, %577 : vector<8x128xf32>
    %579 = vector.extract_strided_slice %568 {offsets = [1, 0], sizes = [8, 128], strides = [1, 1]} : vector<10x128xf32> to vector<8x128xf32>
    %580 = vector.broadcast %14 : f32 to vector<8x128xf32>
    %581 = arith.mulf %580, %579 : vector<8x128xf32>
    %582 = arith.addf %572, %581 : vector<8x128xf32>
    %583 = vector.broadcast %41 : f32 to vector<8x128xf32>
    %584 = arith.mulf %583, %579 : vector<8x128xf32>
    %585 = arith.addf %575, %584 : vector<8x128xf32>
    %586 = vector.broadcast %68 : f32 to vector<8x128xf32>
    %587 = arith.mulf %586, %579 : vector<8x128xf32>
    %588 = arith.addf %578, %587 : vector<8x128xf32>
    %589 = vector.extract_strided_slice %568 {offsets = [2, 0], sizes = [8, 128], strides = [1, 1]} : vector<10x128xf32> to vector<8x128xf32>
    %590 = vector.broadcast %17 : f32 to vector<8x128xf32>
    %591 = arith.mulf %590, %589 : vector<8x128xf32>
    %592 = arith.addf %582, %591 : vector<8x128xf32>
    %593 = vector.broadcast %44 : f32 to vector<8x128xf32>
    %594 = arith.mulf %593, %589 : vector<8x128xf32>
    %595 = arith.addf %585, %594 : vector<8x128xf32>
    %596 = vector.broadcast %71 : f32 to vector<8x128xf32>
    %597 = arith.mulf %596, %589 : vector<8x128xf32>
    %598 = arith.addf %588, %597 : vector<8x128xf32>
    %c1_i32_57 = arith.constant 1 : i32
    %599 = tpu.dynamic_rotate %568 by %c1_i32_57 dim 1 : vector<10x128xf32>, i32 -> vector<10x128xf32>
    %600 = vector.shape_cast %90 : vector<1x128xi1> to vector<1x128xi1>
    %601 = vector.broadcast %600 : vector<1x128xi1> to vector<10x128xi1>
    %602 = vector.broadcast %86 : f32 to vector<10x128xf32>
    %603 = arith.select %601, %602, %599 : vector<10x128xi1>, vector<10x128xf32>
    %604 = vector.extract_strided_slice %603 {offsets = [0, 0], sizes = [8, 128], strides = [1, 1]} : vector<10x128xf32> to vector<8x128xf32>
    %605 = vector.broadcast %10 : f32 to vector<8x128xf32>
    %606 = arith.mulf %605, %604 : vector<8x128xf32>
    %607 = arith.addf %592, %606 : vector<8x128xf32>
    %608 = vector.broadcast %37 : f32 to vector<8x128xf32>
    %609 = arith.mulf %608, %604 : vector<8x128xf32>
    %610 = arith.addf %595, %609 : vector<8x128xf32>
    %611 = vector.broadcast %64 : f32 to vector<8x128xf32>
    %612 = arith.mulf %611, %604 : vector<8x128xf32>
    %613 = arith.addf %598, %612 : vector<8x128xf32>
    %614 = vector.extract_strided_slice %603 {offsets = [1, 0], sizes = [8, 128], strides = [1, 1]} : vector<10x128xf32> to vector<8x128xf32>
    %615 = vector.broadcast %13 : f32 to vector<8x128xf32>
    %616 = arith.mulf %615, %614 : vector<8x128xf32>
    %617 = arith.addf %607, %616 : vector<8x128xf32>
    %618 = vector.broadcast %40 : f32 to vector<8x128xf32>
    %619 = arith.mulf %618, %614 : vector<8x128xf32>
    %620 = arith.addf %610, %619 : vector<8x128xf32>
    %621 = vector.broadcast %67 : f32 to vector<8x128xf32>
    %622 = arith.mulf %621, %614 : vector<8x128xf32>
    %623 = arith.addf %613, %622 : vector<8x128xf32>
    %624 = vector.extract_strided_slice %603 {offsets = [2, 0], sizes = [8, 128], strides = [1, 1]} : vector<10x128xf32> to vector<8x128xf32>
    %625 = vector.broadcast %16 : f32 to vector<8x128xf32>
    %626 = arith.mulf %625, %624 : vector<8x128xf32>
    %627 = arith.addf %617, %626 : vector<8x128xf32>
    %628 = vector.broadcast %43 : f32 to vector<8x128xf32>
    %629 = arith.mulf %628, %624 : vector<8x128xf32>
    %630 = arith.addf %620, %629 : vector<8x128xf32>
    %631 = vector.broadcast %70 : f32 to vector<8x128xf32>
    %632 = arith.mulf %631, %624 : vector<8x128xf32>
    %633 = arith.addf %623, %632 : vector<8x128xf32>
    %c127_i32_58 = arith.constant 127 : i32
    %634 = tpu.dynamic_rotate %568 by %c127_i32_58 dim 1 : vector<10x128xf32>, i32 -> vector<10x128xf32>
    %635 = vector.shape_cast %92 : vector<1x128xi1> to vector<1x128xi1>
    %636 = vector.broadcast %635 : vector<1x128xi1> to vector<10x128xi1>
    %637 = vector.broadcast %86 : f32 to vector<10x128xf32>
    %638 = arith.select %636, %637, %634 : vector<10x128xi1>, vector<10x128xf32>
    %639 = vector.extract_strided_slice %638 {offsets = [0, 0], sizes = [8, 128], strides = [1, 1]} : vector<10x128xf32> to vector<8x128xf32>
    %640 = vector.broadcast %12 : f32 to vector<8x128xf32>
    %641 = arith.mulf %640, %639 : vector<8x128xf32>
    %642 = arith.addf %627, %641 : vector<8x128xf32>
    %643 = vector.broadcast %39 : f32 to vector<8x128xf32>
    %644 = arith.mulf %643, %639 : vector<8x128xf32>
    %645 = arith.addf %630, %644 : vector<8x128xf32>
    %646 = vector.broadcast %66 : f32 to vector<8x128xf32>
    %647 = arith.mulf %646, %639 : vector<8x128xf32>
    %648 = arith.addf %633, %647 : vector<8x128xf32>
    %649 = vector.extract_strided_slice %638 {offsets = [1, 0], sizes = [8, 128], strides = [1, 1]} : vector<10x128xf32> to vector<8x128xf32>
    %650 = vector.broadcast %15 : f32 to vector<8x128xf32>
    %651 = arith.mulf %650, %649 : vector<8x128xf32>
    %652 = arith.addf %642, %651 : vector<8x128xf32>
    %653 = vector.broadcast %42 : f32 to vector<8x128xf32>
    %654 = arith.mulf %653, %649 : vector<8x128xf32>
    %655 = arith.addf %645, %654 : vector<8x128xf32>
    %656 = vector.broadcast %69 : f32 to vector<8x128xf32>
    %657 = arith.mulf %656, %649 : vector<8x128xf32>
    %658 = arith.addf %648, %657 : vector<8x128xf32>
    %659 = vector.extract_strided_slice %638 {offsets = [2, 0], sizes = [8, 128], strides = [1, 1]} : vector<10x128xf32> to vector<8x128xf32>
    %660 = vector.broadcast %18 : f32 to vector<8x128xf32>
    %661 = arith.mulf %660, %659 : vector<8x128xf32>
    %662 = arith.addf %652, %661 : vector<8x128xf32>
    %663 = vector.broadcast %45 : f32 to vector<8x128xf32>
    %664 = arith.mulf %663, %659 : vector<8x128xf32>
    %665 = arith.addf %655, %664 : vector<8x128xf32>
    %666 = vector.broadcast %72 : f32 to vector<8x128xf32>
    %667 = arith.mulf %666, %659 : vector<8x128xf32>
    %668 = arith.addf %658, %667 : vector<8x128xf32>
    %c0_59 = arith.constant 0 : index
    %c2_60 = arith.constant 2 : index
    %669 = arith.index_cast %453 : i32 to index
    %c0_61 = arith.constant 0 : index
    %670 = vector.load %arg5[%c0_59, %c2_60, %669, %c0_61] : memref<1x3x32x128xf32, #tpu.memory_space<vmem>>, vector<1x1x10x128xf32>
    %671 = vector.shape_cast %670 : vector<1x1x10x128xf32> to vector<10x128xf32>
    %c9_i32_62 = arith.constant 9 : i32
    %672 = tpu.dynamic_rotate %671 by %c9_i32_62 dim 0 : vector<10x128xf32>, i32 -> vector<10x128xf32>
    %673 = vector.shape_cast %97 : vector<10x1xi1> to vector<10x1xi1>
    %674 = vector.broadcast %673 : vector<10x1xi1> to vector<10x128xi1>
    %675 = vector.broadcast %87 : f32 to vector<10x128xf32>
    %676 = arith.select %674, %675, %672 : vector<10x128xi1>, vector<10x128xf32>
    %677 = arith.select %450, %676, %671 : vector<10x128xf32>
    %678 = vector.extract_strided_slice %677 {offsets = [0, 0], sizes = [8, 128], strides = [1, 1]} : vector<10x128xf32> to vector<8x128xf32>
    %679 = vector.broadcast %20 : f32 to vector<8x128xf32>
    %680 = arith.mulf %679, %678 : vector<8x128xf32>
    %681 = arith.addf %662, %680 : vector<8x128xf32>
    %682 = vector.broadcast %47 : f32 to vector<8x128xf32>
    %683 = arith.mulf %682, %678 : vector<8x128xf32>
    %684 = arith.addf %665, %683 : vector<8x128xf32>
    %685 = vector.broadcast %74 : f32 to vector<8x128xf32>
    %686 = arith.mulf %685, %678 : vector<8x128xf32>
    %687 = arith.addf %668, %686 : vector<8x128xf32>
    %688 = vector.extract_strided_slice %677 {offsets = [1, 0], sizes = [8, 128], strides = [1, 1]} : vector<10x128xf32> to vector<8x128xf32>
    %689 = vector.broadcast %23 : f32 to vector<8x128xf32>
    %690 = arith.mulf %689, %688 : vector<8x128xf32>
    %691 = arith.addf %681, %690 : vector<8x128xf32>
    %692 = vector.broadcast %50 : f32 to vector<8x128xf32>
    %693 = arith.mulf %692, %688 : vector<8x128xf32>
    %694 = arith.addf %684, %693 : vector<8x128xf32>
    %695 = vector.broadcast %77 : f32 to vector<8x128xf32>
    %696 = arith.mulf %695, %688 : vector<8x128xf32>
    %697 = arith.addf %687, %696 : vector<8x128xf32>
    %698 = vector.extract_strided_slice %677 {offsets = [2, 0], sizes = [8, 128], strides = [1, 1]} : vector<10x128xf32> to vector<8x128xf32>
    %699 = vector.broadcast %26 : f32 to vector<8x128xf32>
    %700 = arith.mulf %699, %698 : vector<8x128xf32>
    %701 = arith.addf %691, %700 : vector<8x128xf32>
    %702 = vector.broadcast %53 : f32 to vector<8x128xf32>
    %703 = arith.mulf %702, %698 : vector<8x128xf32>
    %704 = arith.addf %694, %703 : vector<8x128xf32>
    %705 = vector.broadcast %80 : f32 to vector<8x128xf32>
    %706 = arith.mulf %705, %698 : vector<8x128xf32>
    %707 = arith.addf %697, %706 : vector<8x128xf32>
    %c1_i32_63 = arith.constant 1 : i32
    %708 = tpu.dynamic_rotate %677 by %c1_i32_63 dim 1 : vector<10x128xf32>, i32 -> vector<10x128xf32>
    %709 = vector.shape_cast %90 : vector<1x128xi1> to vector<1x128xi1>
    %710 = vector.broadcast %709 : vector<1x128xi1> to vector<10x128xi1>
    %711 = vector.broadcast %87 : f32 to vector<10x128xf32>
    %712 = arith.select %710, %711, %708 : vector<10x128xi1>, vector<10x128xf32>
    %713 = vector.extract_strided_slice %712 {offsets = [0, 0], sizes = [8, 128], strides = [1, 1]} : vector<10x128xf32> to vector<8x128xf32>
    %714 = vector.broadcast %19 : f32 to vector<8x128xf32>
    %715 = arith.mulf %714, %713 : vector<8x128xf32>
    %716 = arith.addf %701, %715 : vector<8x128xf32>
    %717 = vector.broadcast %46 : f32 to vector<8x128xf32>
    %718 = arith.mulf %717, %713 : vector<8x128xf32>
    %719 = arith.addf %704, %718 : vector<8x128xf32>
    %720 = vector.broadcast %73 : f32 to vector<8x128xf32>
    %721 = arith.mulf %720, %713 : vector<8x128xf32>
    %722 = arith.addf %707, %721 : vector<8x128xf32>
    %723 = vector.extract_strided_slice %712 {offsets = [1, 0], sizes = [8, 128], strides = [1, 1]} : vector<10x128xf32> to vector<8x128xf32>
    %724 = vector.broadcast %22 : f32 to vector<8x128xf32>
    %725 = arith.mulf %724, %723 : vector<8x128xf32>
    %726 = arith.addf %716, %725 : vector<8x128xf32>
    %727 = vector.broadcast %49 : f32 to vector<8x128xf32>
    %728 = arith.mulf %727, %723 : vector<8x128xf32>
    %729 = arith.addf %719, %728 : vector<8x128xf32>
    %730 = vector.broadcast %76 : f32 to vector<8x128xf32>
    %731 = arith.mulf %730, %723 : vector<8x128xf32>
    %732 = arith.addf %722, %731 : vector<8x128xf32>
    %733 = vector.extract_strided_slice %712 {offsets = [2, 0], sizes = [8, 128], strides = [1, 1]} : vector<10x128xf32> to vector<8x128xf32>
    %734 = vector.broadcast %25 : f32 to vector<8x128xf32>
    %735 = arith.mulf %734, %733 : vector<8x128xf32>
    %736 = arith.addf %726, %735 : vector<8x128xf32>
    %737 = vector.broadcast %52 : f32 to vector<8x128xf32>
    %738 = arith.mulf %737, %733 : vector<8x128xf32>
    %739 = arith.addf %729, %738 : vector<8x128xf32>
    %740 = vector.broadcast %79 : f32 to vector<8x128xf32>
    %741 = arith.mulf %740, %733 : vector<8x128xf32>
    %742 = arith.addf %732, %741 : vector<8x128xf32>
    %c127_i32_64 = arith.constant 127 : i32
    %743 = tpu.dynamic_rotate %677 by %c127_i32_64 dim 1 : vector<10x128xf32>, i32 -> vector<10x128xf32>
    %744 = vector.shape_cast %92 : vector<1x128xi1> to vector<1x128xi1>
    %745 = vector.broadcast %744 : vector<1x128xi1> to vector<10x128xi1>
    %746 = vector.broadcast %87 : f32 to vector<10x128xf32>
    %747 = arith.select %745, %746, %743 : vector<10x128xi1>, vector<10x128xf32>
    %748 = vector.extract_strided_slice %747 {offsets = [0, 0], sizes = [8, 128], strides = [1, 1]} : vector<10x128xf32> to vector<8x128xf32>
    %749 = vector.broadcast %21 : f32 to vector<8x128xf32>
    %750 = arith.mulf %749, %748 : vector<8x128xf32>
    %751 = arith.addf %736, %750 : vector<8x128xf32>
    %752 = vector.broadcast %48 : f32 to vector<8x128xf32>
    %753 = arith.mulf %752, %748 : vector<8x128xf32>
    %754 = arith.addf %739, %753 : vector<8x128xf32>
    %755 = vector.broadcast %75 : f32 to vector<8x128xf32>
    %756 = arith.mulf %755, %748 : vector<8x128xf32>
    %757 = arith.addf %742, %756 : vector<8x128xf32>
    %758 = vector.extract_strided_slice %747 {offsets = [1, 0], sizes = [8, 128], strides = [1, 1]} : vector<10x128xf32> to vector<8x128xf32>
    %759 = vector.broadcast %24 : f32 to vector<8x128xf32>
    %760 = arith.mulf %759, %758 : vector<8x128xf32>
    %761 = arith.addf %751, %760 : vector<8x128xf32>
    %762 = vector.broadcast %51 : f32 to vector<8x128xf32>
    %763 = arith.mulf %762, %758 : vector<8x128xf32>
    %764 = arith.addf %754, %763 : vector<8x128xf32>
    %765 = vector.broadcast %78 : f32 to vector<8x128xf32>
    %766 = arith.mulf %765, %758 : vector<8x128xf32>
    %767 = arith.addf %757, %766 : vector<8x128xf32>
    %768 = vector.extract_strided_slice %747 {offsets = [2, 0], sizes = [8, 128], strides = [1, 1]} : vector<10x128xf32> to vector<8x128xf32>
    %769 = vector.broadcast %27 : f32 to vector<8x128xf32>
    %770 = arith.mulf %769, %768 : vector<8x128xf32>
    %771 = arith.addf %761, %770 : vector<8x128xf32>
    %772 = vector.broadcast %54 : f32 to vector<8x128xf32>
    %773 = arith.mulf %772, %768 : vector<8x128xf32>
    %774 = arith.addf %764, %773 : vector<8x128xf32>
    %775 = vector.broadcast %81 : f32 to vector<8x128xf32>
    %776 = arith.mulf %775, %768 : vector<8x128xf32>
    %777 = arith.addf %767, %776 : vector<8x128xf32>
    %778 = vector.broadcast %82 : f32 to vector<8x128xf32>
    %779 = arith.addf %771, %778 : vector<8x128xf32>
    %cst_65 = arith.constant 0.000000e+00 : f32
    %780 = vector.broadcast %cst_65 : f32 to vector<8x128xf32>
    %781 = arith.maximumf %779, %780 : vector<8x128xf32>
    %c0_66 = arith.constant 0 : index
    %c0_67 = arith.constant 0 : index
    %c8_68 = arith.constant 8 : index
    %c0_69 = arith.constant 0 : index
    %782 = vector.load %arg6[%c0_66, %c0_67, %c8_68, %c0_69] : memref<1x3x16x128xf32, #tpu.memory_space<vmem>>, vector<1x1x8x128xf32>
    %783 = vector.shape_cast %782 : vector<1x1x8x128xf32> to vector<8x128xf32>
    %784 = vector.shape_cast %781 : vector<8x128xf32> to vector<1x1x8x128xf32>
    tpu.vector_store %arg6[%c0_66, %c0_67, %c8_68, %c0_69], %784 {strides = array<i32>} : memref<1x3x16x128xf32, #tpu.memory_space<vmem>>, vector<1x1x8x128xf32>,
    %785 = vector.broadcast %83 : f32 to vector<8x128xf32>
    %786 = arith.addf %774, %785 : vector<8x128xf32>
    %cst_70 = arith.constant 0.000000e+00 : f32
    %787 = vector.broadcast %cst_70 : f32 to vector<8x128xf32>
    %788 = arith.maximumf %786, %787 : vector<8x128xf32>
    %c0_71 = arith.constant 0 : index
    %c1_72 = arith.constant 1 : index
    %c8_73 = arith.constant 8 : index
    %c0_74 = arith.constant 0 : index
    %789 = vector.load %arg6[%c0_71, %c1_72, %c8_73, %c0_74] : memref<1x3x16x128xf32, #tpu.memory_space<vmem>>, vector<1x1x8x128xf32>
    %790 = vector.shape_cast %789 : vector<1x1x8x128xf32> to vector<8x128xf32>
    %791 = vector.shape_cast %788 : vector<8x128xf32> to vector<1x1x8x128xf32>
    tpu.vector_store %arg6[%c0_71, %c1_72, %c8_73, %c0_74], %791 {strides = array<i32>} : memref<1x3x16x128xf32, #tpu.memory_space<vmem>>, vector<1x1x8x128xf32>,
    %792 = vector.broadcast %84 : f32 to vector<8x128xf32>
    %793 = arith.addf %777, %792 : vector<8x128xf32>
    %cst_75 = arith.constant 0.000000e+00 : f32
    %794 = vector.broadcast %cst_75 : f32 to vector<8x128xf32>
    %795 = arith.maximumf %793, %794 : vector<8x128xf32>
    %c0_76 = arith.constant 0 : index
    %c2_77 = arith.constant 2 : index
    %c8_78 = arith.constant 8 : index
    %c0_79 = arith.constant 0 : index
    %796 = vector.load %arg6[%c0_76, %c2_77, %c8_78, %c0_79] : memref<1x3x16x128xf32, #tpu.memory_space<vmem>>, vector<1x1x8x128xf32>
    %797 = vector.shape_cast %796 : vector<1x1x8x128xf32> to vector<8x128xf32>
    %798 = vector.shape_cast %795 : vector<8x128xf32> to vector<1x1x8x128xf32>
    tpu.vector_store %arg6[%c0_76, %c2_77, %c8_78, %c0_79], %798 {strides = array<i32>} : memref<1x3x16x128xf32, #tpu.memory_space<vmem>>, vector<1x1x8x128xf32>,
    return
  }
  func.func @transform_0(%arg0: i32, %arg1: i32, %arg2: memref<81xf32, #tpu.memory_space<smem>>, %arg3: memref<3xf32, #tpu.memory_space<smem>>, %arg4: memref<3xf32, #tpu.memory_space<smem>>) -> (i32, i32, i32, i32) {
    %c0_i32 = arith.constant 0 : i32
    %c0_i32_0 = arith.constant 0 : i32
    %c0_i32_1 = arith.constant 0 : i32
    %c0_i32_2 = arith.constant 0 : i32
    return %arg0, %c0_i32, %c0_i32_0, %c0_i32_1 : i32, i32, i32, i32
  }
  func.func @transform_1(%arg0: i32, %arg1: i32, %arg2: memref<81xf32, #tpu.memory_space<smem>>, %arg3: memref<3xf32, #tpu.memory_space<smem>>, %arg4: memref<3xf32, #tpu.memory_space<smem>>) -> (i32, i32, i32, i32) {
    %c0_i32 = arith.constant 0 : i32
    %c0_i32_0 = arith.constant 0 : i32
    %c0_i32_1 = arith.constant 0 : i32
    return %arg0, %c0_i32, %arg1, %c0_i32_0 : i32, i32, i32, i32
  }
}

</mosaic_0001>

<bundles_post_ra>
// kernel: tpu_custom_call.1
= control target key start
LH: loop header
LB: loop body
LE: loop exit
PB: predicated region body
PF: predicated region fallthrough
CT: control target
= control target key end

     0   :  { %s2207_s21 = smov [#allocation3]   ;;  %s2208_s22 = smov [#allocation4]   ;;  %s3844_s0 = inlined_call_operand.hbm [shape: f32[81], index: 0, kind: input, shape index: {}]   ;;  %s3845_s3 = inlined_call_operand.hbm [shape: f32[2,3,32,128], index: 3, kind: input, shape index: {}]   ;;  %s3846_s4 = inlined_call_operand.hbm [shape: f32[2,3,32,128], index: 4, kind: output, shape index: {}]   ;;  %s3847_s1 = inlined_call_operand.hbm [shape: f32[3], index: 1, kind: input, shape index: {}]   ;;  %s3848_s2 = inlined_call_operand.vmem [shape: f32[3], index: 2, kind: input, shape index: {}]  }
   0x1   :  { %3894 = sst [smem:[#allocation60_spill]] %s3845_s3  ;;  %s10_s17 = sshll.u32 %s3844_s0, 4  ;;  %s11_s17 = int_to_ptr.hbm [resolvable:$true] %s10_s17 }
   0x2   :  { %s15_s20 = sshll.u32 %s3847_s1, 4  ;;  %s20_s25 = sshll.u32 %s3848_s2, 4  ;;  %s16_s20 = int_to_ptr.hbm [resolvable:$true] %s15_s20  ;;  %s21_s25 = int_to_ptr.vmem [resolvable:$true] %s20_s25 }
   0x3   :  { %13 = dma.hbm_to_smem %s11_s17, 16, %s2207_s21, [#allocation2] }
   0x4   :  { %18 = dma.hbm_to_smem %s16_s20, 16, %s2208_s22, [#allocation2] }
   0x5   :  { %s2209_s26 = smov [#allocation5]  }
   0x6   :  { %23 = dma.vmem_to_smem %s21_s25, 16, %s2209_s26, [#allocation2] }
   0x7   :  { %2153 = dma.done.wait [#allocation2], 48 }
   0x8   :  { %2154 = vsyncadd [#allocation2], 4294967248 }
   0x9   :  { %26 = sfence }
   0xa   :  { %27 = vsyncpa [#allocation7], 0 }
   0xb   :  { %29 = vsyncpa [#allocation7 + $0x1], 0 }
   0xc   :  { %30 = vsyncpa [#allocation8], 0 }
   0xd   :  { %32 = vsyncpa [#allocation8 + $0x1], 0  ;;  %s2255_s0 = smov 0   ;;  %s2257_s1 = smov 0  }
   0xe   :  { %s2259_s27 = smov 0   ;;  %s2261_s28 = smov 0  }
   0xf   :  { %s2263_s29 = smov 0   ;;  %s2265_s2 = smov 0  }
  0x10   :  { %s2267_s30 = smov 0   ;;  %s2269_s5 = smov 0  }
  0x11   :  { %s2271_s6 = smov 0   ;;  %s2273_s7 = smov 0  }
  0x12   :  { %s2275_s8 = smov 0  }
  0x13 LB: > { %3895 = sst [smem:[#allocation15_spill]] %s2201_s7  ;;  %s1804_s9 = sadd.s32 4294967295, %s2205_s8   ;;  %s2205_s8 = sphi %s2275_s8, %s38_s8   ;;  %s2201_s7 = sphi %s2273_s7, %s4016_s7   ;;  %s2197_s6 = sphi %s2271_s6, %s4024_s6   ;;  %s2193_s5 = sphi %s2269_s5, %s4014_s5   ;;  %s2189_s30 = sphi %s2267_s30, %s4023_s30   ;;  %s2185_s2 = sphi %s2265_s2, %s4022_s2   ;;  %s2181_s29 = sphi %s2263_s29, %s4021_s29   ;;  %s2177_s28 = sphi %s2261_s28, %s4020_s28   ;;  %s2173_s27 = sphi %s2259_s27, %s4019_s27   ;;  %s2169_s1 = sphi %s2257_s1, %s4018_s1   ;;  %s2165_s0 = sphi %s2255_s0, %s4017_s0  }
  0x14   : > { %s1805_s10 = sadd.s32 4294967294, %s2205_s8   ;;  %s47_s11 = sadd.s32 1, %s2197_s6 }
  0x15   : > { %s50_s12 = sadd.s32 1, %s2201_s7  ;;  %p48_p0 = scmp.ge.s32.totalorder %s47_s11, 2 }
  0x16   : > { %s57_s13 = sadd.s32 1, %s2185_s2  ;;  %p64_p1 = scmp.ne.s32.totalorder %s2185_s2, %s2181_s29 }
  0x17   : > { %p65_p2 = scmp.eq.s32.totalorder %s2205_s8, 0  ;;  %s4026_s11 = smov (%p48_p0, %s47_s11), 0 }
  0x18   : > { %3896 = sst [smem:[#allocation16_spill]] %s4026_s11  ;;  %s4028_s12 = smov (!%p48_p0, %s50_s12), %s2201_s7 }
  0x19   : > { %p2319_p3 = por %p65_p2, %p64_p1  ;;  %p70_p4 = scmp.ne.s32.totalorder %s2181_s29, %s2177_s28 }
  0x1a   : > { %p52_p5 = scmp.ge.s32.totalorder %s4028_s12, 2  ;;  %p71_p6 = scmp.eq.s32.totalorder %s1804_s9, 0 }
  0x1b   : > { %s81_s15 = ssub.s32 %s2197_s6, %s4026_s11  ;;  %s85_s16 = sadd.s32 1, %s2173_s27 }
  0x1c   : > { %s4030_s12 = smov (%p52_p5, %s4028_s12), 0  ;;  %p2329_p7 = por %p71_p6, %p70_p4 }
  0x1d   : > { %3898 = sst [smem:[#allocation17_spill]] %s4030_s12  ;;  %p95_p8 = scmp.ne.s32.totalorder %s2173_s27, %s2169_s1 }
  0x1e   : > { %s54_s18 = ssub.s32 %s2201_s7, %s4030_s12  ;;  %p96_p9 = scmp.eq.s32.totalorder %s1804_s9, 3 }
  0x1f   : > { %p55_p10 = scmp.eq.s32.totalorder %s54_s18, 0  ;;  %s82_s19 = sor.u32 %s81_s15, %s54_s18 }
  0x20   : > { %p83_p11 = scmp.eq.s32.totalorder %s82_s19, 0  ;;  %p2337_p12 = por %p96_p9, %p95_p8 }
  0x21   : > { %s2342_s21 = scalar_select %p55_p10, %s2185_s2, %s57_s13  }
  0x22   : > { %s2345_s22 = scalar_select %p83_p11, %s2173_s27, %s85_s16  }
  0x23   : > { %p101_p13 = scmp.ne.s32.totalorder %s2169_s1, %s2165_s0  ;;  %p102_p0 = scmp.eq.s32.totalorder %s1805_s10, 3 }
  0x24   : > { %p1939_p1 = scmp.lt.s32.totalorder %s2205_s8, 4  ;;  %s122_s24 = sand.u32 1, %s2185_s2  }
  0x25   : > { %p2350_p2 = por %p102_p0, %p101_p13  ;;  %s1916_s25 = smul.u32 96, %s122_s24 }
  0x26   : > { %s1917_s26 = smul.u32 96, %s2201_s7  ;;  %p1932_p4 = pnand %p1939_p1, %p2319_p3 }
  0x27   : > { %s3902_s3 = sld [smem:[#allocation60_spill]]  ;;  %s126_s15 = scalar_lea.vmem [#allocation6], %s1916_s25 }
  0x28   : > { %s134_s16 = sshll.u32 %s126_s15, 4  ;;  %p1809_p5 = scmp.ge.s32.totalorder %s2205_s8, 1  ;;  %s135_s16 = int_to_ptr.vmem [resolvable:$true] %s134_s16 }
  0x29   : > { %s123_s10 = scalar_lea.sflag [#allocation7], %s122_s24  ;;  %s2210_s19 = smov 128  }
  0x2a   : > { %s2211_s12 = smov 8   ;;  %p142_p6 = scmp.lt.s32.totalorder %s2205_s8, 5 }
  0x2c   : > { %p143_p8 = pnand %p1809_p5, %p142_p6 }
  0x2d   : > { %s131_s13 = scalar_lea.hbm %s3902_s3, %s1917_s26 }
  0x2e   : > { %s132_s18 = sshll.u32 %s131_s13, 4  ;;  %146 = sbr.rel (%p143_p8) target bundleno = 392 (0x188), region = 24  ;;  %s133_s18 = int_to_ptr.hbm [resolvable:$true] %s132_s18 }
  0x2f   : > { %1934 = dma.hbm_to_vmem [thread:$0]  (!%p1932_p4), %s133_s18, 1536, %s135_s16, %s123_s10, %s2210_s19, %s2210_s19, %s2211_s12  }
  0x33   : > { %s148_s14 = sand.u32 1, %s2181_s29  }
  0x34   : > { %s1918_s11 = smul.u32 96, %s148_s14  ;;  %s149_s7 = scalar_lea.sflag [#allocation7], %s148_s14 }
  0x36   : > { %s152_s28 = scalar_lea.vmem [#allocation6], %s1918_s11 }
  0x37   : > { %2156 = dma.done.wait (%p2329_p7), %s149_s7, 1536  }
  0x38   : > { %2158 = vsyncadd (%p2329_p7), %s149_s7, 4294965760  ;;  %s1810_s25 = sshll.u32 %s2189_s30, 4  ;;  %v261_v0 = vlaneseq  ;;  %vm279_vm0 = vcmask 1047554   ;;  %vm291_vm1 = vcmask 1046528   ;;  %s258_s7 = sld [smem:[#allocation5]]  ;;  %vm344_vm7 = vcmask 1045504  }
  0x39   : > { %s1016_s24 = sadd.s32 16, %s1810_s25  ;;  %s1018_s26 = sadd.s32 7, %s1810_s25 }
  0x3a   : > { %p1017_p3 = scmp.eq.s32.totalorder %s1016_s24, 32  ;;  %p272_p9 = scmp.eq.s32.totalorder %s1810_s25, 0  ;;  %v2379_v10 = vshrl.u32 %v261_v0, 7  ;;  %v2577_v20 = vand.u32 127, %v261_v0 }
  0x3b   : > { %s2212_s17 = smov 127   ;;  %s2213_s18 = smov 1  }
  0x3c   : > { %s1019_s12 = scalar_select %p1017_p3, 1, 0  ;;  %v2398_v21 = vadd.s32 8, %v2379_v10  ;;  %vm268_vm5 = vcmp.eq.s32.totalorder %v2379_v10, 0  ;;  %vm264_vm6 = vcmp.eq.s32.totalorder %v2577_v20, 127  ;;  %vm263_vm8 = vcmp.eq.s32.totalorder %v2577_v20, 0 }
  0x3d   : > { %s274_s9 = scalar_select %p272_p9, 1, 0 }
  0x3e   : > { %s1020_s13 = ssub.s32 %s1018_s26, %s1019_s12  ;;  %v1039_v4 = vstv %s1019_s12  ;;  %vm271_vm4 = vcmp.eq.s32.totalorder %v2398_v21, 9  ;;  %v2414_v28 = vstv %s258_s7  ;;  %s1893_s10 = sld [smem:[#allocation5 + $0x1]] }
  0x3f   : > { %s2369_s15 = scalar_lea.vmem %s152_s28, %s1020_s13 [#allocation6]  ;;  %s1742_s16 = sadd.s32 %s1810_s25, %s274_s9  ;;  %vm2381_vm2 = vcmp.eq.s32.totalorder %v1039_v4, 1  ;;  %v299_v14 = vstv %s274_s9 }
  0x40   : > { %v1022_v1 = vld [vmem:[%s2369_s15] sm:$0xff]  ;;  %v1023_v2 = vld [vmem:[%s2369_s15 + $0x8] sm:$0x3]  ;;  %s2373_s11 = scalar_lea.vmem %s152_s28, %s1742_s16 [#allocation6]  ;;  %vm2393_vm3 = vcmp.eq.s32.totalorder %v299_v14, 1  ;;  %s1894_s19 = sld [smem:[#allocation5 + $0x2]] }
  0x41   : > { %v1024_v3 = vrot.slane %v1022_v1, 6  ;;  %v1896_v5 = vld [vmem:[%s2373_s11 - $0x1] sm:$0xff]  ;;  %v1897_v6 = vld [vmem:[%s2373_s11 + $0x7] sm:$0x3]  ;;  %v1032_v7 = vrot.slane %v1022_v1, 1  ;;  %s1814_s14 = sld [smem:[#allocation3 + $0x4]] }
  0x42   : > { %v280_v8 = vrot.slane %v1896_v5, 6  ;;  %v1899_v16 = vld [vmem:[%s2373_s11 + $0x1f] sm:$0xff]  ;;  %v1900_v25 = vld [vmem:[%s2373_s11 + $0x27] sm:$0x3]  ;;  %s1817_s28 = sld [smem:[#allocation3 + $0x7]] }
  0x43   : > { %v1025_v9 = vsel %vm279_vm0, %v1024_v3, %v1023_v2  ;;  %v528_v24 = vrot.slane %v1899_v16, 6  ;;  %v1906_v29 = vld [vmem:[%s2369_s15 + $0x20] sm:$0xff]  ;;  %v1907_v36 = vld [vmem:[%s2369_s15 + $0x28] sm:$0x3]  ;;  %s1841_s25 = sld [smem:[#allocation3 + $0x1f]] }
  0x44   : > { %v1033_v11 = vrot.slane %v1025_v9, 1  ;;  %v281_v13 = vsel %vm279_vm0, %v280_v8, %v1897_v6  ;;  %v1236_v34 = vrot.slane %v1906_v29, 6  ;;  %v1902_v39 = vld [vmem:[%s2373_s11 + $0x3f] sm:$0xff]  ;;  %v2442_v43 = vstv %s1893_s10  ;;  %v1903_v46 = vld [vmem:[%s2373_s11 + $0x47] sm:$0x3]  ;;  %s1844_s24 = sld [smem:[#allocation3 + $0x22]] }
  0x45   : > { %v282_v15 = vrot.slane %v281_v13, 6  ;;  %v292_v22 = vrot.slane %v281_v13, 1  ;;  %v529_v30 = vsel %vm279_vm0, %v528_v24, %v1900_v25  ;;  %3908 = vst [vmem:[#allocation19_spill] sm:$0xff] %v2442_v43  ;;  %v767_v45 = vrot.slane %v1902_v39, 6  ;;  %v1908_v61 = vld [vmem:[%s2369_s15 + $0x40] sm:$0xff]  ;;  %s1868_s26 = sld [smem:[#allocation3 + $0x3a]] }
  0x46   : > { %v1034_v17 = vsel %vm291_vm1, %v1032_v7, %v1033_v11  ;;  %v1038_v31 = vsel %vm271_vm4, %v2414_v28, %v1033_v11  ;;  %v530_v35 = vrot.slane %v529_v30, 6  ;;  %v535_v37 = vrot.slane %v529_v30, 1  ;;  %s1871_s12 = sld [smem:[#allocation3 + $0x3d]] }
  0x47   : > { %v2390_v18 = vsel %vm2381_vm2, %v1034_v17, %v1022_v1  ;;  %v283_v19 = vsel %vm279_vm0, %v282_v15, %v280_v8  ;;  %v2423_v32 = vsel %vm2381_vm2, %v1038_v31, %v1023_v2  ;;  %v1237_v42 = vsel %vm279_vm0, %v1236_v34, %v1907_v36  ;;  %v1909_v2 = vld [vmem:[%s2369_s15 + $0x48] sm:$0x3]  ;;  %s2536_s9 = sld [smem:[#allocation3 + $0x5]] }
  0x48   : > { %1166 = vrot.lane.b32.xlu0 %v2390_v18, %s2212_s17  ;;  %1100 = vrot.lane.b32.xlu1 %v2390_v18, %s2213_s18  ;;  %v293_v23 = vrot.slane %v283_v19, 1  ;;  %v531_v38 = vsel %vm279_vm0, %v530_v35, %v528_v24  ;;  %v1240_v47 = vrot.slane %v1906_v29, 1  ;;  %v1241_v48 = vrot.slane %v1237_v42, 1  ;;  %s2538_s13 = sld [smem:[#allocation3 + $0x8]] }
  0x49   : > { %v536_v41 = vrot.slane %v531_v38, 1  ;;  %v768_v50 = vsel %vm279_vm0, %v767_v45, %v1903_v46  ;;  %v2484_v62 = vstv %s1894_s19  ;;  %v1445_v1 = vrot.slane %v1908_v61, 6  ;;  %s2540_s15 = sld [smem:[#allocation3 + $0x20]] }
  0x4a   : > { %v2407_v26 = vsel %vm2393_vm3, %v293_v23, %v1897_v6  ;;  %v294_v27 = vsel %vm291_vm1, %v292_v22, %v293_v23  ;;  %v1242_v51 = vsel %vm291_vm1, %v1240_v47, %v1241_v48  ;;  %v769_v53 = vrot.slane %v768_v50, 6  ;;  %3913 = vst [vmem:[#allocation24_spill] sm:$0xff] %v2484_v62  ;;  %s2542_s16 = sld [smem:[#allocation3 + $0x23]] }
  0x4b   : > { %449 = vrot.lane.b32.xlu2 %v2407_v26, %s2212_s17  ;;  %v297_v33 = vsel %vm268_vm5, %v2414_v28, %v294_v27  ;;  %v537_v44 = vsel %vm291_vm1, %v535_v37, %v536_v41  ;;  %v2463_v54 = vsel %vm2381_vm2, %v1242_v51, %v1906_v29  ;;  %v2467_v55 = vsel %vm2393_vm3, %v536_v41, %v1900_v25  ;;  %s2544_s11 = sld [smem:[#allocation3 + $0x3b]] }
  0x4c   : > { %v2437_v40 = vsel %vm2393_vm3, %v297_v33, %v1896_v5  ;;  %v540_v49 = vsel %vm268_vm5, %v2442_v43, %v537_v44  ;;  %3910 = vst [vmem:[#allocation21_spill] sm:$0xff] %v2463_v54  ;;  %v1246_v56 = vsel %vm271_vm4, %v2442_v43, %v1241_v48  ;;  %v770_v57 = vsel %vm279_vm0, %v769_v53, %v767_v45  ;;  %s2546_s7 = sld [smem:[#allocation3 + $0x3e]] }
  0x4d   : > { %3907 = vst [vmem:[#allocation18_spill] sm:$0xff] %v2437_v40  ;;  %v2457_v52 = vsel %vm2393_vm3, %v540_v49, %v1899_v16  ;;  %v2479_v58 = vsel %vm2381_vm2, %v1246_v56, %v1907_v36  ;;  %v774_v59 = vrot.slane %v768_v50, 1  ;;  %v775_v60 = vrot.slane %v770_v57, 1  ;;  %s2552_s10 = sld [smem:[#allocation3 + $0x1]] }
  0x4e   : > { %3909 = vst [vmem:[#allocation20_spill] sm:$0xff] %v2457_v52  ;;  %v1446_v4 = vsel %vm279_vm0, %v1445_v1, %v1909_v2  ;;  %v1449_v6 = vrot.slane %v1908_v61, 1  ;;  %v2554_v12 = vstv %s1814_s14  ;;  %v2556_v14 = vstv %s1841_s25  ;;  %s2558_s19 = sld [smem:[#allocation3 + $0x1c]] }
  0x4f   : > { %3911 = vst [vmem:[#allocation22_spill] sm:$0xff] %v2467_v55  ;;  %v776_v63 = vsel %vm291_vm1, %v774_v59, %v775_v60  ;;  %v1450_v7 = vrot.slane %v1446_v4, 1  ;;  %v2512_v10 = vsel %vm2393_vm3, %v775_v60, %v1903_v46  ;;  %v2562_v15 = vmul.f32 %v2554_v12, %v2407_v26  ;;  %s2570_s3 = sld [smem:[#allocation3 + $0x1e]] }
  0x50   : > { %372 = vrot.lane.b32.xlu0 %v2407_v26, %s2213_s18  ;;  %1102 = vrot.lane.b32.xlu1 %v2423_v32, %s2213_s18  ;;  %3912 = vst [vmem:[#allocation23_spill] sm:$0xff] %v2479_v58  ;;  %v779_v3 = vsel %vm268_vm5, %v2484_v62, %v776_v63  ;;  %v2566_v16 = vmul.f32 %v2556_v14, %v2407_v26  ;;  %v2568_v17 = vstv %s1868_s26  ;;  %s2579_s14 = sld [smem:[#allocation3 + $0x37]]  ;;  %v2581_v21 = vstv %s1817_s28 }
  0x51   : > { %v2500_v5 = vsel %vm2393_vm3, %v779_v3, %v1902_v39  ;;  %v1451_v8 = vsel %vm291_vm1, %v1449_v6, %v1450_v7  ;;  %v1455_v9 = vsel %vm271_vm4, %v2484_v62, %v1450_v7  ;;  %3915 = vst [vmem:[#allocation26_spill] sm:$0xff] %v2512_v10  ;;  %v2574_v19 = vmul.f32 %v2568_v17, %v2407_v26  ;;  %s2585_s25 = sld [smem:[#allocation3 + $0x21]] }
  0x52   : > { %3914 = vst [vmem:[#allocation25_spill] sm:$0xff] %v2500_v5  ;;  %v2518_v11 = vsel %vm2381_vm2, %v1451_v8, %v1908_v61  ;;  %v2522_v13 = vsel %vm2381_vm2, %v1455_v9, %v1909_v2  ;;  %v2583_v22 = vstv %s1844_s24  ;;  %v1046_v23 = vmul.f32 %v2390_v18, %v2554_v12  ;;  %s2597_s28 = sld [smem:[#allocation3 + $0x39]] }
  0x53   : > { %447 = vrot.lane.b32.xlu2 %v2437_v40, %s2212_s17  ;;  %3916 = vst [vmem:[#allocation27_spill] sm:$0xff] %v2518_v11  ;;  %v1047_v24 = vmul.f32 %v2423_v32, %v2554_v12  ;;  %v2593_v0 = vmul.f32 %v2581_v21, %v2407_v26  ;;  %v2595_v25 = vstv %s1871_s12  ;;  %v1055_v27 = vmul.f32 %v2390_v18, %v2556_v14  ;;  %s2613_s24 = sld [smem:[#allocation3 + $0x3c]] }
  0x54   : > { %3917 = vst [vmem:[#allocation28_spill] sm:$0xff] %v2522_v13  ;;  %v1056_v29 = vmul.f32 %v2423_v32, %v2556_v14  ;;  %v2607_v33 = vmul.f32 %v2583_v22, %v2407_v26  ;;  %v2611_v34 = vmul.f32 %v2595_v25, %v2407_v26  ;;  %v2618_v36 = vstv %s2536_s9  ;;  %s2623_s26 = sld [smem:[#allocation3]] }
  0x55   : > { %3918 = vst [vmem:[#allocation29_spill] sm:$0xff] %v2568_v17  ;;  %v2621_v37 = vstv %s2540_s15  ;;  %v1064_v38 = vmul.f32 %v2390_v18, %v2568_v17  ;;  %s2627_s12 = sld [smem:[#allocation3 + $0x1b]]  ;;  %v303_v26 = vstv %s2552_s10  ;;  %v1050_v39 = vrot.slane %v1046_v23, 1  ;;  %s169_s10 = sand.u32 1, %s2169_s1  }
  0x56   : > { %3919 = vst [vmem:[#allocation30_spill] sm:$0xff] %v2574_v19  ;;  %v1051_v41 = vrot.slane %v1047_v24, 1  ;;  %v1065_v42 = vmul.f32 %v2423_v32, %v2568_v17  ;;  %s2632_s9 = sld [smem:[#allocation3 + $0x36]]  ;;  %v3853_v44 = vstv %s2558_s19  ;;  %v1059_v45 = vrot.slane %v1055_v27, 1 }
  0x57   : > { %3920 = vst [vmem:[#allocation31_spill] sm:$0xff] %v2581_v21  ;;  %v1060_v46 = vrot.slane %v1056_v29, 1  ;;  %v1073_v47 = vmul.f32 %v2390_v18, %v2581_v21  ;;  %v2638_v48 = vstv %s2544_s11  ;;  %v1074_v49 = vmul.f32 %v2423_v32, %v2581_v21  ;;  %s2646_s15 = sld [smem:[#allocation3 + $0x2]] }
  0x58   : > { %1168 = vrot.lane.b32.xlu1 %v2423_v32, %s2212_s17  ;;  %370 = vrot.lane.b32.xlu0 %v2437_v40, %s2213_s18  ;;  %3921 = vst [vmem:[#allocation32_spill] sm:$0xff] %v2583_v22  ;;  %v1082_v50 = vmul.f32 %v2390_v18, %v2583_v22  ;;  %v1083_v51 = vmul.f32 %v2423_v32, %v2583_v22  ;;  %v2649_v53 = vstv %s2538_s13  ;;  %v2652_v56 = vstv %s2542_s16  ;;  %s2658_s11 = sld [smem:[#allocation3 + $0x1d]] }
  0x59   : > { %3922 = vst [vmem:[#allocation33_spill] sm:$0xff] %v2593_v0  ;;  %v2655_v57 = vstv %s2546_s7  ;;  %v3852_v59 = vstv %s2579_s14  ;;  %v1043_v60 = vmul.f32 %v2390_v18, %v303_v26  ;;  %v1044_v61 = vmul.f32 %v2390_v18, %v3853_v44  ;;  %s2667_s13 = sld [smem:[#allocation3 + $0x38]] }
  0x5a   : > { %3923 = vst [vmem:[#allocation34_spill] sm:$0xff] %v2595_v25  ;;  %v1052_v63 = vsel %vm291_vm1, %v1050_v39, %v1051_v41  ;;  %v1068_v1 = vrot.slane %v1064_v38, 1  ;;  %v1061_v2 = vsel %vm291_vm1, %v1059_v45, %v1060_v46  ;;  %v1069_v3 = vrot.slane %v1065_v42, 1  ;;  %s2707_s16 = sld [smem:[#allocation3 + $0xd]] }
  0x5b   : > { %613 = vrot.lane.b32.xlu2 %v2457_v52, %s2213_s18  ;;  %3924 = vst [vmem:[#allocation35_spill] sm:$0xff] %v2607_v33  ;;  %v1077_v4 = vrot.slane %v1073_v47, 2  ;;  %v1091_v6 = vmul.f32 %v2390_v18, %v2595_v25  ;;  %v1078_v8 = vrot.slane %v1074_v49, 2  ;;  %v1086_v9 = vrot.slane %v1082_v50, 2  ;;  %s2718_s7 = sld [smem:[#allocation3 + $0x25]] }
  0x5c   : > { %3925 = vst [vmem:[#allocation36_spill] sm:$0xff] %v2611_v34  ;;  %v1087_v23 = vrot.slane %v1083_v51, 2  ;;  %v1092_v24 = vmul.f32 %v2423_v32, %v2595_v25  ;;  %v2678_v29 = vstv %s2570_s3  ;;  %v1045_v38 = vmul.f32 %v2390_v18, %v3852_v59  ;;  %s2705_s3 = sld [smem:[#allocation3 + $0xa]] }
  0x5d   : > { %3927 = vst [vmem:[#allocation38_spill] sm:$0xff] %v2678_v29  ;;  %v2687_v41 = vstv %s2597_s28  ;;  %v2693_v32 = vstv %s2585_s25  ;;  %v2696_v45 = vstv %s2613_s24  ;;  %v1054_v46 = vadd.f32 %v1052_v63, %v1043_v60  ;;  %s2745_s25 = sld [smem:[#allocation3 + $0x43]] }
  0x5e   : > { %v1063_v47 = vadd.f32 %v1061_v2, %v1044_v61  ;;  %v1070_v18 = vsel %vm291_vm1, %v1068_v1, %v1069_v3  ;;  %v1079_v49 = vsel %vm344_vm7, %v1077_v4, %v1078_v8  ;;  %v1088_v50 = vsel %vm344_vm7, %v1086_v9, %v1087_v23  ;;  %s3075_s28 = sld [smem:[#allocation3 + $0x46]] }
  0x5f   : > { %v1095_v51 = vrot.slane %v1091_v6, 2  ;;  %v1072_v44 = vadd.f32 %v1070_v18, %v1045_v38  ;;  %v2714_v3 = vadd.f32 %v1079_v49, %v1054_v46  ;;  %v3928_v18 = vstv %s2558_s19  ;;  %s3036_s19 = sld [smem:[#allocation3 + $0x10]] }
  0x60   : > { %1309 = vrot.lane.b32.xlu1 %v2463_v54, %s2213_s18  ;;  %615 = vrot.lane.b32.xlu0 %v2467_v55, %s2213_s18  ;;  %v2716_v4 = vadd.f32 %v1088_v50, %v1063_v47  ;;  %v2732_v47 = vmul.f32 %v303_v26, %v2437_v40  ;;  %v2737_v49 = vmul.f32 %v3928_v18, %v2437_v40  ;;  %s3080_s24 = sld [smem:[#allocation3 + $0x9]] }
  0x63   : > { %1311 = vrot.lane.b32.xlu2 %v2479_v58, %s2213_s18 }
  0x68   : > { %690 = vrot.lane.b32.xlu1 %v2467_v55, %s2212_s17  ;;  %688 = vrot.lane.b32.xlu0 %v2457_v52, %s2212_s17 }
  0x6b   : > { %1375 = vrot.lane.b32.xlu2 %v2463_v54, %s2212_s17 }
  0x70   : > { %1377 = vrot.lane.b32.xlu0 %v2479_v58, %s2212_s17  ;;  %852 = vrot.lane.b32.xlu1 %v2500_v5, %s2213_s18 }
  0x73   : > { %854 = vrot.lane.b32.xlu2 %v2512_v10, %s2213_s18 }
  0x78   : > { %1518 = vrot.lane.b32.xlu0 %v2518_v11, %s2213_s18  ;;  %1520 = vrot.lane.b32.xlu1 %v2522_v13, %s2213_s18  ;;  %s2548_s18 = sld [smem:[#allocation3 + $0x3]] }
  0x7b   : > { %927 = vrot.lane.b32.xlu2 %v2500_v5, %s2212_s17  ;;  %v3931_v5 = vstv %s2646_s15 }
  0x7e   : > { %v2675_v27 = vstv %s2548_s18  ;;  %s2724_s18 = sld [smem:[#allocation3 + $0x40]] }
  0x7f   : > { %3926 = vst [vmem:[#allocation37_spill] sm:$0xff] %v2675_v27 }
  0x80   : > { %929 = vrot.lane.b32.xlu0 %v2512_v10, %s2212_s17  ;;  %1584 = vrot.lane.b32.xlu1 %v2518_v11, %s2212_s17 }
  0x83   : > { %1586 = vrot.lane.b32.xlu2 %v2522_v13, %s2212_s17  ;;  %s2550_s17 = sld [smem:[#allocation3 + $0x6]] }
  0x89   : > { %v2690_v42 = vstv %s2550_s17  ;;  %s2739_s17 = sld [smem:[#allocation3 + $0x28]] }
  0xa5   : > { %v450_v7 = vpop.permute.xlu2 %449 }
  0xa6   : > { %v454_v39 = vsel %vm264_vm6, %v2414_v28, %v450_v7  ;;  %v1096_v7 = vrot.slane %v1092_v24, 2 }
  0xa7   : > { %v466_v35 = vmul.f32 %v2618_v36, %v454_v39  ;;  %v476_v1 = vmul.f32 %v2621_v37, %v454_v39  ;;  %v486_v2 = vmul.f32 %v2638_v48, %v454_v39  ;;  %v496_v6 = vmul.f32 %v2649_v53, %v454_v39 }
  0xa8   : > { %v506_v8 = vmul.f32 %v2652_v56, %v454_v39  ;;  %v516_v9 = vmul.f32 %v2655_v57, %v454_v39  ;;  %v1097_v24 = vsel %vm344_vm7, %v1095_v51, %v1096_v7 }
  0xa9   : > { %v470_v38 = vrot.slane %v466_v35, 1  ;;  %v480_v26 = vrot.slane %v476_v1, 1  ;;  %v490_v7 = vrot.slane %v486_v2, 1  ;;  %v500_v59 = vrot.slane %v496_v6, 2 }
  0xaa   : > { %v510_v61 = vrot.slane %v506_v8, 2  ;;  %v520_v60 = vrot.slane %v516_v9, 2  ;;  %v3929_v2 = vstv %s2579_s14  ;;  %v1099_v11 = vadd.f32 %v1097_v24, %v1072_v44  ;;  %s3056_s14 = sld [smem:[#allocation3 + $0x2b]] }
  0xab   : > { %v2753_v13 = vmul.f32 %v3929_v2, %v2437_v40  ;;  %v3936_v9 = vstv %s2667_s13  ;;  %v547_v44 = vstv %s2718_s7  ;;  %s3250_s7 = sld [smem:[#allocation3 + $0xe]] }
  0xad   : > { %v448_v23 = vpop.permute.xlu2 %447  ;;  %3930 = vst [vmem:[#allocation39_spill] sm:$0xff] %v2753_v13  ;;  %v3952_v13 = vstv %s2646_s15  ;;  %s3101_s15 = sld [smem:[#allocation3 + $0x3f]] }
  0xae   : > { %v453_v46 = vsel %vm264_vm6, %v2414_v28, %v448_v23 }
  0xaf   : > { %v465_v39 = vmul.f32 %v2618_v36, %v453_v46  ;;  %v475_v50 = vmul.f32 %v2621_v37, %v453_v46  ;;  %v485_v35 = vmul.f32 %v2638_v48, %v453_v46  ;;  %v495_v51 = vmul.f32 %v2649_v53, %v453_v46 }
  0xb0   : > { %v505_v23 = vmul.f32 %v2652_v56, %v453_v46  ;;  %v515_v18 = vmul.f32 %v2655_v57, %v453_v46  ;;  %v2757_v55 = vmul.f32 %v3931_v5, %v453_v46  ;;  %v550_v5 = vstv %s2724_s18  ;;  %s3259_s18 = sld [smem:[#allocation3 + $0x11]] }
  0xb1   : > { %v469_v30 = vrot.slane %v465_v39, 1  ;;  %v479_v31 = vrot.slane %v475_v50, 1  ;;  %v489_v63 = vrot.slane %v485_v35, 1  ;;  %v499_v10 = vrot.slane %v495_v51, 2 }
  0xb2   : > { %v509_v62 = vrot.slane %v505_v23, 2  ;;  %v519_v1 = vrot.slane %v515_v18, 2  ;;  %3932 = vst [vmem:[#allocation40_spill] sm:$0xff] %v2757_v55  ;;  %v3934_v39 = vstv %s2658_s11  ;;  %v2768_v50 = vmul.f32 %v3936_v9, %v453_v46 }
  0xb3   : > { %v2760_v6 = vsel %vm291_vm1, %v469_v30, %v470_v38  ;;  %v2764_v8 = vmul.f32 %v3934_v39, %v453_v46  ;;  %v544_v35 = vstv %s2705_s3  ;;  %v2772_v51 = vsel %vm291_vm1, %v479_v31, %v480_v26  ;;  %s3122_s3 = sld [smem:[#allocation3 + $0x42]] }
  0xb4   : > { %3933 = vst [vmem:[#allocation41_spill] sm:$0xff] %v2760_v6  ;;  %v2775_v23 = vsel %vm291_vm1, %v489_v63, %v490_v7  ;;  %v2780_v24 = vsel %vm344_vm7, %v499_v10, %v500_v59  ;;  %v2783_v30 = vsel %vm344_vm7, %v509_v62, %v510_v61  ;;  %v2786_v38 = vstv %s2707_s16  ;;  %s3154_s16 = sld [smem:[#allocation3 + $0x45]] }
  0xb5   : > { %3935 = vst [vmem:[#allocation42_spill] sm:$0xff] %v2764_v8  ;;  %v2789_v18 = vstv %s2739_s17  ;;  %v2792_v46 = vsel %vm344_vm7, %v519_v1, %v520_v60  ;;  %v2795_v31 = vmul.f32 %v544_v35, %v2457_v52  ;;  %v2798_v63 = vmul.f32 %v547_v44, %v2457_v52  ;;  %s3263_s17 = sld [smem:[#allocation3 + $0x29]] }
  0xb6   : > { %3937 = vst [vmem:[#allocation43_spill] sm:$0xff] %v2768_v50  ;;  %v2801_v26 = vstv %s2745_s25  ;;  %v2804_v10 = vmul.f32 %v550_v5, %v2457_v52  ;;  %v2807_v62 = vmul.f32 %v2463_v54, %v544_v35  ;;  %v2810_v59 = vmul.f32 %v2463_v54, %v547_v44  ;;  %s3269_s25 = sld [smem:[#allocation3 + $0x44]] }
  0xb7   : > { %3938 = vst [vmem:[#allocation44_spill] sm:$0xff] %v2772_v51  ;;  %v2813_v60 = vmul.f32 %v2463_v54, %v550_v5  ;;  %v1255_v61 = vmul.f32 %v2463_v54, %v2786_v38  ;;  %v1256_v7 = vmul.f32 %v2479_v58, %v2786_v38  ;;  %v2821_v1 = vmul.f32 %v2463_v54, %v2789_v18 }
  0xb8   : > { %3939 = vst [vmem:[#allocation45_spill] sm:$0xff] %v2775_v23  ;;  %v2825_v2 = vmul.f32 %v2479_v58, %v2789_v18  ;;  %v2829_v35 = vmul.f32 %v2463_v54, %v2801_v26  ;;  %v2833_v44 = vmul.f32 %v2479_v58, %v2801_v26  ;;  %v2837_v5 = vmul.f32 %v2554_v12, %v2437_v40 }
  0xb9   : > { %3940 = vst [vmem:[#allocation46_spill] sm:$0xff] %v2780_v24  ;;  %v3950_v23 = vstv %s2627_s12  ;;  %v3951_v52 = vstv %s2632_s9 }
  0xba   : > { %3941 = vst [vmem:[#allocation47_spill] sm:$0xff] %v2783_v30  ;;  %v1167_v39 = vpop.permute.xlu0 %1166  ;;  %v1101_v9 = vpop.permute.xlu1 %1100 }
  0xbb   : > { %3942 = vst [vmem:[#allocation48_spill] sm:$0xff] %v2786_v38  ;;  %v1104_v54 = vsel %vm263_vm8, %v2414_v28, %v1101_v9 }
  0xbc   : > { %3943 = vst [vmem:[#allocation49_spill] sm:$0xff] %v2789_v18  ;;  %v1112_v58 = vmul.f32 %v1104_v54, %v2675_v27  ;;  %v1121_v12 = vmul.f32 %v1104_v54, %v2678_v29  ;;  %v2852_v30 = vmul.f32 %v1104_v54, %v2687_v41  ;;  %v1108_v24 = vmul.f32 %v1104_v54, %v3950_v23 }
  0xbd   : > { %3944 = vst [vmem:[#allocation50_spill] sm:$0xff] %v2792_v46  ;;  %v1259_v46 = vrot.slane %v1255_v61, 1  ;;  %v2861_v61 = vmul.f32 %v1104_v54, %v2696_v45  ;;  %v1110_v43 = vmul.f32 %v1104_v54, %v3951_v52  ;;  %v3953_v23 = vstv %s2658_s11  ;;  %s3110_s11 = sld [smem:[#allocation3 + $0xf]] }
  0xbe   : > { %3945 = vst [vmem:[#allocation51_spill] sm:$0xff] %v2795_v31  ;;  %v1260_v31 = vrot.slane %v1256_v7, 1  ;;  %v3949_v7 = vstv %s2623_s26  ;;  %v1116_v51 = vrot.slane %v1112_v58, 1  ;;  %v1125_v50 = vrot.slane %v1121_v12, 1 }
  0xbf   : > { %3946 = vst [vmem:[#allocation52_spill] sm:$0xff] %v2798_v63  ;;  %v1170_v63 = vsel %vm264_vm6, %v2414_v28, %v1167_v39  ;;  %v2858_v39 = vmul.f32 %v1104_v54, %v2693_v32  ;;  %v1106_v9 = vmul.f32 %v1104_v54, %v3949_v7  ;;  %v1134_v6 = vrot.slane %v2852_v30, 1 }
  0xc0   : > { %3947 = vst [vmem:[#allocation53_spill] sm:$0xff] %v2801_v26  ;;  %v1161_v55 = vrot.slane %v2861_v61, 2  ;;  %v1109_v38 = vadd.f32 %v1108_v24, %v2716_v4  ;;  %v2877_v7 = vmul.f32 %v1170_v63, %v3952_v13  ;;  %v2881_v58 = vmul.f32 %v1170_v63, %v3953_v23 }
  0xc1   : > { %3948 = vst [vmem:[#allocation54_spill] sm:$0xff] %v2804_v10  ;;  %v2841_v10 = vmul.f32 %v2556_v14, %v2437_v40  ;;  %v2855_v14 = vmul.f32 %v1104_v54, %v2690_v42  ;;  %v1152_v26 = vrot.slane %v2858_v39, 2  ;;  %v1107_v18 = vadd.f32 %v1106_v9, %v2714_v3 }
  0xc2   : > { %v3954_v12 = vstv %s2667_s13  ;;  %v2891_v39 = vmul.f32 %v1170_v63, %v2621_v37  ;;  %v2894_v3 = vmul.f32 %v1170_v63, %v2638_v48  ;;  %v2897_v52 = vmul.f32 %v1170_v63, %v2649_v53  ;;  %v373_v54 = vpop.permute.xlu0 %372  ;;  %v1103_v13 = vpop.permute.xlu1 %1102  ;;  %s3116_s13 = sld [smem:[#allocation3 + $0x2a]] }
  0xc3   : > { %v1143_v8 = vrot.slane %v2855_v14, 2  ;;  %v2885_v30 = vmul.f32 %v1170_v63, %v3954_v12  ;;  %v2888_v14 = vmul.f32 %v1170_v63, %v2618_v36  ;;  %v1111_v4 = vadd.f32 %v1110_v43, %v1099_v11 }
  0xc4   : > { %v2900_v24 = vmul.f32 %v1170_v63, %v2652_v56  ;;  %v2903_v61 = vmul.f32 %v1170_v63, %v2655_v57  ;;  %v2906_v9 = vsel %vm291_vm1, %v1259_v46, %v1260_v31  ;;  %v377_v23 = vsel %vm263_vm8, %v2414_v28, %v373_v54 }
  0xc5   : > { %v1105_v12 = vsel %vm263_vm8, %v2414_v28, %v1103_v13  ;;  %v1182_v19 = vrot.slane %v2888_v14, 1  ;;  %v1191_v43 = vrot.slane %v2891_v39, 1  ;;  %v2917_v11 = vmul.f32 %v2675_v27, %v377_v23 }
  0xc6   : > { %v2920_v63 = vmul.f32 %v2678_v29, %v377_v23  ;;  %v2923_v46 = vmul.f32 %v2687_v41, %v377_v23  ;;  %v2926_v31 = vmul.f32 %v2690_v42, %v377_v23  ;;  %v2929_v54 = vmul.f32 %v2693_v32, %v377_v23 }
  0xc7   : > { %v2932_v13 = vmul.f32 %v2696_v45, %v377_v23  ;;  %v1113_v14 = vmul.f32 %v1105_v12, %v2675_v27  ;;  %v1122_v39 = vmul.f32 %v1105_v12, %v2678_v29  ;;  %v1131_v23 = vmul.f32 %v1105_v12, %v2687_v41 }
  0xc8   : > { %3955 = vst [vmem:[#allocation55_spill] sm:$0xff] %v2920_v63  ;;  %v1140_v27 = vmul.f32 %v1105_v12, %v2690_v42  ;;  %v1149_v29 = vmul.f32 %v1105_v12, %v2693_v32  ;;  %v1158_v34 = vmul.f32 %v1105_v12, %v2696_v45  ;;  %v1200_v22 = vrot.slane %v2894_v3, 1 }
  0xc9   : > { %3956 = vst [vmem:[#allocation56_spill] sm:$0xff] %v2923_v46  ;;  %v1117_v17 = vrot.slane %v1113_v14, 1  ;;  %v1126_v40 = vrot.slane %v1122_v39, 1  ;;  %v1209_v0 = vrot.slane %v2897_v52, 2  ;;  %v1135_v14 = vrot.slane %v1131_v23, 1 }
  0xca   : > { %3957 = vst [vmem:[#allocation57_spill] sm:$0xff] %v2926_v31  ;;  %v1144_v39 = vrot.slane %v1140_v27, 2  ;;  %v1153_v31 = vrot.slane %v1149_v29, 2  ;;  %v1162_v46 = vrot.slane %v1158_v34, 2  ;;  %v1218_v12 = vrot.slane %v2900_v24, 2 }
  0xcb   : > { %3958 = vst [vmem:[#allocation58_spill] sm:$0xff] %v2929_v54  ;;  %v1118_v25 = vsel %vm291_vm1, %v1116_v51, %v1117_v17  ;;  %v1127_v33 = vsel %vm291_vm1, %v1125_v50, %v1126_v40  ;;  %v1136_v17 = vsel %vm291_vm1, %v1134_v6, %v1135_v14  ;;  %v1269_v14 = vrot.slane %v2825_v2, 1 }
  0xcc   : > { %3959 = vst [vmem:[#allocation59_spill] sm:$0xff] %v2932_v13  ;;  %v1120_v54 = vadd.f32 %v1118_v25, %v1107_v18  ;;  %v1129_v21 = vadd.f32 %v1127_v33, %v1109_v38  ;;  %v1169_v13 = vpop.permute.xlu1 %1168  ;;  %v1145_v40 = vsel %vm344_vm7, %v1143_v8, %v1144_v39  ;;  %v1138_v33 = vadd.f32 %v1136_v17, %v1111_v4 }
  0xcd   : > { %v1171_v63 = vsel %vm264_vm6, %v2414_v28, %v1169_v13  ;;  %v1154_v27 = vsel %vm344_vm7, %v1152_v26, %v1153_v31  ;;  %v1163_v34 = vsel %vm344_vm7, %v1161_v55, %v1162_v46  ;;  %v1277_v39 = vrot.slane %v2829_v35, 1 }
  0xce   : > { %v1179_v50 = vmul.f32 %v1171_v63, %v2618_v36  ;;  %v1188_v25 = vmul.f32 %v1171_v63, %v2621_v37  ;;  %v1147_v51 = vadd.f32 %v1145_v40, %v1120_v54  ;;  %v1156_v29 = vadd.f32 %v1154_v27, %v1129_v21 }
  0xcf   : > { %v1197_v3 = vmul.f32 %v1171_v63, %v2638_v48  ;;  %v1165_v52 = vadd.f32 %v1163_v34, %v1138_v33  ;;  %v1206_v8 = vmul.f32 %v1171_v63, %v2649_v53  ;;  %v1215_v36 = vmul.f32 %v1171_v63, %v2652_v56 }
  0xd0   : > { %v1183_v38 = vrot.slane %v1179_v50, 1  ;;  %v1192_v18 = vrot.slane %v1188_v25, 1  ;;  %v1173_v6 = vadd.f32 %v2877_v7, %v1147_v51  ;;  %v1175_v37 = vadd.f32 %v2881_v58, %v1156_v29  ;;  %v371_v50 = vpop.permute.xlu0 %370  ;;  %v3963_v51 = vld [vmem:[#allocation29_spill] sm:$0xff] }
  0xd1   : > { %v1201_v24 = vrot.slane %v1197_v3, 1  ;;  %v1177_v55 = vadd.f32 %v2885_v30, %v1165_v52  ;;  %v1210_v46 = vrot.slane %v1206_v8, 2  ;;  %v1219_v31 = vrot.slane %v1215_v36, 2  ;;  %v3965_v29 = vld [vmem:[#allocation33_spill] sm:$0xff] }
  0xd2   : > { %v1184_v4 = vsel %vm291_vm1, %v1182_v19, %v1183_v38  ;;  %v1193_v26 = vsel %vm291_vm1, %v1191_v43, %v1192_v18  ;;  %v1224_v7 = vmul.f32 %v1171_v63, %v2655_v57  ;;  %v1227_v53 = vrot.slane %v2903_v61, 2  ;;  %v3966_v38 = vld [vmem:[#allocation32_spill] sm:$0xff] }
  0xd3   : > { %v1186_v21 = vadd.f32 %v1184_v4, %v1173_v6  ;;  %v1195_v48 = vadd.f32 %v1193_v26, %v1175_v37  ;;  %v1202_v54 = vsel %vm291_vm1, %v1200_v22, %v1201_v24  ;;  %v1211_v58 = vsel %vm344_vm7, %v1209_v0, %v1210_v46 }
  0xd4   : > { %v1204_v56 = vadd.f32 %v1202_v54, %v1177_v55  ;;  %v1220_v19 = vsel %vm344_vm7, %v1218_v12, %v1219_v31  ;;  %v1268_v43 = vrot.slane %v2821_v1, 1  ;;  %v1228_v30 = vrot.slane %v1224_v7, 2 }
  0xd5   : > { %v1213_v13 = vadd.f32 %v1211_v58, %v1186_v21  ;;  %v1222_v23 = vadd.f32 %v1220_v19, %v1195_v48  ;;  %v1278_v22 = vrot.slane %v2833_v44, 1  ;;  %v314_v57 = vrot.slane %v2837_v5, 1  ;;  %v3972_v48 = vld [vmem:[#allocation30_spill] sm:$0xff]  ;;  %v3975_v19 = vld [vmem:[#allocation37_spill] sm:$0xff] }
  0xd6   : > { %v324_v61 = vrot.slane %v2841_v10, 1  ;;  %v1229_v63 = vsel %vm344_vm7, %v1227_v53, %v1228_v30  ;;  %v1270_v12 = vsel %vm291_vm1, %v1268_v43, %v1269_v14  ;;  %v3960_v35 = vrot.slane %v2562_v15, 1  ;;  %v3962_v15 = vld [vmem:[#allocation18_spill] sm:$0xff] }
  0xd7   : > { %v1250_v0 = vadd.f32 %v2807_v62, %v1213_v13  ;;  %v1252_v1 = vadd.f32 %v2810_v59, %v1222_v23  ;;  %v1231_v17 = vadd.f32 %v1229_v63, %v1204_v56  ;;  %v1279_v2 = vsel %vm291_vm1, %v1277_v39, %v1278_v22  ;;  %v3976_v13 = vld [vmem:[#allocation39_spill] sm:$0xff] }
  0xd8   : > { %v316_v44 = vsel %vm291_vm1, %v314_v57, %v3960_v35  ;;  %v3961_v5 = vrot.slane %v2566_v16, 1  ;;  %v330_v27 = vmul.f32 %v3963_v51, %v3962_v15  ;;  %v3964_v16 = vld [vmem:[#allocation31_spill] sm:$0xff]  ;;  %v351_v18 = vmul.f32 %v3966_v38, %v3962_v15  ;;  %v3977_v57 = vld [vmem:[#allocation38_spill] sm:$0xff] }
  0xd9   : > { %v2991_v40 = vadd.f32 %v2906_v9, %v1250_v0  ;;  %v2993_v62 = vadd.f32 %v1270_v12, %v1252_v1  ;;  %v318_v59 = vadd.f32 %v316_v44, %v2732_v47  ;;  %v1254_v33 = vadd.f32 %v2813_v60, %v1231_v17  ;;  %v3967_v47 = vld [vmem:[#allocation35_spill] sm:$0xff]  ;;  %v3969_v60 = vld [vmem:[#allocation36_spill] sm:$0xff] }
  0xda   : > { %v326_v10 = vsel %vm291_vm1, %v324_v61, %v3961_v5  ;;  %v340_v34 = vmul.f32 %v3964_v16, %v3962_v15  ;;  %v346_v9 = vrot.slane %v3965_v29, 2  ;;  %v356_v3 = vrot.slane %v3967_v47, 2 }
  0xdb   : > { %v328_v25 = vadd.f32 %v326_v10, %v2737_v49  ;;  %v3968_v49 = vld [vmem:[#allocation34_spill] sm:$0xff]  ;;  %v366_v6 = vrot.slane %v3969_v60, 2  ;;  %v3010_v8 = vadd.f32 %v1279_v2, %v1254_v33  ;;  %v334_v36 = vrot.slane %v330_v27, 1  ;;  %v614_v2 = vpop.permute.xlu2 %613  ;;  %v3981_v27 = vld [vmem:[#allocation56_spill] sm:$0xff] }
  0xdc   : > { %v361_v52 = vmul.f32 %v3968_v49, %v3962_v15  ;;  %v345_v37 = vrot.slane %v340_v34, 2  ;;  %v376_v4 = vsel %vm263_vm8, %v2414_v28, %v371_v50  ;;  %v355_v26 = vrot.slane %v351_v18, 2  ;;  %v3983_v34 = vld [vmem:[#allocation19_spill] sm:$0xff]  ;;  %v3984_v18 = vld [vmem:[#allocation57_spill] sm:$0xff]  ;;  %v3986_v49 = vld [vmem:[#allocation58_spill] sm:$0xff] }
  0xdd   : > { %v3970_v55 = vstv %s2623_s26  ;;  %v3971_v46 = vstv %s2627_s12  ;;  %v3973_v54 = vrot.slane %v3972_v48, 1  ;;  %v3974_v56 = vstv %s2632_s9  ;;  %s3082_s26 = sld [smem:[#allocation3 + $0xc]] }
  0xde   : > { %v365_v24 = vrot.slane %v361_v52, 2  ;;  %v379_v21 = vmul.f32 %v3970_v55, %v376_v4  ;;  %v382_v31 = vmul.f32 %v3971_v46, %v376_v4  ;;  %v347_v53 = vsel %vm344_vm7, %v345_v37, %v346_v9  ;;  %s3088_s12 = sld [smem:[#allocation3 + $0x24]] }
  0xdf   : > { %v336_v7 = vsel %vm291_vm1, %v334_v36, %v3973_v54  ;;  %v385_v58 = vmul.f32 %v3974_v56, %v376_v4  ;;  %v388_v43 = vmul.f32 %v3975_v19, %v376_v4  ;;  %v349_v30 = vadd.f32 %v347_v53, %v318_v59  ;;  %s3095_s9 = sld [smem:[#allocation3 + $0x27]] }
  0xe0   : > { %v338_v23 = vadd.f32 %v336_v7, %v3976_v13  ;;  %v357_v28 = vsel %vm344_vm7, %v355_v26, %v356_v3  ;;  %v367_v14 = vsel %vm344_vm7, %v365_v24, %v366_v6  ;;  %v398_v61 = vmul.f32 %v3977_v57, %v376_v4  ;;  %v1310_v6 = vpop.permute.xlu1 %1309  ;;  %v3989_v26 = vld [vmem:[#allocation48_spill] sm:$0xff]  ;;  %v3992_v7 = vld [vmem:[#allocation59_spill] sm:$0xff]  ;;  %v3995_v13 = vld [vmem:[#allocation53_spill] sm:$0xff] }
  0xe1   : > { %v359_v39 = vadd.f32 %v357_v28, %v328_v25  ;;  %v392_v22 = vrot.slane %v388_v43, 1  ;;  %v408_v63 = vmul.f32 %v2687_v41, %v376_v4  ;;  %v380_v1 = vadd.f32 %v379_v21, %v349_v30  ;;  %v3979_v41 = vld [vmem:[#allocation55_spill] sm:$0xff]  ;;  %v3990_v21 = vld [vmem:[#allocation22_spill] sm:$0xff]  ;;  %v3997_v57 = vld [vmem:[#allocation41_spill] sm:$0xff] }
  0xe2   : > { %v369_v0 = vadd.f32 %v367_v14, %v338_v23  ;;  %v418_v12 = vmul.f32 %v2690_v42, %v376_v4  ;;  %v428_v17 = vmul.f32 %v2693_v32, %v376_v4  ;;  %v3978_v44 = vrot.slane %v2917_v11, 1  ;;  %v3996_v28 = vld [vmem:[#allocation42_spill] sm:$0xff] }
  0xe3   : > { %v383_v35 = vadd.f32 %v382_v31, %v359_v39  ;;  %v402_v10 = vrot.slane %v398_v61, 1  ;;  %v412_v50 = vrot.slane %v408_v63, 1  ;;  %v3980_v51 = vrot.slane %v3979_v41, 1  ;;  %v3991_v31 = vld [vmem:[#allocation49_spill] sm:$0xff] }
  0xe4   : > { %v394_v5 = vsel %vm291_vm1, %v392_v22, %v3978_v44  ;;  %v386_v59 = vadd.f32 %v385_v58, %v369_v0  ;;  %v422_v33 = vrot.slane %v418_v12, 2  ;;  %v432_v15 = vrot.slane %v428_v17, 2  ;;  %v3994_v58 = vld [vmem:[#allocation40_spill] sm:$0xff]  ;;  %v3998_v12 = vld [vmem:[#allocation43_spill] sm:$0xff]  ;;  %v4001_v41 = vld [vmem:[#allocation45_spill] sm:$0xff] }
  0xe5   : > { %v396_v25 = vadd.f32 %v394_v5, %v380_v1  ;;  %v404_v42 = vsel %vm291_vm1, %v402_v10, %v3980_v51  ;;  %v3982_v32 = vrot.slane %v3981_v27, 1  ;;  %v438_v11 = vmul.f32 %v2696_v45, %v376_v4  ;;  %v3988_v4 = vld [vmem:[#allocation20_spill] sm:$0xff]  ;;  %v4000_v10 = vld [vmem:[#allocation46_spill] sm:$0xff] }
  0xe6   : > { %v3048_v29 = vsel %vm263_vm8, %v3983_v34, %v614_v2  ;;  %v406_v9 = vadd.f32 %v404_v42, %v383_v35  ;;  %v3985_v47 = vrot.slane %v3984_v18, 2  ;;  %v3987_v52 = vrot.slane %v3986_v49, 2  ;;  %v3999_v2 = vld [vmem:[#allocation44_spill] sm:$0xff]  ;;  %v4002_v42 = vld [vmem:[#allocation47_spill] sm:$0xff] }
  0xe7   : > { %v414_v16 = vsel %vm291_vm1, %v412_v50, %v3982_v32  ;;  %v442_v45 = vrot.slane %v438_v11, 2  ;;  %v3061_v37 = vsel %vm263_vm8, %v3983_v34, %v1310_v6  ;;  %v554_v24 = vmul.f32 %v3989_v26, %v3988_v4  ;;  %v4003_v11 = vld [vmem:[#allocation51_spill] sm:$0xff] }
  0xe8   : > { %v416_v38 = vadd.f32 %v414_v16, %v386_v59  ;;  %v424_v3 = vsel %vm344_vm7, %v422_v33, %v3985_v47  ;;  %v434_v60 = vsel %vm344_vm7, %v432_v15, %v3987_v52  ;;  %v555_v46 = vmul.f32 %v3989_v26, %v3990_v21  ;;  %v616_v15 = vpop.permute.xlu0 %615  ;;  %v4005_v52 = vld [vmem:[#allocation52_spill] sm:$0xff] }
  0xe9   : > { %v426_v36 = vadd.f32 %v424_v3, %v396_v25  ;;  %v436_v55 = vadd.f32 %v434_v60, %v406_v9  ;;  %v564_v48 = vmul.f32 %v3991_v31, %v3988_v4  ;;  %v565_v54 = vmul.f32 %v3991_v31, %v3990_v21  ;;  %v4004_v3 = vld [vmem:[#allocation50_spill] sm:$0xff] }
  0xea   : > { %v3993_v53 = vrot.slane %v3992_v7, 2  ;;  %v558_v43 = vrot.slane %v554_v24, 1  ;;  %v574_v23 = vmul.f32 %v3995_v13, %v3988_v4  ;;  %v559_v39 = vrot.slane %v555_v46, 1  ;;  %v4006_v46 = vld [vmem:[#allocation54_spill] sm:$0xff] }
  0xeb   : > { %v457_v19 = vadd.f32 %v3994_v58, %v426_v36  ;;  %v460_v14 = vadd.f32 %v3996_v28, %v436_v55  ;;  %v568_v22 = vrot.slane %v564_v48, 1  ;;  %v569_v63 = vrot.slane %v565_v54, 1 }
  0xec   : > { %v444_v56 = vsel %vm344_vm7, %v442_v45, %v3993_v53  ;;  %v575_v0 = vmul.f32 %v3995_v13, %v3990_v21  ;;  %v578_v1 = vrot.slane %v574_v23, 1  ;;  %v560_v44 = vsel %vm291_vm1, %v558_v43, %v559_v39 }
  0xed   : > { %v446_v30 = vadd.f32 %v444_v56, %v416_v38  ;;  %v473_v61 = vadd.f32 %v3997_v57, %v457_v19  ;;  %v483_v35 = vadd.f32 %v3999_v2, %v460_v14  ;;  %v3093_v5 = vstv %s3036_s19  ;;  %s3273_s19 = sld [smem:[#allocation3 + $0x2c]] }
  0xee   : > { %v570_v59 = vsel %vm291_vm1, %v568_v22, %v569_v63  ;;  %v579_v25 = vrot.slane %v575_v0, 1  ;;  %v584_v33 = vmul.f32 %v3093_v5, %v3988_v4  ;;  %v585_v32 = vmul.f32 %v3093_v5, %v3990_v21 }
  0xef   : > { %v463_v17 = vadd.f32 %v3998_v12, %v446_v30  ;;  %v503_v50 = vadd.f32 %v4000_v10, %v473_v61  ;;  %v513_v27 = vadd.f32 %v4002_v42, %v483_v35  ;;  %v3108_v16 = vstv %s3056_s14  ;;  %s3276_s14 = sld [smem:[#allocation3 + $0x47]] }
  0xf0   : > { %v580_v38 = vsel %vm291_vm1, %v578_v1, %v579_v25  ;;  %v588_v18 = vrot.slane %v584_v33, 2  ;;  %v594_v47 = vmul.f32 %v3108_v16, %v3988_v4  ;;  %v589_v6 = vrot.slane %v585_v32, 2 }
  0xf1   : > { %v493_v51 = vadd.f32 %v4001_v41, %v463_v17  ;;  %v546_v9 = vadd.f32 %v4003_v11, %v503_v50  ;;  %v549_v60 = vadd.f32 %v4005_v52, %v513_v27  ;;  %v595_v36 = vmul.f32 %v3108_v16, %v3990_v21 }
  0xf2   : > { %v598_v26 = vrot.slane %v594_v47, 2  ;;  %v3125_v24 = vstv %s3075_s28  ;;  %v3130_v55 = vsel %vm263_vm8, %v3983_v34, %v616_v15  ;;  %v590_v54 = vsel %vm344_vm7, %v588_v18, %v589_v6  ;;  %s3284_s28 = sld [smem:[#allocation3 + $0xb]] }
  0xf3   : > { %v523_v49 = vadd.f32 %v4004_v3, %v493_v51  ;;  %v562_v45 = vadd.f32 %v560_v44, %v546_v9  ;;  %v572_v48 = vadd.f32 %v570_v59, %v549_v60  ;;  %v599_v7 = vrot.slane %v595_v36, 2 }
  0xf4   : > { %v604_v56 = vmul.f32 %v3125_v24, %v3988_v4  ;;  %v605_v58 = vmul.f32 %v3125_v24, %v3990_v21  ;;  %v619_v19 = vstv %s3080_s24  ;;  %v622_v30 = vstv %s3088_s12  ;;  %s3294_s24 = sld [smem:[#allocation3 + $0x26]] }
  0xf5   : > { %v552_v31 = vadd.f32 %v4006_v46, %v523_v49  ;;  %v592_v53 = vadd.f32 %v590_v54, %v562_v45  ;;  %v600_v13 = vsel %vm344_vm7, %v598_v26, %v599_v7  ;;  %v620_v23 = vmul.f32 %v619_v19, %v3048_v29  ;;  %s3312_s12 = sld [smem:[#allocation3 + $0x13]] }
  0xf6   : > { %v602_v28 = vadd.f32 %v600_v13, %v572_v48  ;;  %v608_v14 = vrot.slane %v604_v56, 2  ;;  %v609_v39 = vrot.slane %v605_v58, 2  ;;  %v623_v22 = vmul.f32 %v622_v30, %v3048_v29 }
  0xf7   : > { %v582_v43 = vadd.f32 %v580_v38, %v552_v31  ;;  %v621_v4 = vadd.f32 %v620_v23, %v592_v53  ;;  %v625_v21 = vstv %s3101_s15  ;;  %v3149_v57 = vstv %s3082_s26  ;;  %s3302_s26 = sld [smem:[#allocation3 + $0x41]] }
  0xf8   : > { %v3152_v61 = vstv %s3095_s9  ;;  %v610_v63 = vsel %vm344_vm7, %v608_v14, %v609_v39  ;;  %v624_v0 = vadd.f32 %v623_v22, %v602_v28  ;;  %v626_v1 = vmul.f32 %v625_v21, %v3048_v29  ;;  %s3321_s9 = sld [smem:[#allocation3 + $0x16]] }
  0xf9   : > { %v629_v12 = vmul.f32 %v3149_v57, %v3048_v29  ;;  %v612_v17 = vadd.f32 %v610_v63, %v582_v43  ;;  %v630_v2 = vmul.f32 %v3149_v57, %v3130_v55  ;;  %v639_v35 = vmul.f32 %v3152_v61, %v3048_v29  ;;  %s3328_s15 = sld [smem:[#allocation3 + $0x2e]] }
  0xfa   : > { %v640_v44 = vmul.f32 %v3152_v61, %v3130_v55  ;;  %v3169_v50 = vstv %s3122_s3  ;;  %v3172_v59 = vstv %s3110_s11  ;;  %v3175_v25 = vstv %s3116_s13  ;;  %s3339_s11 = sld [smem:[#allocation3 + $0x31]] }
  0xfb   : > { %v633_v10 = vrot.slane %v629_v12, 1  ;;  %v627_v33 = vadd.f32 %v626_v1, %v612_v17  ;;  %v634_v15 = vrot.slane %v630_v2, 1  ;;  %v643_v41 = vrot.slane %v639_v35, 1  ;;  %v1312_v2 = vpop.permute.xlu2 %1311  ;;  %v4008_v35 = vld [vmem:[#allocation23_spill] sm:$0xff]  ;;  %s3343_s13 = sld [smem:[#allocation3 + $0x49]] }
  0xfc   : > { %v644_v51 = vrot.slane %v640_v44, 1  ;;  %v649_v42 = vmul.f32 %v3169_v50, %v3048_v29  ;;  %v650_v27 = vmul.f32 %v3169_v50, %v3130_v55  ;;  %v659_v32 = vmul.f32 %v3172_v59, %v3048_v29  ;;  %s3348_s3 = sld [smem:[#allocation3 + $0x4c]] }
  0xfd   : > { %v660_v11 = vmul.f32 %v3172_v59, %v3130_v55  ;;  %v635_v9 = vsel %vm291_vm1, %v633_v10, %v634_v15  ;;  %v669_v18 = vmul.f32 %v3175_v25, %v3048_v29  ;;  %v670_v47 = vmul.f32 %v3175_v25, %v3130_v55 }
  0xfe   : > { %v645_v38 = vsel %vm291_vm1, %v643_v41, %v644_v51  ;;  %v637_v3 = vadd.f32 %v635_v9, %v621_v4  ;;  %v653_v52 = vrot.slane %v649_v42, 1  ;;  %v654_v60 = vrot.slane %v650_v27, 1 }
  0xff   : > { %v647_v49 = vadd.f32 %v645_v38, %v624_v0  ;;  %v663_v6 = vrot.slane %v659_v32, 2  ;;  %v664_v36 = vrot.slane %v660_v11, 2  ;;  %v673_v45 = vrot.slane %v669_v18, 2 }
 0x100   : > { %v674_v26 = vrot.slane %v670_v47, 2  ;;  %v655_v46 = vsel %vm291_vm1, %v653_v52, %v654_v60  ;;  %v3193_v31 = vstv %s3154_s16  ;;  %v3197_v48 = vmul.f32 %v3061_v37, %v3149_v57  ;;  %s3440_s16 = sld [smem:[#allocation3 + $0x19]] }
 0x101   : > { %v3201_v54 = vmul.f32 %v3061_v37, %v3152_v61  ;;  %v657_v7 = vadd.f32 %v655_v46, %v627_v33  ;;  %v665_v53 = vsel %vm344_vm7, %v663_v6, %v664_v36  ;;  %v679_v58 = vmul.f32 %v3193_v31, %v3048_v29 }
 0x102   : > { %v675_v56 = vsel %vm344_vm7, %v673_v45, %v674_v26  ;;  %v3207_v43 = vadd.f32 %v665_v53, %v637_v3  ;;  %v680_v23 = vmul.f32 %v3193_v31, %v3130_v55  ;;  %v1325_v28 = vrot.slane %v3197_v48, 1  ;;  %v4007_v55 = vld [vmem:[#allocation21_spill] sm:$0xff] }
 0x103   : > { %v3209_v13 = vadd.f32 %v675_v56, %v647_v49  ;;  %v683_v14 = vrot.slane %v679_v58, 2  ;;  %v1334_v39 = vrot.slane %v3201_v54, 1  ;;  %v1339_v22 = vmul.f32 %v3061_v37, %v3169_v50 }
 0x104   : > { %v1348_v4 = vmul.f32 %v3061_v37, %v3172_v59  ;;  %v684_v63 = vrot.slane %v680_v23, 2  ;;  %v3221_v29 = vmul.f32 %v3061_v37, %v3175_v25  ;;  %v3225_v0 = vmul.f32 %v3061_v37, %v3193_v31 }
 0x105   : > { %v1282_v1 = vmul.f32 %v4007_v55, %v3093_v5  ;;  %v1343_v12 = vrot.slane %v1339_v22, 1  ;;  %v1283_v44 = vmul.f32 %v4008_v35, %v3093_v5  ;;  %v1291_v10 = vmul.f32 %v4007_v55, %v3108_v16 }
 0x106   : > { %v1352_v17 = vrot.slane %v1348_v4, 2  ;;  %v685_v33 = vsel %vm344_vm7, %v683_v14, %v684_v63  ;;  %v1361_v15 = vrot.slane %v3221_v29, 2  ;;  %v1370_v41 = vrot.slane %v3225_v0, 2 }
 0x107   : > { %v1286_v51 = vrot.slane %v1282_v1, 2  ;;  %v3236_v42 = vadd.f32 %v685_v33, %v657_v7  ;;  %v1287_v27 = vrot.slane %v1283_v44, 2  ;;  %v1292_v32 = vmul.f32 %v4008_v35, %v3108_v16  ;;  %v691_v7 = vpop.permute.xlu1 %690  ;;  %v1376_v44 = vpop.permute.xlu2 %1375 }
 0x108   : > { %v1295_v11 = vrot.slane %v1291_v10, 2  ;;  %v1300_v5 = vmul.f32 %v4007_v55, %v3125_v24  ;;  %v1301_v9 = vmul.f32 %v4008_v35, %v3125_v24  ;;  %v1314_v38 = vsel %vm263_vm8, %v3983_v34, %v1312_v2  ;;  %v689_v35 = vpop.permute.xlu0 %688 }
 0x109   : > { %v1315_v18 = vmul.f32 %v3061_v37, %v619_v19  ;;  %v1288_v47 = vsel %vm344_vm7, %v1286_v51, %v1287_v27  ;;  %v1296_v3 = vrot.slane %v1292_v32, 2  ;;  %v1317_v16 = vmul.f32 %v3061_v37, %v622_v30 }
 0x10a   : > { %v1319_v49 = vmul.f32 %v3061_v37, %v625_v21  ;;  %v1290_v24 = vadd.f32 %v1288_v47, %v2991_v40  ;;  %v1304_v52 = vrot.slane %v1300_v5, 2  ;;  %v1305_v60 = vrot.slane %v1301_v9, 2 }
 0x10b   : > { %v1322_v6 = vmul.f32 %v1314_v38, %v3149_v57  ;;  %v1297_v19 = vsel %vm344_vm7, %v1295_v11, %v1296_v3  ;;  %v1331_v36 = vmul.f32 %v1314_v38, %v3152_v61  ;;  %v1340_v45 = vmul.f32 %v1314_v38, %v3169_v50 }
 0x10c   : > { %v1349_v30 = vmul.f32 %v1314_v38, %v3172_v59  ;;  %v1299_v37 = vadd.f32 %v1297_v19, %v2993_v62  ;;  %v1306_v40 = vsel %vm344_vm7, %v1304_v52, %v1305_v60  ;;  %v1316_v21 = vadd.f32 %v1315_v18, %v1290_v24 }
 0x10d   : > { %v1326_v26 = vrot.slane %v1322_v6, 1  ;;  %v1308_v57 = vadd.f32 %v1306_v40, %v3010_v8  ;;  %v1335_v46 = vrot.slane %v1331_v36, 1  ;;  %v1344_v48 = vrot.slane %v1340_v45, 1 }
 0x10e   : > { %v1353_v54 = vrot.slane %v1349_v30, 2  ;;  %v1318_v61 = vadd.f32 %v1317_v16, %v1299_v37  ;;  %v1358_v59 = vmul.f32 %v1314_v38, %v3175_v25  ;;  %v1367_v62 = vmul.f32 %v1314_v38, %v3193_v31 }
 0x10f   : > { %v1327_v50 = vsel %vm291_vm1, %v1325_v28, %v1326_v26  ;;  %v1320_v53 = vadd.f32 %v1319_v49, %v1308_v57  ;;  %v1336_v58 = vsel %vm291_vm1, %v1334_v39, %v1335_v46  ;;  %v1345_v8 = vsel %vm291_vm1, %v1343_v12, %v1344_v48 }
 0x110   : > { %v1329_v56 = vadd.f32 %v1327_v50, %v1316_v21  ;;  %v1338_v23 = vadd.f32 %v1336_v58, %v1318_v61  ;;  %v1354_v14 = vsel %vm344_vm7, %v1352_v17, %v1353_v54  ;;  %v1362_v22 = vrot.slane %v1358_v59, 2 }
 0x111   : > { %v1371_v4 = vrot.slane %v1367_v62, 2  ;;  %v1347_v28 = vadd.f32 %v1345_v8, %v1320_v53  ;;  %v693_v31 = vsel %vm264_vm6, %v3983_v34, %v691_v7  ;;  %v3292_v63 = vstv %s3250_s7  ;;  %v1378_v8 = vpop.permute.xlu0 %1377  ;;  %s3442_s7 = sld [smem:[#allocation3 + $0x34]] }
 0x112   : > { %v3286_v25 = vadd.f32 %v1354_v14, %v1329_v56  ;;  %v1363_v39 = vsel %vm344_vm7, %v1361_v15, %v1362_v22  ;;  %v705_v0 = vmul.f32 %v3292_v63, %v693_v31  ;;  %v3300_v55 = vstv %s3263_s17  ;;  %v4009_v22 = vld [vmem:[#allocation25_spill] sm:$0xff]  ;;  %s3469_s17 = sld [smem:[#allocation3 + $0x12]] }
 0x113   : > { %v1372_v29 = vsel %vm344_vm7, %v1370_v41, %v1371_v4  ;;  %v3304_v1 = vadd.f32 %v1363_v39, %v1338_v23  ;;  %v715_v17 = vmul.f32 %v3300_v55, %v693_v31  ;;  %v3310_v2 = vstv %s3269_s25  ;;  %s3479_s25 = sld [smem:[#allocation3 + $0x2d]] }
 0x114   : > { %v3306_v12 = vadd.f32 %v1372_v29, %v1347_v28  ;;  %v709_v10 = vrot.slane %v705_v0, 1  ;;  %v725_v33 = vmul.f32 %v3310_v2, %v693_v31  ;;  %v3316_v15 = vstv %s3259_s18  ;;  %s3461_s18 = sld [smem:[#allocation3 + $0x4f]] }
 0x115   : > { %v3319_v41 = vstv %s3273_s19  ;;  %v719_v51 = vrot.slane %v715_v17, 1  ;;  %v735_v27 = vmul.f32 %v3316_v15, %v693_v31  ;;  %v3326_v11 = vstv %s3276_s14  ;;  %s3485_s19 = sld [smem:[#allocation3 + $0x15]] }
 0x116   : > { %v745_v32 = vmul.f32 %v3319_v41, %v693_v31  ;;  %v729_v5 = vrot.slane %v725_v33, 1  ;;  %v755_v9 = vmul.f32 %v3326_v11, %v693_v31  ;;  %v692_v38 = vsel %vm264_vm6, %v3983_v34, %v689_v35  ;;  %s3489_s14 = sld [smem:[#allocation3 + $0x48]] }
 0x117   : > { %v3337_v18 = vsel %vm264_vm6, %v3983_v34, %v1376_v44  ;;  %v739_v47 = vrot.slane %v735_v27, 2  ;;  %v704_v16 = vmul.f32 %v3292_v63, %v692_v38  ;;  %v714_v49 = vmul.f32 %v3300_v55, %v692_v38 }
 0x118   : > { %v749_v3 = vrot.slane %v745_v32, 2  ;;  %v759_v24 = vrot.slane %v755_v9, 2  ;;  %v724_v52 = vmul.f32 %v3310_v2, %v692_v38  ;;  %v734_v60 = vmul.f32 %v3316_v15, %v692_v38 }
 0x119   : > { %v744_v6 = vmul.f32 %v3319_v41, %v692_v38  ;;  %v708_v19 = vrot.slane %v704_v16, 1  ;;  %v718_v36 = vrot.slane %v714_v49, 1  ;;  %v754_v45 = vmul.f32 %v3326_v11, %v692_v38 }
 0x11a   : > { %v694_v30 = vstv %s3284_s28  ;;  %v728_v37 = vrot.slane %v724_v52, 1  ;;  %v738_v40 = vrot.slane %v734_v60, 2  ;;  %v697_v54 = vstv %s3294_s24  ;;  %s3499_s28 = sld [smem:[#allocation3 + $0x30]] }
 0x11b   : > { %v748_v21 = vrot.slane %v744_v6, 2  ;;  %v695_v26 = vmul.f32 %v694_v30, %v692_v38  ;;  %v710_v57 = vsel %vm291_vm1, %v708_v19, %v709_v10  ;;  %v720_v46 = vsel %vm291_vm1, %v718_v36, %v719_v51  ;;  %s3506_s24 = sld [smem:[#allocation3 + $0x4b]] }
 0x11c   : > { %v758_v48 = vrot.slane %v754_v45, 2  ;;  %v730_v61 = vsel %vm291_vm1, %v728_v37, %v729_v5  ;;  %v3357_v50 = vsel %vm344_vm7, %v738_v40, %v739_v47  ;;  %v698_v53 = vmul.f32 %v697_v54, %v692_v38 }
 0x11d   : > { %v3360_v59 = vsel %vm344_vm7, %v748_v21, %v749_v3  ;;  %v696_v62 = vadd.f32 %v695_v26, %v3207_v43  ;;  %v700_v56 = vstv %s3302_s26  ;;  %v783_v58 = vstv %s3312_s12  ;;  %s3513_s26 = sld [smem:[#allocation3 + $0x18]] }
 0x11e   : > { %v3364_v7 = vsel %vm344_vm7, %v758_v48, %v759_v24  ;;  %v701_v23 = vmul.f32 %v700_v56, %v692_v38  ;;  %v3371_v4 = vmul.f32 %v783_v58, %v4009_v22  ;;  %v786_v28 = vstv %s3328_s15  ;;  %s3525_s12 = sld [smem:[#allocation3 + $0x33]] }
 0x11f   : > { %v3368_v14 = vadd.f32 %v710_v57, %v696_v62  ;;  %v699_v31 = vadd.f32 %v698_v53, %v3209_v13  ;;  %v3376_v43 = vmul.f32 %v786_v28, %v4009_v22  ;;  %v789_v39 = vstv %s3343_s13  ;;  %s3630_s15 = sld [smem:[#allocation3 + $0x14]] }
 0x120   : > { %v3380_v29 = vstv %s3321_s9  ;;  %v702_v0 = vadd.f32 %v701_v23, %v3236_v42  ;;  %v3384_v17 = vmul.f32 %v789_v39, %v4009_v22  ;;  %v3387_v35 = vstv %s3339_s11  ;;  %s3531_s9 = sld [smem:[#allocation3 + $0x4e]] }
 0x121   : > { %v3390_v44 = vstv %s3348_s3  ;;  %v3392_v10 = vadd.f32 %v720_v46, %v699_v31  ;;  %v1380_v13 = vsel %vm264_vm6, %v3983_v34, %v1378_v8  ;;  %v1381_v33 = vmul.f32 %v3337_v18, %v694_v30  ;;  %v4010_v46 = vld [vmem:[#allocation27_spill] sm:$0xff]  ;;  %s3636_s11 = sld [smem:[#allocation3 + $0x2f]] }
 0x122   : > { %v1383_v51 = vmul.f32 %v3337_v18, %v697_v54  ;;  %v3399_v27 = vadd.f32 %v730_v61, %v702_v0  ;;  %v1385_v42 = vmul.f32 %v3337_v18, %v700_v56  ;;  %v1387_v32 = vmul.f32 %v3337_v18, %v3292_v63  ;;  %s3641_s13 = sld [smem:[#allocation3 + $0x4a]] }
 0x123   : > { %v1388_v5 = vmul.f32 %v1380_v13, %v3292_v63  ;;  %v1382_v9 = vadd.f32 %v1381_v33, %v3286_v25  ;;  %v1396_v34 = vmul.f32 %v3337_v18, %v3300_v55  ;;  %v1397_v47 = vmul.f32 %v1380_v13, %v3300_v55  ;;  %s3645_s3 = sld [smem:[#allocation3 + $0x17]] }
 0x124   : > { %v1384_v38 = vadd.f32 %v1383_v51, %v3304_v1  ;;  %v1386_v3 = vadd.f32 %v1385_v42, %v3306_v12  ;;  %v1391_v16 = vrot.slane %v1387_v32, 1  ;;  %v1405_v24 = vmul.f32 %v3337_v18, %v3310_v2  ;;  %v853_v42 = vpop.permute.xlu1 %852 }
 0x125   : > { %v1392_v49 = vrot.slane %v1388_v5, 1  ;;  %v1400_v52 = vrot.slane %v1396_v34, 1  ;;  %v1401_v60 = vrot.slane %v1397_v47, 1  ;;  %v1406_v63 = vmul.f32 %v1380_v13, %v3310_v2 }
 0x126   : > { %v1414_v25 = vmul.f32 %v3337_v18, %v3316_v15  ;;  %v1409_v6 = vrot.slane %v1405_v24, 1  ;;  %v1415_v19 = vmul.f32 %v1380_v13, %v3316_v15  ;;  %v1423_v55 = vmul.f32 %v3337_v18, %v3319_v41  ;;  %v4012_v24 = vld [vmem:[#allocation24_spill] sm:$0xff] }
 0x127   : > { %v1393_v1 = vsel %vm291_vm1, %v1391_v16, %v1392_v49  ;;  %v1402_v36 = vsel %vm291_vm1, %v1400_v52, %v1401_v60  ;;  %v1410_v45 = vrot.slane %v1406_v63, 1  ;;  %v1424_v2 = vmul.f32 %v1380_v13, %v3319_v41 }
 0x128   : > { %v1395_v12 = vadd.f32 %v1393_v1, %v1382_v9  ;;  %v1418_v30 = vrot.slane %v1414_v25, 2  ;;  %v1404_v37 = vadd.f32 %v1402_v36, %v1384_v38  ;;  %v1419_v40 = vrot.slane %v1415_v19, 2 }
 0x129   : > { %v1427_v21 = vrot.slane %v1423_v55, 2  ;;  %v1411_v26 = vsel %vm291_vm1, %v1409_v6, %v1410_v45  ;;  %v1432_v57 = vmul.f32 %v3337_v18, %v3326_v11  ;;  %v1433_v15 = vmul.f32 %v1380_v13, %v3326_v11  ;;  %v4011_v11 = vld [vmem:[#allocation28_spill] sm:$0xff]  ;;  %v4013_v45 = vld [vmem:[#allocation26_spill] sm:$0xff] }
 0x12a   : > { %v1458_v48 = vmul.f32 %v4010_v46, %v783_v58  ;;  %v1413_v54 = vadd.f32 %v1411_v26, %v1386_v3  ;;  %v1420_v61 = vsel %vm344_vm7, %v1418_v30, %v1419_v40  ;;  %v1428_v62 = vrot.slane %v1424_v2, 2 }
 0x12b   : > { %v1460_v53 = vmul.f32 %v4010_v46, %v786_v28  ;;  %v1422_v56 = vadd.f32 %v1420_v61, %v1395_v12  ;;  %v1436_v8 = vrot.slane %v1432_v57, 2  ;;  %v1437_v23 = vrot.slane %v1433_v15, 2  ;;  %v855_v57 = vpop.permute.xlu2 %854 }
 0x12c   : > { %v1462_v41 = vmul.f32 %v4010_v46, %v789_v39  ;;  %v1429_v31 = vsel %vm344_vm7, %v1427_v21, %v1428_v62  ;;  %v1464_v18 = vmul.f32 %v4010_v46, %v3380_v29  ;;  %v1465_v0 = vmul.f32 %v4011_v11, %v3380_v29 }
 0x12d   : > { %v1473_v58 = vmul.f32 %v4010_v46, %v3387_v35  ;;  %v1431_v13 = vadd.f32 %v1429_v31, %v1404_v37  ;;  %v1438_v33 = vsel %vm344_vm7, %v1436_v8, %v1437_v23  ;;  %v1459_v28 = vadd.f32 %v1458_v48, %v1422_v56 }
 0x12e   : > { %v1474_v51 = vmul.f32 %v4011_v11, %v3387_v35  ;;  %v1440_v39 = vadd.f32 %v1438_v33, %v1413_v54  ;;  %v1468_v32 = vrot.slane %v1464_v18, 1  ;;  %v1469_v5 = vrot.slane %v1465_v0, 1 }
 0x12f   : > { %v1477_v9 = vrot.slane %v1473_v58, 1  ;;  %v1461_v38 = vadd.f32 %v1460_v53, %v1431_v13  ;;  %v1482_v47 = vmul.f32 %v4010_v46, %v3390_v44  ;;  %v1483_v3 = vmul.f32 %v4011_v11, %v3390_v44 }
 0x130   : > { %v1478_v34 = vrot.slane %v1474_v51, 1  ;;  %v1463_v16 = vadd.f32 %v1462_v41, %v1440_v39  ;;  %v1470_v49 = vsel %vm291_vm1, %v1468_v32, %v1469_v5  ;;  %v3452_v52 = vsel %vm263_vm8, %v4012_v24, %v853_v42 }
 0x131   : > { %v742_v60 = vadd.f32 %v3357_v50, %v3368_v14  ;;  %v3456_v63 = vadd.f32 %v1470_v49, %v1459_v28  ;;  %v1486_v1 = vrot.slane %v1482_v47, 1  ;;  %v1487_v6 = vrot.slane %v1483_v3, 1 }
 0x132   : > { %v1479_v25 = vsel %vm291_vm1, %v1477_v9, %v1478_v34  ;;  %v752_v55 = vadd.f32 %v3360_v59, %v3392_v10  ;;  %v762_v12 = vadd.f32 %v3364_v7, %v3399_v27  ;;  %v793_v14 = vmul.f32 %v3380_v29, %v4009_v22 }
 0x133   : > { %v3459_v19 = vadd.f32 %v1479_v25, %v1461_v38  ;;  %v785_v36 = vadd.f32 %v3371_v4, %v742_v60  ;;  %v1488_v50 = vsel %vm291_vm1, %v1486_v1, %v1487_v6  ;;  %v794_v30 = vmul.f32 %v3380_v29, %v4013_v45 }
 0x134   : > { %v803_v59 = vmul.f32 %v3387_v35, %v4009_v22  ;;  %v3477_v10 = vadd.f32 %v1488_v50, %v1463_v16  ;;  %v788_v7 = vadd.f32 %v3376_v43, %v752_v55  ;;  %v791_v4 = vadd.f32 %v3384_v17, %v762_v12 }
 0x135   : > { %v804_v27 = vmul.f32 %v3387_v35, %v4013_v45  ;;  %v797_v37 = vrot.slane %v793_v14, 1  ;;  %v798_v40 = vrot.slane %v794_v30, 1  ;;  %v813_v2 = vmul.f32 %v3390_v44, %v4009_v22 }
 0x136   : > { %v807_v29 = vrot.slane %v803_v59, 1  ;;  %v814_v26 = vmul.f32 %v3390_v44, %v4013_v45  ;;  %v3494_v43 = vstv %s3440_s16  ;;  %v3497_v17 = vstv %s3442_s7  ;;  %s3649_s16 = sld [smem:[#allocation3 + $0x32]] }
 0x137   : > { %v808_v21 = vrot.slane %v804_v27, 1  ;;  %v799_v35 = vsel %vm291_vm1, %v797_v37, %v798_v40  ;;  %v817_v15 = vrot.slane %v813_v2, 1  ;;  %v823_v48 = vmul.f32 %v3494_v43, %v4009_v22  ;;  %s3654_s7 = sld [smem:[#allocation3 + $0x1a]] }
 0x138   : > { %v824_v54 = vmul.f32 %v3494_v43, %v4013_v45  ;;  %v801_v44 = vadd.f32 %v799_v35, %v785_v36  ;;  %v818_v62 = vrot.slane %v814_v26, 1  ;;  %v833_v53 = vmul.f32 %v3497_v17, %v4009_v22 }
 0x139   : > { %v809_v61 = vsel %vm291_vm1, %v807_v29, %v808_v21  ;;  %v827_v8 = vrot.slane %v823_v48, 2  ;;  %v834_v41 = vmul.f32 %v3497_v17, %v4013_v45  ;;  %v3517_v0 = vstv %s3461_s18  ;;  %s3658_s18 = sld [smem:[#allocation3 + $0x4d]] }
 0x13a   : > { %v811_v56 = vadd.f32 %v809_v61, %v788_v7  ;;  %v828_v23 = vrot.slane %v824_v54, 2  ;;  %v819_v31 = vsel %vm291_vm1, %v817_v15, %v818_v62  ;;  %v837_v18 = vrot.slane %v833_v53, 2 }
 0x13b   : > { %v857_v58 = vsel %vm263_vm8, %v4012_v24, %v855_v57  ;;  %v821_v13 = vadd.f32 %v819_v31, %v791_v4  ;;  %v838_v28 = vrot.slane %v834_v41, 2  ;;  %v843_v51 = vmul.f32 %v3517_v0, %v4009_v22 }
 0x13c   : > { %v829_v33 = vsel %vm344_vm7, %v827_v8, %v828_v23  ;;  %v844_v39 = vmul.f32 %v3517_v0, %v4013_v45  ;;  %v858_v32 = vstv %s3469_s17  ;;  %v861_v5 = vstv %s3479_s25  ;;  %s3672_s17 = sld [smem:[#allocation3 + $0x35]] }
 0x13d   : > { %v831_v42 = vadd.f32 %v829_v33, %v801_v44  ;;  %v839_v9 = vsel %vm344_vm7, %v837_v18, %v838_v28  ;;  %v847_v38 = vrot.slane %v843_v51, 2  ;;  %v859_v34 = vmul.f32 %v858_v32, %v3452_v52  ;;  %s3683_s25 = sld [smem:[#allocation3 + $0x50]] }
 0x13e   : > { %v862_v22 = vmul.f32 %v861_v5, %v3452_v52  ;;  %v841_v47 = vadd.f32 %v839_v9, %v811_v56  ;;  %v848_v3 = vrot.slane %v844_v39, 2  ;;  %v864_v16 = vstv %s3489_s14  ;;  %s3698_s14 = sld [smem:[#allocation4 + $0x1]] }
 0x13f   : > { %v3542_v49 = vstv %s3485_s19  ;;  %v860_v60 = vadd.f32 %v859_v34, %v831_v42  ;;  %v865_v25 = vmul.f32 %v864_v16, %v3452_v52  ;;  %v3552_v36 = vstv %s3499_s28  ;;  %s3691_s19 = sld [smem:[#allocation4]] }
 0x140   : > { %v868_v1 = vmul.f32 %v3542_v49, %v3452_v52  ;;  %v869_v6 = vmul.f32 %v3542_v49, %v857_v58  ;;  %v849_v55 = vsel %vm344_vm7, %v847_v38, %v848_v3  ;;  %v863_v12 = vadd.f32 %v862_v22, %v841_v47  ;;  %s3702_s28 = sld [smem:[#allocation4 + $0x2]] }
 0x141   : > { %v3555_v50 = vstv %s3506_s24  ;;  %v851_v14 = vadd.f32 %v849_v55, %v821_v13  ;;  %v878_v59 = vmul.f32 %v3552_v36, %v3452_v52  ;;  %v879_v7 = vmul.f32 %v3552_v36, %v857_v58  ;;  %v1519_v13 = vpop.permute.xlu0 %1518  ;;  %s3726_s24 = smul.u32 48, %s169_s10 }
 0x142   : > { %v872_v45 = vrot.slane %v868_v1, 1  ;;  %v873_v30 = vrot.slane %v869_v6, 1  ;;  %v888_v4 = vmul.f32 %v3555_v50, %v3452_v52  ;;  %v889_v27 = vmul.f32 %v3555_v50, %v857_v58 }
 0x143   : > { %v3564_v37 = vstv %s3513_s26  ;;  %v866_v40 = vadd.f32 %v865_v25, %v851_v14  ;;  %v882_v2 = vrot.slane %v878_v59, 1  ;;  %v883_v57 = vrot.slane %v879_v7, 1  ;;  %s3754_s26 = scalar_lea.vmem [#allocation9], %s3726_s24 }
 0x144   : > { %v874_v29 = vsel %vm291_vm1, %v872_v45, %v873_v30  ;;  %v898_v21 = vmul.f32 %v3564_v37, %v3452_v52  ;;  %v892_v35 = vrot.slane %v888_v4, 1  ;;  %v893_v15 = vrot.slane %v889_v27, 1 }
 0x145   : > { %v876_v26 = vadd.f32 %v874_v29, %v860_v60  ;;  %v899_v48 = vmul.f32 %v3564_v37, %v857_v58  ;;  %v3571_v44 = vstv %s3525_s12  ;;  %v3574_v61 = vstv %s3531_s9  ;;  %s1660_s12 = scalar_lea.sflag [#allocation8], %s169_s10 }
 0x146   : > { %v902_v54 = vrot.slane %v898_v21, 2  ;;  %v884_v62 = vsel %vm291_vm1, %v882_v2, %v883_v57  ;;  %v894_v53 = vsel %vm291_vm1, %v892_v35, %v893_v15  ;;  %v908_v56 = vmul.f32 %v3571_v44, %v3452_v52 }
 0x147   : > { %v909_v8 = vmul.f32 %v3571_v44, %v857_v58  ;;  %v886_v23 = vadd.f32 %v884_v62, %v863_v12  ;;  %v896_v41 = vadd.f32 %v894_v53, %v866_v40  ;;  %v903_v31 = vrot.slane %v899_v48, 2 }
 0x148   : > { %v918_v18 = vmul.f32 %v3574_v61, %v3452_v52  ;;  %v912_v33 = vrot.slane %v908_v56, 2  ;;  %v919_v51 = vmul.f32 %v3574_v61, %v857_v58  ;;  %v3587_v42 = vsel %vm263_vm8, %v4012_v24, %v1519_v13  ;;  %v1521_v58 = vpop.permute.xlu1 %1520 }
 0x149   : > { %v913_v28 = vrot.slane %v909_v8, 2  ;;  %v904_v39 = vsel %vm344_vm7, %v902_v54, %v903_v31  ;;  %v1491_v38 = vmul.f32 %v4010_v46, %v3494_v43  ;;  %v1492_v34 = vmul.f32 %v4011_v11, %v3494_v43  ;;  %v930_v13 = vpop.permute.xlu0 %929 }
 0x14a   : > { %v922_v9 = vrot.slane %v918_v18, 2  ;;  %v3594_v52 = vadd.f32 %v904_v39, %v876_v26  ;;  %v923_v47 = vrot.slane %v919_v51, 2  ;;  %v1500_v3 = vmul.f32 %v4010_v46, %v3497_v17  ;;  %v928_v18 = vpop.permute.xlu2 %927 }
 0x14b   : > { %v914_v22 = vsel %vm344_vm7, %v912_v33, %v913_v28  ;;  %v1495_v25 = vrot.slane %v1491_v38, 2  ;;  %v1496_v1 = vrot.slane %v1492_v34, 2  ;;  %v1501_v6 = vmul.f32 %v4011_v11, %v3497_v17 }
 0x14c   : > { %v3599_v60 = vadd.f32 %v914_v22, %v886_v23  ;;  %v924_v43 = vsel %vm344_vm7, %v922_v9, %v923_v47  ;;  %v1504_v55 = vrot.slane %v1500_v3, 2  ;;  %v1509_v12 = vmul.f32 %v4010_v46, %v3517_v0 }
 0x14d   : > { %v1510_v14 = vmul.f32 %v4011_v11, %v3517_v0  ;;  %v3608_v45 = vadd.f32 %v924_v43, %v896_v41  ;;  %v1497_v30 = vsel %vm344_vm7, %v1495_v25, %v1496_v1  ;;  %v1505_v59 = vrot.slane %v1501_v6, 2 }
 0x14e   : > { %v1523_v7 = vsel %vm263_vm8, %v4012_v24, %v1521_v58  ;;  %v1499_v17 = vadd.f32 %v1497_v30, %v3456_v63  ;;  %v1513_v4 = vrot.slane %v1509_v12, 2  ;;  %v1524_v40 = vmul.f32 %v3587_v42, %v858_v32 }
 0x14f   : > { %v1514_v27 = vrot.slane %v1510_v14, 2  ;;  %v1506_v46 = vsel %vm344_vm7, %v1504_v55, %v1505_v59  ;;  %v1526_v11 = vmul.f32 %v3587_v42, %v861_v5  ;;  %v1528_v0 = vmul.f32 %v3587_v42, %v864_v16 }
 0x150   : > { %v1530_v29 = vmul.f32 %v3587_v42, %v3542_v49  ;;  %v1508_v2 = vadd.f32 %v1506_v46, %v3459_v19  ;;  %v1525_v21 = vadd.f32 %v1524_v40, %v1499_v17  ;;  %v1531_v26 = vmul.f32 %v1523_v7, %v3542_v49 }
 0x151   : > { %v1515_v63 = vsel %vm344_vm7, %v1513_v4, %v1514_v27  ;;  %v1539_v5 = vmul.f32 %v3587_v42, %v3552_v36  ;;  %v1540_v16 = vmul.f32 %v1523_v7, %v3552_v36  ;;  %v1548_v19 = vmul.f32 %v3587_v42, %v3555_v50 }
 0x152   : > { %v1517_v32 = vadd.f32 %v1515_v63, %v3477_v10  ;;  %v1534_v57 = vrot.slane %v1530_v29, 1  ;;  %v1527_v35 = vadd.f32 %v1526_v11, %v1508_v2  ;;  %v1535_v15 = vrot.slane %v1531_v26, 1 }
 0x153   : > { %v1549_v48 = vmul.f32 %v1523_v7, %v3555_v50  ;;  %v1543_v54 = vrot.slane %v1539_v5, 1  ;;  %v1544_v10 = vrot.slane %v1540_v16, 1  ;;  %v1557_v62 = vmul.f32 %v3587_v42, %v3564_v37 }
 0x154   : > { %v1529_v49 = vadd.f32 %v1528_v0, %v1517_v32  ;;  %v1536_v36 = vsel %vm291_vm1, %v1534_v57, %v1535_v15  ;;  %v1552_v53 = vrot.slane %v1548_v19, 1  ;;  %v1558_v8 = vmul.f32 %v1523_v7, %v3564_v37 }
 0x155   : > { %v1553_v56 = vrot.slane %v1549_v48, 1  ;;  %v1538_v23 = vadd.f32 %v1536_v36, %v1525_v21  ;;  %v1545_v50 = vsel %vm291_vm1, %v1543_v54, %v1544_v10  ;;  %v1561_v41 = vrot.slane %v1557_v62, 2 }
 0x156   : > { %v1566_v31 = vmul.f32 %v3587_v42, %v3571_v44  ;;  %v1547_v33 = vadd.f32 %v1545_v50, %v1527_v35  ;;  %v1562_v51 = vrot.slane %v1558_v8, 2  ;;  %v1567_v37 = vmul.f32 %v1523_v7, %v3571_v44 }
 0x157   : > { %v1554_v28 = vsel %vm291_vm1, %v1552_v53, %v1553_v56  ;;  %v1575_v38 = vmul.f32 %v3587_v42, %v3574_v61  ;;  %v1576_v34 = vmul.f32 %v1523_v7, %v3574_v61  ;;  %v931_v44 = vsel %vm264_vm6, %v4012_v24, %v928_v18 }
 0x158   : > { %v1556_v39 = vadd.f32 %v1554_v28, %v1529_v49  ;;  %v1570_v9 = vrot.slane %v1566_v31, 2  ;;  %v1563_v22 = vsel %vm344_vm7, %v1561_v41, %v1562_v51  ;;  %v1571_v47 = vrot.slane %v1567_v37, 2 }
 0x159   : > { %v932_v58 = vsel %vm264_vm6, %v4012_v24, %v930_v13  ;;  %v3670_v3 = vadd.f32 %v1563_v22, %v1538_v23  ;;  %v1579_v25 = vrot.slane %v1575_v38, 2  ;;  %v1580_v42 = vrot.slane %v1576_v34, 2  ;;  %v1585_v23 = vpop.permute.xlu1 %1584  ;;  %v1587_v13 = vpop.permute.xlu2 %1586 }
 0x15a   : > { %v933_v61 = vstv %s3630_s15  ;;  %v1572_v1 = vsel %vm344_vm7, %v1570_v9, %v1571_v47  ;;  %v936_v43 = vstv %s3636_s11  ;;  %v939_v55 = vstv %s3641_s13 }
 0x15b   : > { %v934_v6 = vmul.f32 %v933_v61, %v931_v44  ;;  %v3680_v12 = vadd.f32 %v1572_v1, %v1547_v33  ;;  %v1581_v14 = vsel %vm344_vm7, %v1579_v25, %v1580_v42  ;;  %v937_v30 = vmul.f32 %v936_v43, %v931_v44 }
 0x15c   : > { %v940_v59 = vmul.f32 %v939_v55, %v931_v44  ;;  %v3689_v7 = vadd.f32 %v1581_v14, %v1556_v39  ;;  %v942_v4 = vstv %s3645_s3  ;;  %v3696_v27 = vstv %s3649_s16 }
 0x15d   : > { %v935_v17 = vadd.f32 %v934_v6, %v3594_v52  ;;  %v938_v40 = vadd.f32 %v937_v30, %v3599_v60  ;;  %v943_v11 = vmul.f32 %v942_v4, %v931_v44  ;;  %v944_v0 = vmul.f32 %v942_v4, %v932_v58 }
 0x15e   : > { %v941_v46 = vadd.f32 %v940_v59, %v3608_v45  ;;  %v953_v29 = vmul.f32 %v3696_v27, %v931_v44  ;;  %v954_v2 = vmul.f32 %v3696_v27, %v932_v58  ;;  %v3707_v63 = vstv %s3658_s18 }
 0x15f   : > { %v3710_v52 = vstv %s3654_s7  ;;  %v947_v21 = vrot.slane %v943_v11, 1  ;;  %v948_v26 = vrot.slane %v944_v0, 1  ;;  %v963_v32 = vmul.f32 %v3707_v63, %v931_v44 }
 0x160   : > { %v964_v60 = vmul.f32 %v3707_v63, %v932_v58  ;;  %v957_v45 = vrot.slane %v953_v29, 1  ;;  %v958_v57 = vrot.slane %v954_v2, 1  ;;  %v973_v5 = vmul.f32 %v3710_v52, %v931_v44 }
 0x161   : > { %v974_v16 = vmul.f32 %v3710_v52, %v932_v58  ;;  %v949_v35 = vsel %vm291_vm1, %v947_v21, %v948_v26  ;;  %v967_v15 = vrot.slane %v963_v32, 1  ;;  %v3718_v48 = vstv %s3672_s17 }
 0x162   : > { %v968_v19 = vrot.slane %v964_v60, 1  ;;  %v951_v49 = vadd.f32 %v949_v35, %v935_v17  ;;  %v959_v54 = vsel %vm291_vm1, %v957_v45, %v958_v57  ;;  %v977_v10 = vrot.slane %v973_v5, 2 }
 0x163   : > { %v978_v62 = vrot.slane %v974_v16, 2  ;;  %v961_v36 = vadd.f32 %v959_v54, %v938_v40  ;;  %v983_v56 = vmul.f32 %v3718_v48, %v931_v44  ;;  %v984_v8 = vmul.f32 %v3718_v48, %v932_v58 }
 0x164   : > { %v969_v53 = vsel %vm291_vm1, %v967_v15, %v968_v19  ;;  %v992_v31 = vstv %s3683_s25  ;;  %v1002_v18 = vstv %s3691_s19  ;;  %v1006_v9 = vstv %s3698_s14 }
 0x165   : > { %v971_v50 = vadd.f32 %v969_v53, %v941_v46  ;;  %v979_v41 = vsel %vm344_vm7, %v977_v10, %v978_v62  ;;  %v987_v28 = vrot.slane %v983_v56, 2  ;;  %v988_v51 = vrot.slane %v984_v8, 2 }
 0x166   : > { %v981_v33 = vadd.f32 %v979_v41, %v951_v49  ;;  %v993_v37 = vmul.f32 %v992_v31, %v931_v44  ;;  %v994_v39 = vmul.f32 %v992_v31, %v932_v58  ;;  %v1011_v38 = vstv %s3702_s28 }
 0x167   : > { %v1588_v34 = vsel %vm264_vm6, %v4012_v24, %v1585_v23  ;;  %v989_v22 = vsel %vm344_vm7, %v987_v28, %v988_v51  ;;  %v1589_v42 = vsel %vm264_vm6, %v4012_v24, %v1587_v13 }
 0x168   : > { %v997_v47 = vrot.slane %v993_v37, 2  ;;  %v1003_v25 = vadd.f32 %v1002_v18, %v981_v33  ;;  %v991_v1 = vadd.f32 %v989_v22, %v961_v36  ;;  %v998_v44 = vrot.slane %v994_v39, 2 }
 0x169   : > { %v1590_v58 = vmul.f32 %v1588_v34, %v933_v61  ;;  %v1592_v6 = vmul.f32 %v1588_v34, %v936_v43  ;;  %v1594_v30 = vmul.f32 %v1588_v34, %v939_v55  ;;  %v1596_v59 = vmul.f32 %v1588_v34, %v942_v4 }
 0x16a   : > { %v1004_v14 = vmax.f32 %v1003_v25, 0.0  ;;  %v1597_v17 = vmul.f32 %v1589_v42, %v942_v4  ;;  %v999_v40 = vsel %vm344_vm7, %v997_v47, %v998_v44  ;;  %v1007_v46 = vadd.f32 %v1006_v9, %v991_v1 }
 0x16b   : > { %v1591_v11 = vadd.f32 %v1590_v58, %v3670_v3  ;;  %v1593_v20 = vadd.f32 %v1592_v6, %v3680_v12  ;;  %v1001_v24 = vadd.f32 %v999_v40, %v971_v50  ;;  %v1595_v61 = vadd.f32 %v1594_v30, %v3689_v7 }
 0x16c   : > { %1005 = vst [vmem:[%s3754_s26] sm:$0xff] %v1004_v14  ;;  %v1600_v43 = vrot.slane %v1596_v59, 1  ;;  %v1601_v55 = vrot.slane %v1597_v17, 1  ;;  %v1008_v0 = vmax.f32 %v1007_v46, 0.0  ;;  %v1605_v4 = vmul.f32 %v1588_v34, %v3696_v27 }
 0x16d   : > { %v1606_v29 = vmul.f32 %v1589_v42, %v3696_v27  ;;  %v1614_v2 = vmul.f32 %v1588_v34, %v3707_v63  ;;  %v1012_v3 = vadd.f32 %v1011_v38, %v1001_v24  ;;  %v1615_v21 = vmul.f32 %v1589_v42, %v3707_v63 }
 0x16e   : > { %v1602_v12 = vsel %vm291_vm1, %v1600_v43, %v1601_v55  ;;  %v1623_v26 = vmul.f32 %v1588_v34, %v3710_v52  ;;  %1904 = vst [vmem:[%s3754_s26 + $0x10] sm:$0xff] %v1008_v0  ;;  %v1609_v32 = vrot.slane %v1605_v4, 1  ;;  %v1624_v27 = vmul.f32 %v1589_v42, %v3710_v52 }
 0x16f   : > { %v1604_v7 = vadd.f32 %v1602_v12, %v1591_v11  ;;  %v1610_v60 = vrot.slane %v1606_v29, 1  ;;  %v1618_v45 = vrot.slane %v1614_v2, 1  ;;  %v1013_v57 = vmax.f32 %v1012_v3, 0.0 }
 0x170   : > { %v1619_v5 = vrot.slane %v1615_v21, 1  ;;  %v1627_v16 = vrot.slane %v1623_v26, 2  ;;  %v1632_v15 = vmul.f32 %v1588_v34, %v3718_v48  ;;  %v1633_v19 = vmul.f32 %v1589_v42, %v3718_v48 }
 0x171   : > { %v1611_v35 = vsel %vm291_vm1, %v1609_v32, %v1610_v60  ;;  %v1641_v49 = vmul.f32 %v1588_v34, %v992_v31  ;;  %1905 = vst [vmem:[%s3754_s26 + $0x20] sm:$0xff] %v1013_v57  ;;  %v1628_v10 = vrot.slane %v1624_v27, 2  ;;  %v1642_v62 = vmul.f32 %v1589_v42, %v992_v31 }
 0x172   : > { %v1613_v63 = vadd.f32 %v1611_v35, %v1593_v20  ;;  %v1620_v54 = vsel %vm291_vm1, %v1618_v45, %v1619_v5  ;;  %v1636_v52 = vrot.slane %v1632_v15, 2  ;;  %v1637_v53 = vrot.slane %v1633_v19, 2 }
 0x173   : > { %v1622_v36 = vadd.f32 %v1620_v54, %v1595_v61  ;;  %v1645_v56 = vrot.slane %v1641_v49, 2  ;;  %v1629_v8 = vsel %vm344_vm7, %v1627_v16, %v1628_v10  ;;  %v1646_v48 = vrot.slane %v1642_v62, 2 }
 0x174   : > { %v1631_v23 = vadd.f32 %v1629_v8, %v1604_v7  ;;  %v1638_v50 = vsel %vm344_vm7, %v1636_v52, %v1637_v53 }
 0x175   : > { %v1640_v41 = vadd.f32 %v1638_v50, %v1613_v63  ;;  %v1647_v13 = vsel %vm344_vm7, %v1645_v56, %v1646_v48 }
 0x176   : > { %v1649_v33 = vadd.f32 %v1647_v13, %v1622_v36  ;;  %v1650_v31 = vadd.f32 %v1631_v23, %v1002_v18 }
 0x177   : > { %v1653_v28 = vadd.f32 %v1640_v41, %v1006_v9 }
 0x178   : > { %v1651_v51 = vmax.f32 %v1650_v31, 0.0  ;;  %v1656_v37 = vadd.f32 %v1649_v33, %v1011_v38 }
 0x179   : > { %v1654_v39 = vmax.f32 %v1653_v28, 0.0 }
 0x17a   : > { %1652 = vst [vmem:[%s3754_s26 + $0x8] sm:$0xff] %v1651_v51  ;;  %v1657_v34 = vmax.f32 %v1656_v37, 0.0 }
 0x17b   : > { %1910 = vst [vmem:[%s3754_s26 + $0x18] sm:$0xff] %v1654_v39 }
 0x17c   : > { %1911 = vst [vmem:[%s3754_s26 + $0x28] sm:$0xff] %v1657_v34 }
 0x17d   : > { %s1912_s9 = sshll.u32 %s2189_s30, 1  ;;  %s1920_s15 = smul.u32 12, %s2193_s5 }
 0x17e   : > { %s1684_s11 = sshll.u32 %s3754_s26, 4  ;;  %s2214_s16 = smov 256   ;;  %s1685_s11 = int_to_ptr.vmem [resolvable:$true] %s1684_s11 }
 0x17f   : > { %s1671_s13 = sadd.s32 %s1920_s15, %s1912_s9  ;;  %1923 = sst [smem:[#allocation11]] (%p2337_p12), %s2214_s16 }
 0x180   : > { %s1913_s3 = sshll.u32 %s1671_s13, 3  ;;  %s2215_s25 = smov 512  }
 0x181   : > { %s1673_s18 = scalar_lea.hbm %s3846_s4, %s1913_s3  ;;  %1924 = sst [smem:[#allocation11 + $0x1]] (%p2337_p12), %s2215_s25 }
 0x182   : > { %s1686_s17 = sshll.u32 %s1673_s18, 4  ;;  %s2216_s30 = smov 2   ;;  %s1687_s17 = int_to_ptr.hbm [resolvable:$true] %s1686_s17 }
 0x183   : > { %1925 = sst [smem:[#allocation11 + $0x2]] (%p2337_p12), %s2216_s30  ;;  %s2217_s5 = smov 128  }
 0x184   : > { %1926 = sst [smem:[#allocation11 + $0x3]] (%p2337_p12), %s2217_s5  ;;  %s2218_s19 = smov 8  }
 0x185   : > { %1927 = sst [smem:[#allocation11 + $0x4]] (%p2337_p12), %s2217_s5  ;;  %s2219_s14 = smov [#allocation10]  }
 0x186   : > { %1928 = sst [smem:[#allocation11 + $0x5]] (%p2337_p12), %s2218_s19  ;;  %s2220_s28 = smov 0  }
 0x187   : > { %1929 = dma.general (%p2337_p12), %s1685_s11, 768, %s1687_s17, %s1660_s12, %s2219_s14, [#allocation11], %s2220_s28, 0  }
 0x188 PF: > { %p1940_p7 = scmp.ge.s32.totalorder %s2205_s8, 2  ;;  %s1714_s24 = sand.u32 1, %s2165_s0  }
 0x189   : > { %s1715_s26 = scalar_lea.sflag [#allocation8], %s1714_s24 }
 0x18a   : > { %p1936_p10 = pnand %p1940_p7, %p2350_p2 }
 0x18c   : > { %p1937_p11 = pneg %p1936_p10 }
 0x18e   : > { %2160 = dma.done.wait (%p1937_p11), %s1715_s26, 768  }
 0x18f   : > { %2162 = vsyncadd (%p1937_p11), %s1715_s26, 4294966528  ;;  %s38_s8 = sadd.s32 1, %s2205_s8   ;;  %s4014_s5 = sld [smem:[#allocation15_spill]] }
 0x190   : > { %p35_p13 = scmp.ge.s32.totalorder %s38_s8, 6   ;;  %s4015_s20 = sld [smem:[#allocation16_spill]] }
 0x191   : > { %s4016_s7 = sld [smem:[#allocation17_spill]]  ;;  %s4017_s0 = smov %s2169_s1 }
 0x192   : > { %s4018_s1 = smov %s2173_s27  ;;  %s4019_s27 = smov %s2345_s22 }
 0x193   : > { %s4020_s28 = smov %s2181_s29  ;;  %s4021_s29 = smov %s2185_s2 }
 0x194   : > { %s4022_s2 = smov %s2342_s21  ;;  %s4023_s30 = smov %s2197_s6 }
 0x195   :  { %37 = sbr.rel (!%p35_p13) target bundleno = 19 (0x13), region = 82 }
 0x196   : > { %s4024_s6 = smov %s4015_s20 }
 0x19a   :  { %1721 = vsyncpa [#allocation7], 1 }
 0x19b   :  { %1723 = vsyncpa [#allocation7 + $0x1], 1 }
 0x19c   :  { %1724 = vsyncpa [#allocation8], 1 }
 0x19d   :  { %1726 = vsyncpa [#allocation8 + $0x1], 1 }

</bundles_post_ra>
